<compile_context>
chip_gen: v7x
topology: tpu7x:2x2x1
jax: 0.10.0
libtpu: 0.0.40
codegen_flags: <defaults>
</compile_context>

<pallas_src>
import functools

import jax
import jax.numpy as jnp
from jax import lax
from jax.experimental import pallas as pl
from jax.experimental.pallas import tpu as pltpu

COMPUTE_DTYPE = jnp.bfloat16   # MXU input / intermediate storage dtype
BN_EPS = 1e-3


def _round_up(x, m):
    return (x + m - 1) // m * m


def _default_tn_wide():
    # v6e/v7x MXU is 256 lanes wide -> 256-wide output tiles; v5e MXU is 128.
    try:
        kind = jax.devices()[0].device_kind.lower()
        if "v5 lite" in kind or "v5e" in kind or "v5lite" in kind:
            return 128
    except Exception:
        pass
    return 256


TN_WIDE = _default_tn_wide()


def _pick_tile(n, target, mult):
    """Largest divisor of n that is <= target and a multiple of mult.
    Returns n itself if n <= target; None if no such divisor exists."""
    if n <= target:
        return n
    best = None
    d = mult
    while d <= target:
        if n % d == 0:
            best = d
        d += mult
    return best


def autopad(k, p=None, d=1):
    if d > 1:
        k = d * (k - 1) + 1 if isinstance(k, int) else [d * (x - 1) + 1 for x in k]
    if p is None:
        p = k // 2 if isinstance(k, int) else [x // 2 for x in k]
    return p


# --------------------------------------------------------------------------
# Weight preparation (run ONCE, outside jit): fold BN, fold attention scale,
# pad to lane-dense layouts, cast matmul weights to bf16.
# --------------------------------------------------------------------------

def _fold_bn(p):
    scale = p["gamma"] * lax.rsqrt(p["var"] + BN_EPS)
    bias = p["beta"] - p["mean"] * scale
    return scale, bias


def _fold_pw(p):
    scale, bias = _fold_bn(p)
    cout, cin = p["w"].shape[:2]
    w2d = p["w"].reshape(cout, cin).T * scale[None, :]
    return w2d, bias                      # (cin, cout) f32, (cout,) f32


def _pad_cols(w, b, cp):
    cout = b.shape[0]
    if cp != cout:
        w = jnp.pad(w, ((0, 0), (0, cp - cout)))
        b = jnp.pad(b, (0, cp - cout))
    return w, b


def _pad_rows_w(w, rin):
    if w.shape[0] != rin:
        w = jnp.pad(w, ((0, rin - w.shape[0]), (0, 0)))
    return w


def _mk_pw(w, b, w2=None):
    layer = {"w": w.astype(COMPUTE_DTYPE),
             "b": b.reshape(1, -1).astype(jnp.float32)}
    if w2 is not None:
        layer["w2"] = w2.astype(COMPUTE_DTYPE)
    return layer


def prepare_psa_params(params, *, c, num_heads):
    cpc = _round_up(c, 128)
    hd = c // num_heads
    kd = hd // 2
    ch = 2 * kd + hd
    h = num_heads * ch

    prep = {}

    # cv1 (C1 -> 2c): emit 'a' into cols [0, cpc) and 'b' into [cpc, 2*cpc)
    # so both halves stay lane-dense (padded cols are exactly zero).
    w, b = _fold_pw(params["cv1"])
    wa, ba = _pad_cols(w[:, :c], b[:c], cpc)
    wb, bb = _pad_cols(w[:, c:], b[c:], cpc)
    prep["cv1"] = _mk_pw(jnp.concatenate([wa, wb], axis=1),
                         jnp.concatenate([ba, bb]))

    # attn.qkv (c -> h): input is padded to cpc rows; fold kd^-0.5 into q rows.
    w, b = _fold_pw(params["attn"]["qkv"])
    col = jnp.arange(h)
    qmul = jnp.where((col % ch) < kd, kd ** (-0.5), 1.0).astype(jnp.float32)
    w = _pad_rows_w(w * qmul[None, :], cpc)
    b = b * qmul
    w, b = _pad_cols(w, b, _round_up(h, 128))
    prep["qkv"] = _mk_pw(w, b)

    # attn.proj (c -> c): inputs (o, pe) have exactly c channels; pad cout.
    w, b = _fold_pw(params["attn"]["proj"])
    w, b = _pad_cols(w, b, cpc)
    prep["proj"] = _mk_pw(w, b)

    # attn.pe: depthwise 3x3, per-channel (VPU kernel, f32 math).
    scale, bias = _fold_bn(params["attn"]["pe"])
    wpe = (params["attn"]["pe"]["w"].reshape(c, 9).T * scale[None, :])
    prep["pe"] = {"w": wpe.astype(jnp.float32),
                  "b": bias.reshape(1, c).astype(jnp.float32)}

    # ffn: c -> 2c -> c
    w, b = _fold_pw(params["ffn0"])
    w, b = _pad_cols(_pad_rows_w(w, cpc), b, _round_up(2 * c, 128))
    prep["ffn0"] = _mk_pw(w, b)

    w, b = _fold_pw(params["ffn1"])
    w, b = _pad_cols(_pad_rows_w(w, _round_up(2 * c, 128)), b, cpc)
    prep["ffn1"] = _mk_pw(w, b)

    # cv2 (concat(a, b) -> C1): fed as two K blocks, no XLA concat.
    w, b = _fold_pw(params["cv2"])
    c1 = b.shape[0]
    c1p = _round_up(c1, 128)
    w1 = _pad_rows_w(w[:c], cpc)
    w2 = _pad_rows_w(w[c:], cpc)
    w1, b = _pad_cols(w1, b, c1p)
    w2, _ = _pad_cols(w2, jnp.zeros((c1,), jnp.float32), c1p)
    prep["cv2"] = _mk_pw(w1, b, w2=w2)

    return prep


# --------------------------------------------------------------------------
# Kernel 1: fused 1x1 Conv (matmul) + BN bias (+SiLU) (+pre-add / K-concat /
#           residual epilogue).  bf16 MXU inputs, f32 accumulation/epilogue.
# --------------------------------------------------------------------------

def _pw_kernel(x_ref, *refs, act, x2_mode, has_res):
    i = 0
    x2_ref = None
    if x2_mode is not None:
        x2_ref, i = refs[i], i + 1
    w_ref, i = refs[i], i + 1
    w2_ref = None
    if x2_mode == "concat":
        w2_ref, i = refs[i], i + 1
    b_ref, i = refs[i], i + 1
    r_ref = None
    if has_res:
        r_ref, i = refs[i], i + 1
    o_ref = refs[i]

    xv = x_ref[...]
    if x2_mode == "add":                       # fuse the (o + pe) pre-add
        xv = xv.astype(jnp.float32) + x2_ref[...].astype(jnp.float32)
    y = jnp.dot(xv.astype(COMPUTE_DTYPE), w_ref[...],
                preferred_element_type=jnp.float32)
    if x2_mode == "concat":                    # concat along K == second dot
        y = y + jnp.dot(x2_ref[...].astype(COMPUTE_DTYPE), w2_ref[...],
                        preferred_element_type=jnp.float32)
    y = y + b_ref[...]
    if act:
        # SiLU: exp + approx reciprocal both ride the EUP slot.
        y = y * pl.reciprocal(1.0 + jnp.exp(-y), approx=True)
    if has_res:                                # residual epilogue (act=False here)
        y = y + r_ref[...].astype(jnp.float32)
    o_ref[...] = y.astype(o_ref.dtype)


def pw_conv_bn(x, layer, *, act, x2=None, x2_mode=None, residual=None,
               out_dtype=COMPUTE_DTYPE, tm_target=512):
    """1x1 Conv + BN (+SiLU) on flattened channels-last input (M, Cin)."""
    M = x.shape[0]
    w, bias = layer["w"], layer["b"]
    w2 = layer.get("w2", None)
    cp = bias.shape[1]
    tn = TN_WIDE if cp % TN_WIDE == 0 else 128
    tm = _pick_tile(M, tm_target, 16)
    if tm is None:                                     # rare: no nice divisor
        tm = min(tm_target, _round_up(M, 16))
    mp = _round_up(M, tm)

    def pad_rows(a):
        return a if a.shape[0] == mp else jnp.pad(a, ((0, mp - a.shape[0]), (0, 0)))

    args = [pad_rows(x)]
    specs = [pl.BlockSpec((tm, x.shape[1]), lambda i, j: (i, 0))]
    if x2_mode is not None:
        args.append(pad_rows(x2))
        specs.append(pl.BlockSpec((tm, x2.shape[1]), lambda i, j: (i, 0)))
    args.append(w)
    specs.append(pl.BlockSpec((w.shape[0], tn), lambda i, j: (0, j)))
    if x2_mode == "concat":
        args.append(w2)
        specs.append(pl.BlockSpec((w2.shape[0], tn), lambda i, j: (0, j)))
    args.append(bias)
    specs.append(pl.BlockSpec((1, tn), lambda i, j: (0, j)))
    has_res = residual is not None
    if has_res:
        assert residual.shape[1] == cp
        args.append(pad_rows(residual))
        specs.append(pl.BlockSpec((tm, tn), lambda i, j: (i, j)))

    k_total = w.shape[0] + (w2.shape[0] if x2_mode == "concat" else 0)
    out = pl.pallas_call(
        functools.partial(_pw_kernel, act=act, x2_mode=x2_mode, has_res=has_res),
        out_shape=jax.ShapeDtypeStruct((mp, cp), out_dtype),
        grid_spec=pltpu.PrefetchScalarGridSpec(
            num_scalar_prefetch=0,
            grid=(mp // tm, cp // tn),
            in_specs=specs,
            out_specs=pl.BlockSpec((tm, tn), lambda i, j: (i, j)),
        ),
        compiler_params=pltpu.CompilerParams(
            dimension_semantics=("parallel", "parallel")),
        cost_estimate=pl.CostEstimate(
            flops=2 * mp * k_total * cp,
            transcendentals=mp * cp if act else 0,
            bytes_accessed=int(sum(int(a.size) * a.dtype.itemsize for a in args)
                               + mp * cp * jnp.dtype(out_dtype).itemsize)),
    )(*args)
    # TODO(synk): for very large K (big YOLO layers) add a K-reduction grid
    # axis with an f32 VMEM accumulator and re-derive tiles for v7x 64 MiB VMEM.
    return out if mp == M else out[:M]


# --------------------------------------------------------------------------
# Kernel 2: attention core.  Head split, transposed contraction, softmax
# (scale pre-folded into q weights) and p @ v, tiled along the q axis.
# --------------------------------------------------------------------------

def _attn_kernel(q_ref, kv_ref, o_ref, *, num_heads, kd, hd):
    # q_ref: (tq, nh*ch) bf16    kv_ref: (N, nh*ch) bf16    o_ref: (tq, nh*hd) bf16
    ch = 2 * kd + hd
    qall = q_ref[...]
    kv = kv_ref[...]
    for hidx in range(num_heads):
        base = hidx * ch
        q = qall[:, base:base + kd]                       # (tq, kd), pre-scaled
        k = kv[:, base + kd:base + 2 * kd]                # (N, kd)
        v = kv[:, base + 2 * kd:base + ch]                # (N, hd)
        s = lax.dot_general(q, k, (((1,), (1,)), ((), ())),
                            preferred_element_type=jnp.float32)   # (tq, N)
        m = jnp.max(s, axis=-1, keepdims=True)
        e = jnp.exp(s - m)
        p = e * pl.reciprocal(jnp.sum(e, axis=-1, keepdims=True), approx=True)
        o = jnp.dot(p.astype(v.dtype), v, preferred_element_type=jnp.float32)
        o_ref[:, hidx * hd:(hidx + 1) * hd] = o.astype(o_ref.dtype)


def attn_core(qkv3, *, num_heads, kd, hd, tq_target=256):
    B, N, h = qkv3.shape
    c = num_heads * hd
    tq = _pick_tile(N, tq_target, 16)
    if tq is None:
        tq = _pick_tile(N, tq_target, 8)
    if tq is None:
        tq = N
    nq = N // tq
    return pl.pallas_call(
        functools.partial(_attn_kernel, num_heads=num_heads, kd=kd, hd=hd),
        out_shape=jax.ShapeDtypeStruct((B, N, c), COMPUTE_DTYPE),
        grid_spec=pltpu.PrefetchScalarGridSpec(
            num_scalar_prefetch=0,
            grid=(B, nq),
            in_specs=[
                pl.BlockSpec((None, tq, h), lambda b, qi: (b, qi, 0)),
                pl.BlockSpec((None, N, h), lambda b, qi: (b, 0, 0)),
            ],
            out_specs=pl.BlockSpec((None, tq, c), lambda b, qi: (b, qi, 0)),
        ),
        compiler_params=pltpu.CompilerParams(
            dimension_semantics=("parallel", "parallel")),
        cost_estimate=pl.CostEstimate(
            flops=2 * B * num_heads * N * N * (kd + hd),
            transcendentals=B * num_heads * N * N,
            bytes_accessed=2 * B * N * h * 2 + B * N * c * 2),
    )(qkv3, qkv3)


# --------------------------------------------------------------------------
# Kernel 3: depthwise 3x3 Conv + BN (positional encoding), f32 VPU math.
# --------------------------------------------------------------------------

def _dwconv3x3_bn_kernel(xp_ref, w_ref, b_ref, o_ref, *, H, W):
    x = xp_ref[...].astype(jnp.float32)        # (H+2, W+2, C)
    w = w_ref[...]                             # (9, C), BN scale folded
    acc = x[0:H, 0:W, :] * w[0]
    for t in range(1, 9):
        dh, dw = divmod(t, 3)
        acc = acc + x[dh:dh + H, dw:dw + W, :] * w[t]
    o_ref[...] = acc + b_ref[...]


def dwconv3x3_bn(x_img, layer):
    """Depthwise 3x3 Conv + BN (no act) on (B, H, W, C) channels-last input."""
    B, H, W, C = x_img.shape
    xp = jnp.pad(x_img, ((0, 0), (1, 1), (1, 1), (0, 0)))
    # TODO(synk): pad C to 128 / use pltpu.roll for the W-shifts for large C.
    return pl.pallas_call(
        functools.partial(_dwconv3x3_bn_kernel, H=H, W=W),
        out_shape=jax.ShapeDtypeStruct((B, H, W, C), jnp.float32),
        grid_spec=pltpu.PrefetchScalarGridSpec(
            num_scalar_prefetch=0,
            grid=(B,),
            in_specs=[
                pl.BlockSpec((None, H + 2, W + 2, C), lambda b: (b, 0, 0, 0)),
                pl.BlockSpec((9, C), lambda b: (0, 0)),
                pl.BlockSpec((1, C), lambda b: (0, 0)),
            ],
            out_specs=pl.BlockSpec((None, H, W, C), lambda b: (b, 0, 0, 0)),
        ),
        compiler_params=pltpu.CompilerParams(
            dimension_semantics=("parallel",)),
    )(xp, layer["w"], layer["b"])


# --------------------------------------------------------------------------
# PSA forward (Pallas path).  x is NCHW to match the PyTorch module; all
# intermediates are channels-last (M, C_pad) bf16 inside the block.
# --------------------------------------------------------------------------

def psa_forward(x_nchw, prep, *, c, num_heads):
    B, C1, H, W = x_nchw.shape
    N = H * W
    M = B * N
    cpc = _round_up(c, 128)
    hd = c // num_heads
    kd = hd // 2
    ch = 2 * kd + hd

    # single NCHW -> channels-last conversion for the whole block
    xf = jnp.transpose(x_nchw, (0, 2, 3, 1)).reshape(M, C1)

    y = pw_conv_bn(xf, prep["cv1"], act=True)                 # (M, 2*cpc) bf16
    a_pad, b_pad = y[:, :cpc], y[:, cpc:]

    # ---- attention ----
    qkv = pw_conv_bn(b_pad, prep["qkv"], act=False)           # (M, h) bf16
    h_ch = num_heads * ch
    qkv3 = qkv[:, :h_ch].reshape(B, N, h_ch)
    o = attn_core(qkv3, num_heads=num_heads, kd=kd, hd=hd).reshape(M, c)

    if num_heads == 1:
        v_flat = qkv[:, 2 * kd:ch]
    else:
        v_flat = jnp.concatenate(
            [qkv[:, i * ch + 2 * kd:(i + 1) * ch] for i in range(num_heads)],
            axis=-1)
    pe = dwconv3x3_bn(v_flat.reshape(B, H, W, c), prep["pe"]).reshape(M, c)

    # proj fused with the (o + pe) pre-add and the outer residual (+ b)
    b_pad = pw_conv_bn(o, prep["proj"], act=False,
                       x2=pe, x2_mode="add", residual=b_pad)  # (M, cpc)

    # ---- ffn, residual fused into the second matmul ----
    f = pw_conv_bn(b_pad, prep["ffn0"], act=True)
    b_pad = pw_conv_bn(f, prep["ffn1"], act=False, residual=b_pad)

    # ---- cv2 on concat(a, b) fed as two K blocks ----
    out = pw_conv_bn(a_pad, prep["cv2"], act=True,
                     x2=b_pad, x2_mode="concat", out_dtype=jnp.float32)
    if out.shape[1] != C1:
        out = out[:, :C1]
    return jnp.transpose(out.reshape(B, H, W, C1), (0, 3, 1, 2))


# --------------------------------------------------------------------------
# Reference (pure JAX, mirrors PyTorch; bf16 matmul inputs / f32 accumulate)
# --------------------------------------------------------------------------

def conv_bn_ref(x, p, *, k=1, s=1, groups=1, act=True, compute_dtype=COMPUTE_DTYPE):
    pad = autopad(k)
    scale, bias = _fold_bn(p)
    w = p["w"] * scale[:, None, None, None]
    cd = jnp.float32 if compute_dtype is None else compute_dtype
    y = lax.conv_general_dilated(
        x.astype(cd), w.astype(cd), (s, s), ((pad, pad), (pad, pad)),
        dimension_numbers=("NCHW", "OIHW", "NCHW"),
        feature_group_count=groups,
        preferred_element_type=jnp.float32)
    y = y + bias[None, :, None, None]
    if act:
        y = y * jax.nn.sigmoid(y)
    return y


def attention_ref(x, p, *, num_heads):
    B, C, H, W = x.shape
    N = H * W
    hd = C // num_heads
    kd = hd // 2
    scale = kd ** (-0.5)
    qkv = conv_bn_ref(x, p["qkv"], k=1, act=False)
    qkv = qkv.reshape(B, num_heads, 2 * kd + hd, N)
    q, k, v = qkv[:, :, :kd], qkv[:, :, kd:2 * kd], qkv[:, :, 2 * kd:]
    attn = jnp.einsum("bhdn,bhdm->bhnm", q.astype(COMPUTE_DTYPE),
                      k.astype(COMPUTE_DTYPE),
                      preferred_element_type=jnp.float32) * scale
    attn = jax.nn.softmax(attn, axis=-1)
    o = jnp.einsum("bhdn,bhmn->bhdm", v.astype(COMPUTE_DTYPE),
                   attn.astype(COMPUTE_DTYPE),
                   preferred_element_type=jnp.float32)
    o = o.reshape(B, C, H, W)
    o = o + conv_bn_ref(v.reshape(B, C, H, W), p["pe"], k=3, groups=C,
                        act=False, compute_dtype=None)
    return conv_bn_ref(o, p["proj"], k=1, act=False)


def psa_forward_ref(x, params, *, c, num_heads):
    y = conv_bn_ref(x, params["cv1"], k=1, act=True)
    a, b = y[:, :c], y[:, c:]
    b = b + attention_ref(b, params["attn"], num_heads=num_heads)
    f = conv_bn_ref(b, params["ffn0"], k=1, act=True)
    f = conv_bn_ref(f, params["ffn1"], k=1, act=False)
    b = b + f
    return conv_bn_ref(jnp.concatenate([a, b], axis=1), params["cv2"], k=1, act=True)


# --------------------------------------------------------------------------
# main
# --------------------------------------------------------------------------

def make_conv_params(key, cout, cin, k=1):
    kw, kg, kb, km, kv = jax.random.split(key, 5)
    return {
        "w": 0.1 * jax.random.normal(kw, (cout, cin, k, k), jnp.float32),
        "gamma": 1.0 + 0.1 * jax.random.normal(kg, (cout,), jnp.float32),
        "beta": 0.1 * jax.random.normal(kb, (cout,), jnp.float32),
        "mean": 0.1 * jax.random.normal(km, (cout,), jnp.float32),
        "var": jnp.abs(jax.random.normal(kv, (cout,), jnp.float32)) + 0.5,
    }


if __name__ == "__main__":
    # PSA(c1=c2=128): c = 64, num_heads = c // 64 = 1  (smallest valid config)
    B, C1, H, W = 2, 128, 8, 8
    c = int(C1 * 0.5)
    num_heads = c // 64
    hd = c // num_heads
    kd = hd // 2
    h_qkv = c + 2 * kd * num_heads

    key = jax.random.PRNGKey(0)
    kx, k1, k2, k3, k4, k5, k6, k7 = jax.random.split(key, 8)

    x = jax.random.normal(kx, (B, C1, H, W), dtype=jnp.float32)
    params = {
        "cv1": make_conv_params(k1, 2 * c, C1, 1),
        "cv2": make_conv_params(k2, C1, 2 * c, 1),
        "attn": {
            "qkv": make_conv_params(k3, h_qkv, c, 1),
            "proj": make_conv_params(k4, c, c, 1),
            "pe": make_conv_params(k5, c, 1, 3),       # depthwise (c, 1, 3, 3)
        },
        "ffn0": make_conv_params(k6, 2 * c, c, 1),
        "ffn1": make_conv_params(k7, c, 2 * c, 1),
    }

    # Weight prep (BN fold, scale fold, pad, bf16 cast) hoisted out of jit.
    prep = prepare_psa_params(params, c=c, num_heads=num_heads)

    fwd = jax.jit(functools.partial(psa_forward, c=c, num_heads=num_heads))
    out = fwd(x, prep)
    jax.block_until_ready(out)

    ref = psa_forward_ref(x, params, c=c, num_heads=num_heads)
    assert out.shape == (B, C1, H, W), out.shape
    err = float(jnp.max(jnp.abs(out - ref)))
    assert jnp.allclose(out, ref, atol=5e-2, rtol=5e-2), err

    print("KERNEL_OK")
</pallas_src>

<mosaic_0001>
module attributes {stable_mosaic.version = 11 : i64} {
  func.func @_pw_kernel(%arg0: i32, %arg1: i32, %arg2: memref<128x128xf32, #tpu.memory_space<vmem>>, %arg3: memref<128x256xbf16, #tpu.memory_space<vmem>>, %arg4: memref<1x256xf32, #tpu.memory_space<vmem>>, %arg5: memref<128x256xbf16, #tpu.memory_space<vmem>>) attributes {dimension_semantics = [#tpu.dimension_semantics<parallel>, #tpu.dimension_semantics<parallel>], iteration_bounds = array<i64: 1, 1>, scalar_prefetch = 0 : i64, scratch_operands = 0 : i64, tpu.core_type = #tpu.core_type<tc>, window_params = [{transform_indices = @transform_0, window_bounds = array<i64: 128, 128>}, {transform_indices = @transform_1, window_bounds = array<i64: 128, 256>}, {transform_indices = @transform_2, window_bounds = array<i64: 1, 256>}, {transform_indices = @transform_3, window_bounds = array<i64: 128, 256>}]} {
    %c0 = arith.constant 0 : index
    %c0_0 = arith.constant 0 : index
    %0 = vector.load %arg2[%c0, %c0_0] : memref<128x128xf32, #tpu.memory_space<vmem>>, vector<128x128xf32>
    %1 = arith.truncf %0 : vector<128x128xf32> to vector<128x128xbf16>
    %c0_1 = arith.constant 0 : index
    %c0_2 = arith.constant 0 : index
    %2 = vector.load %arg3[%c0_1, %c0_2] : memref<128x256xbf16, #tpu.memory_space<vmem>>, vector<128x256xbf16>
    %cst = arith.constant dense<0.000000e+00> : vector<128x256xf32>
    %3 = tpu.matmul %1, %2, %cst {dimension_numbers = #tpu.dot_dimension_numbers<[1], [0], [0], [1], [0, 0, 1, 1], [], []>} : vector<128x128xbf16>, vector<128x256xbf16>, vector<128x256xf32> -> vector<128x256xf32>
    %c0_3 = arith.constant 0 : index
    %c0_4 = arith.constant 0 : index
    %4 = vector.load %arg4[%c0_3, %c0_4] : memref<1x256xf32, #tpu.memory_space<vmem>>, vector<1x256xf32>
    %5 = vector.broadcast %4 : vector<1x256xf32> to vector<128x256xf32>
    %6 = arith.addf %3, %5 : vector<128x256xf32>
    %cst_5 = arith.constant 0.000000e+00 : f32
    %7 = vector.broadcast %cst_5 : f32 to vector<128x256xf32>
    %8 = arith.subf %7, %6 : vector<128x256xf32>
    %9 = math.exp %8 : vector<128x256xf32>
    %cst_6 = arith.constant 1.000000e+00 : f32
    %10 = vector.broadcast %cst_6 : f32 to vector<128x256xf32>
    %11 = arith.addf %10, %9 : vector<128x256xf32>
    %12 = tpu.reciprocal %11 {approx = true} : vector<128x256xf32> -> vector<128x256xf32>
    %13 = arith.mulf %6, %12 : vector<128x256xf32>
    %14 = arith.truncf %13 : vector<128x256xf32> to vector<128x256xbf16>
    %c0_7 = arith.constant 0 : index
    %c0_8 = arith.constant 0 : index
    %15 = vector.load %arg5[%c0_7, %c0_8] : memref<128x256xbf16, #tpu.memory_space<vmem>>, vector<128x256xbf16>
    tpu.vector_store %arg5[%c0_7, %c0_8], %14 {strides = array<i32>} : memref<128x256xbf16, #tpu.memory_space<vmem>>, vector<128x256xbf16>,
    return
  }
  func.func @transform_0(%arg0: i32, %arg1: i32) -> (i32, i32) {
    %c0_i32 = arith.constant 0 : i32
    %c0_i32_0 = arith.constant 0 : i32
    return %arg0, %c0_i32 : i32, i32
  }
  func.func @transform_1(%arg0: i32, %arg1: i32) -> (i32, i32) {
    %c0_i32 = arith.constant 0 : i32
    %c0_i32_0 = arith.constant 0 : i32
    return %c0_i32, %arg1 : i32, i32
  }
  func.func @transform_2(%arg0: i32, %arg1: i32) -> (i32, i32) {
    %c0_i32 = arith.constant 0 : i32
    %c0_i32_0 = arith.constant 0 : i32
    return %c0_i32, %arg1 : i32, i32
  }
  func.func @transform_3(%arg0: i32, %arg1: i32) -> (i32, i32) {
    %c0_i32 = arith.constant 0 : i32
    return %arg0, %arg1 : i32, i32
  }
}

module attributes {stable_mosaic.version = 11 : i64} {
  func.func @_attn_kernel(%arg0: i32, %arg1: i32, %arg2: memref<1x64x128xbf16, #tpu.memory_space<vmem>>, %arg3: memref<1x64x128xbf16, #tpu.memory_space<vmem>>, %arg4: memref<1x64x64xbf16, #tpu.memory_space<vmem>>) attributes {dimension_semantics = [#tpu.dimension_semantics<parallel>, #tpu.dimension_semantics<parallel>], iteration_bounds = array<i64: 2, 1>, scalar_prefetch = 0 : i64, scratch_operands = 0 : i64, tpu.core_type = #tpu.core_type<tc>, window_params = [{transform_indices = @transform_0, window_bounds = array<i64: 1, 64, 128>}, {transform_indices = @transform_1, window_bounds = array<i64: 1, 64, 128>}, {transform_indices = @transform_2, window_bounds = array<i64: 1, 64, 64>}]} {
    %c0 = arith.constant 0 : index
    %c0_0 = arith.constant 0 : index
    %c0_1 = arith.constant 0 : index
    %0 = vector.load %arg2[%c0, %c0_0, %c0_1] : memref<1x64x128xbf16, #tpu.memory_space<vmem>>, vector<1x64x128xbf16>
    %1 = vector.shape_cast %0 : vector<1x64x128xbf16> to vector<64x128xbf16>
    %c0_2 = arith.constant 0 : index
    %c0_3 = arith.constant 0 : index
    %c0_4 = arith.constant 0 : index
    %2 = vector.load %arg3[%c0_2, %c0_3, %c0_4] : memref<1x64x128xbf16, #tpu.memory_space<vmem>>, vector<1x64x128xbf16>
    %3 = vector.shape_cast %2 : vector<1x64x128xbf16> to vector<64x128xbf16>
    %4 = vector.extract_strided_slice %1 {offsets = [0, 0], sizes = [64, 32], strides = [1, 1]} : vector<64x128xbf16> to vector<64x32xbf16>
    %5 = vector.extract_strided_slice %3 {offsets = [0, 32], sizes = [64, 32], strides = [1, 1]} : vector<64x128xbf16> to vector<64x32xbf16>
    %6 = vector.extract_strided_slice %3 {offsets = [0, 64], sizes = [64, 64], strides = [1, 1]} : vector<64x128xbf16> to vector<64x64xbf16>
    %cst = arith.constant dense<0.000000e+00> : vector<64x64xf32>
    %7 = tpu.matmul %4, %5, %cst {dimension_numbers = #tpu.dot_dimension_numbers<[1], [1], [0], [0], [0, 0, 1, 0], [], []>} : vector<64x32xbf16>, vector<64x32xbf16>, vector<64x64xf32> -> vector<64x64xf32>
    %cst_5 = arith.constant dense<0xFF800000> : vector<64xf32>
    %8 = vector.multi_reduction <maximumf>, %7, %cst_5 [1] : vector<64x64xf32> to vector<64xf32>
    %9 = vector.shape_cast %8 : vector<64xf32> to vector<64x1xf32>
    %10 = vector.broadcast %9 : vector<64x1xf32> to vector<64x64xf32>
    %11 = arith.subf %7, %10 : vector<64x64xf32>
    %12 = math.exp %11 : vector<64x64xf32>
    %cst_6 = arith.constant dense<0.000000e+00> : vector<64xf32>
    %13 = vector.multi_reduction <add>, %12, %cst_6 [1] : vector<64x64xf32> to vector<64xf32>
    %14 = vector.shape_cast %13 : vector<64xf32> to vector<64x1xf32>
    %15 = tpu.reciprocal %14 {approx = true} : vector<64x1xf32> -> vector<64x1xf32>
    %16 = vector.broadcast %15 : vector<64x1xf32> to vector<64x64xf32>
    %17 = arith.mulf %12, %16 : vector<64x64xf32>
    %18 = arith.truncf %17 : vector<64x64xf32> to vector<64x64xbf16>
    %cst_7 = arith.constant dense<0.000000e+00> : vector<64x64xf32>
    %19 = tpu.matmul %18, %6, %cst_7 {dimension_numbers = #tpu.dot_dimension_numbers<[1], [0], [0], [1], [0, 0, 1, 1], [], []>} : vector<64x64xbf16>, vector<64x64xbf16>, vector<64x64xf32> -> vector<64x64xf32>
    %20 = arith.truncf %19 : vector<64x64xf32> to vector<64x64xbf16>
    %c0_8 = arith.constant 0 : index
    %c0_9 = arith.constant 0 : index
    %c0_10 = arith.constant 0 : index
    %21 = vector.load %arg4[%c0_8, %c0_9, %c0_10] : memref<1x64x64xbf16, #tpu.memory_space<vmem>>, vector<1x64x64xbf16>
    %22 = vector.shape_cast %21 : vector<1x64x64xbf16> to vector<64x64xbf16>
    %23 = vector.shape_cast %20 : vector<64x64xbf16> to vector<1x64x64xbf16>
    tpu.vector_store %arg4[%c0_8, %c0_9, %c0_10], %23 {strides = array<i32>} : memref<1x64x64xbf16, #tpu.memory_space<vmem>>, vector<1x64x64xbf16>,
    return
  }
  func.func @transform_0(%arg0: i32, %arg1: i32) -> (i32, i32, i32) {
    %c0_i32 = arith.constant 0 : i32
    %c0_i32_0 = arith.constant 0 : i32
    return %arg0, %arg1, %c0_i32 : i32, i32, i32
  }
  func.func @transform_1(%arg0: i32, %arg1: i32) -> (i32, i32, i32) {
    %c0_i32 = arith.constant 0 : i32
    %c0_i32_0 = arith.constant 0 : i32
    %c0_i32_1 = arith.constant 0 : i32
    return %arg0, %c0_i32, %c0_i32_0 : i32, i32, i32
  }
  func.func @transform_2(%arg0: i32, %arg1: i32) -> (i32, i32, i32) {
    %c0_i32 = arith.constant 0 : i32
    %c0_i32_0 = arith.constant 0 : i32
    return %arg0, %arg1, %c0_i32 : i32, i32, i32
  }
}

module attributes {stable_mosaic.version = 11 : i64} {
  func.func @_pw_kernel(%arg0: i32, %arg1: i32, %arg2: memref<128x128xbf16, #tpu.memory_space<vmem>>, %arg3: memref<128x128xbf16, #tpu.memory_space<vmem>>, %arg4: memref<1x128xf32, #tpu.memory_space<vmem>>, %arg5: memref<128x128xbf16, #tpu.memory_space<vmem>>) attributes {dimension_semantics = [#tpu.dimension_semantics<parallel>, #tpu.dimension_semantics<parallel>], iteration_bounds = array<i64: 1, 1>, scalar_prefetch = 0 : i64, scratch_operands = 0 : i64, tpu.core_type = #tpu.core_type<tc>, window_params = [{transform_indices = @transform_0, window_bounds = array<i64: 128, 128>}, {transform_indices = @transform_1, window_bounds = array<i64: 128, 128>}, {transform_indices = @transform_2, window_bounds = array<i64: 1, 128>}, {transform_indices = @transform_3, window_bounds = array<i64: 128, 128>}]} {
    %c0 = arith.constant 0 : index
    %c0_0 = arith.constant 0 : index
    %0 = vector.load %arg2[%c0, %c0_0] : memref<128x128xbf16, #tpu.memory_space<vmem>>, vector<128x128xbf16>
    %c0_1 = arith.constant 0 : index
    %c0_2 = arith.constant 0 : index
    %1 = vector.load %arg3[%c0_1, %c0_2] : memref<128x128xbf16, #tpu.memory_space<vmem>>, vector<128x128xbf16>
    %cst = arith.constant dense<0.000000e+00> : vector<128x128xf32>
    %2 = tpu.matmul %0, %1, %cst {dimension_numbers = #tpu.dot_dimension_numbers<[1], [0], [0], [1], [0, 0, 1, 1], [], []>} : vector<128x128xbf16>, vector<128x128xbf16>, vector<128x128xf32> -> vector<128x128xf32>
    %c0_3 = arith.constant 0 : index
    %c0_4 = arith.constant 0 : index
    %3 = vector.load %arg4[%c0_3, %c0_4] : memref<1x128xf32, #tpu.memory_space<vmem>>, vector<1x128xf32>
    %4 = vector.broadcast %3 : vector<1x128xf32> to vector<128x128xf32>
    %5 = arith.addf %2, %4 : vector<128x128xf32>
    %6 = arith.truncf %5 : vector<128x128xf32> to vector<128x128xbf16>
    %c0_5 = arith.constant 0 : index
    %c0_6 = arith.constant 0 : index
    %7 = vector.load %arg5[%c0_5, %c0_6] : memref<128x128xbf16, #tpu.memory_space<vmem>>, vector<128x128xbf16>
    tpu.vector_store %arg5[%c0_5, %c0_6], %6 {strides = array<i32>} : memref<128x128xbf16, #tpu.memory_space<vmem>>, vector<128x128xbf16>,
    return
  }
  func.func @transform_0(%arg0: i32, %arg1: i32) -> (i32, i32) {
    %c0_i32 = arith.constant 0 : i32
    %c0_i32_0 = arith.constant 0 : i32
    return %arg0, %c0_i32 : i32, i32
  }
  func.func @transform_1(%arg0: i32, %arg1: i32) -> (i32, i32) {
    %c0_i32 = arith.constant 0 : i32
    %c0_i32_0 = arith.constant 0 : i32
    return %c0_i32, %arg1 : i32, i32
  }
  func.func @transform_2(%arg0: i32, %arg1: i32) -> (i32, i32) {
    %c0_i32 = arith.constant 0 : i32
    %c0_i32_0 = arith.constant 0 : i32
    return %c0_i32, %arg1 : i32, i32
  }
  func.func @transform_3(%arg0: i32, %arg1: i32) -> (i32, i32) {
    %c0_i32 = arith.constant 0 : i32
    return %arg0, %arg1 : i32, i32
  }
}

module attributes {stable_mosaic.version = 11 : i64} {
  func.func @_dwconv3x3_bn_kernel(%arg0: i32, %arg1: memref<1x10x10x64xbf16, #tpu.memory_space<vmem>>, %arg2: memref<9x64xf32, #tpu.memory_space<vmem>>, %arg3: memref<1x64xf32, #tpu.memory_space<vmem>>, %arg4: memref<1x8x8x64xf32, #tpu.memory_space<vmem>>) attributes {dimension_semantics = [#tpu.dimension_semantics<parallel>], iteration_bounds = array<i64: 2>, scalar_prefetch = 0 : i64, scratch_operands = 0 : i64, tpu.core_type = #tpu.core_type<tc>, window_params = [{transform_indices = @transform_0, window_bounds = array<i64: 1, 10, 10, 64>}, {pipeline_mode = #tpu.pipeline_mode<synchronous>, transform_indices = @transform_1, window_bounds = array<i64: 9, 64>}, {pipeline_mode = #tpu.pipeline_mode<synchronous>, transform_indices = @transform_2, window_bounds = array<i64: 1, 64>}, {transform_indices = @transform_3, window_bounds = array<i64: 1, 8, 8, 64>}]} {
    %c0 = arith.constant 0 : index
    %c0_0 = arith.constant 0 : index
    %c0_1 = arith.constant 0 : index
    %c0_2 = arith.constant 0 : index
    %0 = vector.load %arg1[%c0, %c0_0, %c0_1, %c0_2] : memref<1x10x10x64xbf16, #tpu.memory_space<vmem>>, vector<1x10x10x64xbf16>
    %1 = vector.shape_cast %0 : vector<1x10x10x64xbf16> to vector<10x10x64xbf16>
    %2 = arith.extf %1 : vector<10x10x64xbf16> to vector<10x10x64xf32>
    %c0_3 = arith.constant 0 : index
    %c0_4 = arith.constant 0 : index
    %3 = vector.load %arg2[%c0_3, %c0_4] : memref<9x64xf32, #tpu.memory_space<vmem>>, vector<9x64xf32>
    %4 = vector.extract_strided_slice %2 {offsets = [0, 0, 0], sizes = [8, 8, 64], strides = [1, 1, 1]} : vector<10x10x64xf32> to vector<8x8x64xf32>
    %5 = vector.extract_strided_slice %3 {offsets = [0, 0], sizes = [1, 64], strides = [1, 1]} : vector<9x64xf32> to vector<1x64xf32>
    %6 = vector.shape_cast %5 : vector<1x64xf32> to vector<64xf32>
    %7 = vector.shape_cast %6 : vector<64xf32> to vector<1x1x64xf32>
    %8 = vector.broadcast %7 : vector<1x1x64xf32> to vector<8x8x64xf32>
    %9 = arith.mulf %4, %8 : vector<8x8x64xf32>
    %10 = vector.extract_strided_slice %2 {offsets = [0, 1, 0], sizes = [8, 8, 64], strides = [1, 1, 1]} : vector<10x10x64xf32> to vector<8x8x64xf32>
    %11 = vector.extract_strided_slice %3 {offsets = [1, 0], sizes = [1, 64], strides = [1, 1]} : vector<9x64xf32> to vector<1x64xf32>
    %12 = vector.shape_cast %11 : vector<1x64xf32> to vector<64xf32>
    %13 = vector.shape_cast %12 : vector<64xf32> to vector<1x1x64xf32>
    %14 = vector.broadcast %13 : vector<1x1x64xf32> to vector<8x8x64xf32>
    %15 = arith.mulf %10, %14 : vector<8x8x64xf32>
    %16 = arith.addf %9, %15 : vector<8x8x64xf32>
    %17 = vector.extract_strided_slice %2 {offsets = [0, 2, 0], sizes = [8, 8, 64], strides = [1, 1, 1]} : vector<10x10x64xf32> to vector<8x8x64xf32>
    %18 = vector.extract_strided_slice %3 {offsets = [2, 0], sizes = [1, 64], strides = [1, 1]} : vector<9x64xf32> to vector<1x64xf32>
    %19 = vector.shape_cast %18 : vector<1x64xf32> to vector<64xf32>
    %20 = vector.shape_cast %19 : vector<64xf32> to vector<1x1x64xf32>
    %21 = vector.broadcast %20 : vector<1x1x64xf32> to vector<8x8x64xf32>
    %22 = arith.mulf %17, %21 : vector<8x8x64xf32>
    %23 = arith.addf %16, %22 : vector<8x8x64xf32>
    %24 = vector.extract_strided_slice %2 {offsets = [1, 0, 0], sizes = [8, 8, 64], strides = [1, 1, 1]} : vector<10x10x64xf32> to vector<8x8x64xf32>
    %25 = vector.extract_strided_slice %3 {offsets = [3, 0], sizes = [1, 64], strides = [1, 1]} : vector<9x64xf32> to vector<1x64xf32>
    %26 = vector.shape_cast %25 : vector<1x64xf32> to vector<64xf32>
    %27 = vector.shape_cast %26 : vector<64xf32> to vector<1x1x64xf32>
    %28 = vector.broadcast %27 : vector<1x1x64xf32> to vector<8x8x64xf32>
    %29 = arith.mulf %24, %28 : vector<8x8x64xf32>
    %30 = arith.addf %23, %29 : vector<8x8x64xf32>
    %31 = vector.extract_strided_slice %2 {offsets = [1, 1, 0], sizes = [8, 8, 64], strides = [1, 1, 1]} : vector<10x10x64xf32> to vector<8x8x64xf32>
    %32 = vector.extract_strided_slice %3 {offsets = [4, 0], sizes = [1, 64], strides = [1, 1]} : vector<9x64xf32> to vector<1x64xf32>
    %33 = vector.shape_cast %32 : vector<1x64xf32> to vector<64xf32>
    %34 = vector.shape_cast %33 : vector<64xf32> to vector<1x1x64xf32>
    %35 = vector.broadcast %34 : vector<1x1x64xf32> to vector<8x8x64xf32>
    %36 = arith.mulf %31, %35 : vector<8x8x64xf32>
    %37 = arith.addf %30, %36 : vector<8x8x64xf32>
    %38 = vector.extract_strided_slice %2 {offsets = [1, 2, 0], sizes = [8, 8, 64], strides = [1, 1, 1]} : vector<10x10x64xf32> to vector<8x8x64xf32>
    %39 = vector.extract_strided_slice %3 {offsets = [5, 0], sizes = [1, 64], strides = [1, 1]} : vector<9x64xf32> to vector<1x64xf32>
    %40 = vector.shape_cast %39 : vector<1x64xf32> to vector<64xf32>
    %41 = vector.shape_cast %40 : vector<64xf32> to vector<1x1x64xf32>
    %42 = vector.broadcast %41 : vector<1x1x64xf32> to vector<8x8x64xf32>
    %43 = arith.mulf %38, %42 : vector<8x8x64xf32>
    %44 = arith.addf %37, %43 : vector<8x8x64xf32>
    %45 = vector.extract_strided_slice %2 {offsets = [2, 0, 0], sizes = [8, 8, 64], strides = [1, 1, 1]} : vector<10x10x64xf32> to vector<8x8x64xf32>
    %46 = vector.extract_strided_slice %3 {offsets = [6, 0], sizes = [1, 64], strides = [1, 1]} : vector<9x64xf32> to vector<1x64xf32>
    %47 = vector.shape_cast %46 : vector<1x64xf32> to vector<64xf32>
    %48 = vector.shape_cast %47 : vector<64xf32> to vector<1x1x64xf32>
    %49 = vector.broadcast %48 : vector<1x1x64xf32> to vector<8x8x64xf32>
    %50 = arith.mulf %45, %49 : vector<8x8x64xf32>
    %51 = arith.addf %44, %50 : vector<8x8x64xf32>
    %52 = vector.extract_strided_slice %2 {offsets = [2, 1, 0], sizes = [8, 8, 64], strides = [1, 1, 1]} : vector<10x10x64xf32> to vector<8x8x64xf32>
    %53 = vector.extract_strided_slice %3 {offsets = [7, 0], sizes = [1, 64], strides = [1, 1]} : vector<9x64xf32> to vector<1x64xf32>
    %54 = vector.shape_cast %53 : vector<1x64xf32> to vector<64xf32>
    %55 = vector.shape_cast %54 : vector<64xf32> to vector<1x1x64xf32>
    %56 = vector.broadcast %55 : vector<1x1x64xf32> to vector<8x8x64xf32>
    %57 = arith.mulf %52, %56 : vector<8x8x64xf32>
    %58 = arith.addf %51, %57 : vector<8x8x64xf32>
    %59 = vector.extract_strided_slice %2 {offsets = [2, 2, 0], sizes = [8, 8, 64], strides = [1, 1, 1]} : vector<10x10x64xf32> to vector<8x8x64xf32>
    %60 = vector.extract_strided_slice %3 {offsets = [8, 0], sizes = [1, 64], strides = [1, 1]} : vector<9x64xf32> to vector<1x64xf32>
    %61 = vector.shape_cast %60 : vector<1x64xf32> to vector<64xf32>
    %62 = vector.shape_cast %61 : vector<64xf32> to vector<1x1x64xf32>
    %63 = vector.broadcast %62 : vector<1x1x64xf32> to vector<8x8x64xf32>
    %64 = arith.mulf %59, %63 : vector<8x8x64xf32>
    %65 = arith.addf %58, %64 : vector<8x8x64xf32>
    %c0_5 = arith.constant 0 : index
    %c0_6 = arith.constant 0 : index
    %66 = vector.load %arg3[%c0_5, %c0_6] : memref<1x64xf32, #tpu.memory_space<vmem>>, vector<1x64xf32>
    %67 = vector.shape_cast %66 : vector<1x64xf32> to vector<1x1x64xf32>
    %68 = vector.broadcast %67 : vector<1x1x64xf32> to vector<8x8x64xf32>
    %69 = arith.addf %65, %68 : vector<8x8x64xf32>
    %c0_7 = arith.constant 0 : index
    %c0_8 = arith.constant 0 : index
    %c0_9 = arith.constant 0 : index
    %c0_10 = arith.constant 0 : index
    %70 = vector.load %arg4[%c0_7, %c0_8, %c0_9, %c0_10] : memref<1x8x8x64xf32, #tpu.memory_space<vmem>>, vector<1x8x8x64xf32>
    %71 = vector.shape_cast %70 : vector<1x8x8x64xf32> to vector<8x8x64xf32>
    %72 = vector.shape_cast %69 : vector<8x8x64xf32> to vector<1x8x8x64xf32>
    tpu.vector_store %arg4[%c0_7, %c0_8, %c0_9, %c0_10], %72 {strides = array<i32>} : memref<1x8x8x64xf32, #tpu.memory_space<vmem>>, vector<1x8x8x64xf32>,
    return
  }
  func.func @transform_0(%arg0: i32) -> (i32, i32, i32, i32) {
    %c0_i32 = arith.constant 0 : i32
    %c0_i32_0 = arith.constant 0 : i32
    %c0_i32_1 = arith.constant 0 : i32
    %c0_i32_2 = arith.constant 0 : i32
    return %arg0, %c0_i32, %c0_i32_0, %c0_i32_1 : i32, i32, i32, i32
  }
  func.func @transform_1(%arg0: i32) -> (i32, i32) {
    %c0_i32 = arith.constant 0 : i32
    %c0_i32_0 = arith.constant 0 : i32
    %c0_i32_1 = arith.constant 0 : i32
    return %c0_i32, %c0_i32_0 : i32, i32
  }
  func.func @transform_2(%arg0: i32) -> (i32, i32) {
    %c0_i32 = arith.constant 0 : i32
    %c0_i32_0 = arith.constant 0 : i32
    %c0_i32_1 = arith.constant 0 : i32
    return %c0_i32, %c0_i32_0 : i32, i32
  }
  func.func @transform_3(%arg0: i32) -> (i32, i32, i32, i32) {
    %c0_i32 = arith.constant 0 : i32
    %c0_i32_0 = arith.constant 0 : i32
    %c0_i32_1 = arith.constant 0 : i32
    %c0_i32_2 = arith.constant 0 : i32
    return %arg0, %c0_i32, %c0_i32_0, %c0_i32_1 : i32, i32, i32, i32
  }
}

module attributes {stable_mosaic.version = 11 : i64} {
  func.func @_pw_kernel(%arg0: i32, %arg1: i32, %arg2: memref<128x64xbf16, #tpu.memory_space<vmem>>, %arg3: memref<128x64xf32, #tpu.memory_space<vmem>>, %arg4: memref<64x128xbf16, #tpu.memory_space<vmem>>, %arg5: memref<1x128xf32, #tpu.memory_space<vmem>>, %arg6: memref<128x128xbf16, #tpu.memory_space<vmem>>, %arg7: memref<128x128xbf16, #tpu.memory_space<vmem>>) attributes {dimension_semantics = [#tpu.dimension_semantics<parallel>, #tpu.dimension_semantics<parallel>], iteration_bounds = array<i64: 1, 1>, scalar_prefetch = 0 : i64, scratch_operands = 0 : i64, tpu.core_type = #tpu.core_type<tc>, window_params = [{transform_indices = @transform_0, window_bounds = array<i64: 128, 64>}, {transform_indices = @transform_1, window_bounds = array<i64: 128, 64>}, {transform_indices = @transform_2, window_bounds = array<i64: 64, 128>}, {transform_indices = @transform_3, window_bounds = array<i64: 1, 128>}, {transform_indices = @transform_4, window_bounds = array<i64: 128, 128>}, {transform_indices = @transform_5, window_bounds = array<i64: 128, 128>}]} {
    %c0 = arith.constant 0 : index
    %c0_0 = arith.constant 0 : index
    %0 = vector.load %arg2[%c0, %c0_0] : memref<128x64xbf16, #tpu.memory_space<vmem>>, vector<128x64xbf16>
    %1 = arith.extf %0 : vector<128x64xbf16> to vector<128x64xf32>
    %c0_1 = arith.constant 0 : index
    %c0_2 = arith.constant 0 : index
    %2 = vector.load %arg3[%c0_1, %c0_2] : memref<128x64xf32, #tpu.memory_space<vmem>>, vector<128x64xf32>
    %3 = arith.addf %1, %2 : vector<128x64xf32>
    %4 = arith.truncf %3 : vector<128x64xf32> to vector<128x64xbf16>
    %c0_3 = arith.constant 0 : index
    %c0_4 = arith.constant 0 : index
    %5 = vector.load %arg4[%c0_3, %c0_4] : memref<64x128xbf16, #tpu.memory_space<vmem>>, vector<64x128xbf16>
    %cst = arith.constant dense<0.000000e+00> : vector<128x128xf32>
    %6 = tpu.matmul %4, %5, %cst {dimension_numbers = #tpu.dot_dimension_numbers<[1], [0], [0], [1], [0, 0, 1, 1], [], []>} : vector<128x64xbf16>, vector<64x128xbf16>, vector<128x128xf32> -> vector<128x128xf32>
    %c0_5 = arith.constant 0 : index
    %c0_6 = arith.constant 0 : index
    %7 = vector.load %arg5[%c0_5, %c0_6] : memref<1x128xf32, #tpu.memory_space<vmem>>, vector<1x128xf32>
    %8 = vector.broadcast %7 : vector<1x128xf32> to vector<128x128xf32>
    %9 = arith.addf %6, %8 : vector<128x128xf32>
    %c0_7 = arith.constant 0 : index
    %c0_8 = arith.constant 0 : index
    %10 = vector.load %arg6[%c0_7, %c0_8] : memref<128x128xbf16, #tpu.memory_space<vmem>>, vector<128x128xbf16>
    %11 = arith.extf %10 : vector<128x128xbf16> to vector<128x128xf32>
    %12 = arith.addf %9, %11 : vector<128x128xf32>
    %13 = arith.truncf %12 : vector<128x128xf32> to vector<128x128xbf16>
    %c0_9 = arith.constant 0 : index
    %c0_10 = arith.constant 0 : index
    %14 = vector.load %arg7[%c0_9, %c0_10] : memref<128x128xbf16, #tpu.memory_space<vmem>>, vector<128x128xbf16>
    tpu.vector_store %arg7[%c0_9, %c0_10], %13 {strides = array<i32>} : memref<128x128xbf16, #tpu.memory_space<vmem>>, vector<128x128xbf16>,
    return
  }
  func.func @transform_0(%arg0: i32, %arg1: i32) -> (i32, i32) {
    %c0_i32 = arith.constant 0 : i32
    %c0_i32_0 = arith.constant 0 : i32
    return %arg0, %c0_i32 : i32, i32
  }
  func.func @transform_1(%arg0: i32, %arg1: i32) -> (i32, i32) {
    %c0_i32 = arith.constant 0 : i32
    %c0_i32_0 = arith.constant 0 : i32
    return %arg0, %c0_i32 : i32, i32
  }
  func.func @transform_2(%arg0: i32, %arg1: i32) -> (i32, i32) {
    %c0_i32 = arith.constant 0 : i32
    %c0_i32_0 = arith.constant 0 : i32
    return %c0_i32, %arg1 : i32, i32
  }
  func.func @transform_3(%arg0: i32, %arg1: i32) -> (i32, i32) {
    %c0_i32 = arith.constant 0 : i32
    %c0_i32_0 = arith.constant 0 : i32
    return %c0_i32, %arg1 : i32, i32
  }
  func.func @transform_4(%arg0: i32, %arg1: i32) -> (i32, i32) {
    %c0_i32 = arith.constant 0 : i32
    return %arg0, %arg1 : i32, i32
  }
  func.func @transform_5(%arg0: i32, %arg1: i32) -> (i32, i32) {
    %c0_i32 = arith.constant 0 : i32
    return %arg0, %arg1 : i32, i32
  }
}

module attributes {stable_mosaic.version = 11 : i64} {
  func.func @_pw_kernel(%arg0: i32, %arg1: i32, %arg2: memref<128x128xbf16, #tpu.memory_space<vmem>>, %arg3: memref<128x128xbf16, #tpu.memory_space<vmem>>, %arg4: memref<1x128xf32, #tpu.memory_space<vmem>>, %arg5: memref<128x128xbf16, #tpu.memory_space<vmem>>) attributes {dimension_semantics = [#tpu.dimension_semantics<parallel>, #tpu.dimension_semantics<parallel>], iteration_bounds = array<i64: 1, 1>, scalar_prefetch = 0 : i64, scratch_operands = 0 : i64, tpu.core_type = #tpu.core_type<tc>, window_params = [{transform_indices = @transform_0, window_bounds = array<i64: 128, 128>}, {transform_indices = @transform_1, window_bounds = array<i64: 128, 128>}, {transform_indices = @transform_2, window_bounds = array<i64: 1, 128>}, {transform_indices = @transform_3, window_bounds = array<i64: 128, 128>}]} {
    %c0 = arith.constant 0 : index
    %c0_0 = arith.constant 0 : index
    %0 = vector.load %arg2[%c0, %c0_0] : memref<128x128xbf16, #tpu.memory_space<vmem>>, vector<128x128xbf16>
    %c0_1 = arith.constant 0 : index
    %c0_2 = arith.constant 0 : index
    %1 = vector.load %arg3[%c0_1, %c0_2] : memref<128x128xbf16, #tpu.memory_space<vmem>>, vector<128x128xbf16>
    %cst = arith.constant dense<0.000000e+00> : vector<128x128xf32>
    %2 = tpu.matmul %0, %1, %cst {dimension_numbers = #tpu.dot_dimension_numbers<[1], [0], [0], [1], [0, 0, 1, 1], [], []>} : vector<128x128xbf16>, vector<128x128xbf16>, vector<128x128xf32> -> vector<128x128xf32>
    %c0_3 = arith.constant 0 : index
    %c0_4 = arith.constant 0 : index
    %3 = vector.load %arg4[%c0_3, %c0_4] : memref<1x128xf32, #tpu.memory_space<vmem>>, vector<1x128xf32>
    %4 = vector.broadcast %3 : vector<1x128xf32> to vector<128x128xf32>
    %5 = arith.addf %2, %4 : vector<128x128xf32>
    %cst_5 = arith.constant 0.000000e+00 : f32
    %6 = vector.broadcast %cst_5 : f32 to vector<128x128xf32>
    %7 = arith.subf %6, %5 : vector<128x128xf32>
    %8 = math.exp %7 : vector<128x128xf32>
    %cst_6 = arith.constant 1.000000e+00 : f32
    %9 = vector.broadcast %cst_6 : f32 to vector<128x128xf32>
    %10 = arith.addf %9, %8 : vector<128x128xf32>
    %11 = tpu.reciprocal %10 {approx = true} : vector<128x128xf32> -> vector<128x128xf32>
    %12 = arith.mulf %5, %11 : vector<128x128xf32>
    %13 = arith.truncf %12 : vector<128x128xf32> to vector<128x128xbf16>
    %c0_7 = arith.constant 0 : index
    %c0_8 = arith.constant 0 : index
    %14 = vector.load %arg5[%c0_7, %c0_8] : memref<128x128xbf16, #tpu.memory_space<vmem>>, vector<128x128xbf16>
    tpu.vector_store %arg5[%c0_7, %c0_8], %13 {strides = array<i32>} : memref<128x128xbf16, #tpu.memory_space<vmem>>, vector<128x128xbf16>,
    return
  }
  func.func @transform_0(%arg0: i32, %arg1: i32) -> (i32, i32) {
    %c0_i32 = arith.constant 0 : i32
    %c0_i32_0 = arith.constant 0 : i32
    return %arg0, %c0_i32 : i32, i32
  }
  func.func @transform_1(%arg0: i32, %arg1: i32) -> (i32, i32) {
    %c0_i32 = arith.constant 0 : i32
    %c0_i32_0 = arith.constant 0 : i32
    return %c0_i32, %arg1 : i32, i32
  }
  func.func @transform_2(%arg0: i32, %arg1: i32) -> (i32, i32) {
    %c0_i32 = arith.constant 0 : i32
    %c0_i32_0 = arith.constant 0 : i32
    return %c0_i32, %arg1 : i32, i32
  }
  func.func @transform_3(%arg0: i32, %arg1: i32) -> (i32, i32) {
    %c0_i32 = arith.constant 0 : i32
    return %arg0, %arg1 : i32, i32
  }
}

module attributes {stable_mosaic.version = 11 : i64} {
  func.func @_pw_kernel(%arg0: i32, %arg1: i32, %arg2: memref<128x128xbf16, #tpu.memory_space<vmem>>, %arg3: memref<128x128xbf16, #tpu.memory_space<vmem>>, %arg4: memref<1x128xf32, #tpu.memory_space<vmem>>, %arg5: memref<128x128xbf16, #tpu.memory_space<vmem>>, %arg6: memref<128x128xbf16, #tpu.memory_space<vmem>>) attributes {dimension_semantics = [#tpu.dimension_semantics<parallel>, #tpu.dimension_semantics<parallel>], iteration_bounds = array<i64: 1, 1>, scalar_prefetch = 0 : i64, scratch_operands = 0 : i64, tpu.core_type = #tpu.core_type<tc>, window_params = [{transform_indices = @transform_0, window_bounds = array<i64: 128, 128>}, {transform_indices = @transform_1, window_bounds = array<i64: 128, 128>}, {transform_indices = @transform_2, window_bounds = array<i64: 1, 128>}, {transform_indices = @transform_3, window_bounds = array<i64: 128, 128>}, {transform_indices = @transform_4, window_bounds = array<i64: 128, 128>}]} {
    %c0 = arith.constant 0 : index
    %c0_0 = arith.constant 0 : index
    %0 = vector.load %arg2[%c0, %c0_0] : memref<128x128xbf16, #tpu.memory_space<vmem>>, vector<128x128xbf16>
    %c0_1 = arith.constant 0 : index
    %c0_2 = arith.constant 0 : index
    %1 = vector.load %arg3[%c0_1, %c0_2] : memref<128x128xbf16, #tpu.memory_space<vmem>>, vector<128x128xbf16>
    %cst = arith.constant dense<0.000000e+00> : vector<128x128xf32>
    %2 = tpu.matmul %0, %1, %cst {dimension_numbers = #tpu.dot_dimension_numbers<[1], [0], [0], [1], [0, 0, 1, 1], [], []>} : vector<128x128xbf16>, vector<128x128xbf16>, vector<128x128xf32> -> vector<128x128xf32>
    %c0_3 = arith.constant 0 : index
    %c0_4 = arith.constant 0 : index
    %3 = vector.load %arg4[%c0_3, %c0_4] : memref<1x128xf32, #tpu.memory_space<vmem>>, vector<1x128xf32>
    %4 = vector.broadcast %3 : vector<1x128xf32> to vector<128x128xf32>
    %5 = arith.addf %2, %4 : vector<128x128xf32>
    %c0_5 = arith.constant 0 : index
    %c0_6 = arith.constant 0 : index
    %6 = vector.load %arg5[%c0_5, %c0_6] : memref<128x128xbf16, #tpu.memory_space<vmem>>, vector<128x128xbf16>
    %7 = arith.extf %6 : vector<128x128xbf16> to vector<128x128xf32>
    %8 = arith.addf %5, %7 : vector<128x128xf32>
    %9 = arith.truncf %8 : vector<128x128xf32> to vector<128x128xbf16>
    %c0_7 = arith.constant 0 : index
    %c0_8 = arith.constant 0 : index
    %10 = vector.load %arg6[%c0_7, %c0_8] : memref<128x128xbf16, #tpu.memory_space<vmem>>, vector<128x128xbf16>
    tpu.vector_store %arg6[%c0_7, %c0_8], %9 {strides = array<i32>} : memref<128x128xbf16, #tpu.memory_space<vmem>>, vector<128x128xbf16>,
    return
  }
  func.func @transform_0(%arg0: i32, %arg1: i32) -> (i32, i32) {
    %c0_i32 = arith.constant 0 : i32
    %c0_i32_0 = arith.constant 0 : i32
    return %arg0, %c0_i32 : i32, i32
  }
  func.func @transform_1(%arg0: i32, %arg1: i32) -> (i32, i32) {
    %c0_i32 = arith.constant 0 : i32
    %c0_i32_0 = arith.constant 0 : i32
    return %c0_i32, %arg1 : i32, i32
  }
  func.func @transform_2(%arg0: i32, %arg1: i32) -> (i32, i32) {
    %c0_i32 = arith.constant 0 : i32
    %c0_i32_0 = arith.constant 0 : i32
    return %c0_i32, %arg1 : i32, i32
  }
  func.func @transform_3(%arg0: i32, %arg1: i32) -> (i32, i32) {
    %c0_i32 = arith.constant 0 : i32
    return %arg0, %arg1 : i32, i32
  }
  func.func @transform_4(%arg0: i32, %arg1: i32) -> (i32, i32) {
    %c0_i32 = arith.constant 0 : i32
    return %arg0, %arg1 : i32, i32
  }
}

module attributes {stable_mosaic.version = 11 : i64} {
  func.func @_pw_kernel(%arg0: i32, %arg1: i32, %arg2: memref<128x128xbf16, #tpu.memory_space<vmem>>, %arg3: memref<128x128xbf16, #tpu.memory_space<vmem>>, %arg4: memref<128x128xbf16, #tpu.memory_space<vmem>>, %arg5: memref<128x128xbf16, #tpu.memory_space<vmem>>, %arg6: memref<1x128xf32, #tpu.memory_space<vmem>>, %arg7: memref<128x128xf32, #tpu.memory_space<vmem>>) attributes {dimension_semantics = [#tpu.dimension_semantics<parallel>, #tpu.dimension_semantics<parallel>], iteration_bounds = array<i64: 1, 1>, scalar_prefetch = 0 : i64, scratch_operands = 0 : i64, tpu.core_type = #tpu.core_type<tc>, window_params = [{transform_indices = @transform_0, window_bounds = array<i64: 128, 128>}, {transform_indices = @transform_1, window_bounds = array<i64: 128, 128>}, {transform_indices = @transform_2, window_bounds = array<i64: 128, 128>}, {transform_indices = @transform_3, window_bounds = array<i64: 128, 128>}, {transform_indices = @transform_4, window_bounds = array<i64: 1, 128>}, {transform_indices = @transform_5, window_bounds = array<i64: 128, 128>}]} {
    %c0 = arith.constant 0 : index
    %c0_0 = arith.constant 0 : index
    %0 = vector.load %arg2[%c0, %c0_0] : memref<128x128xbf16, #tpu.memory_space<vmem>>, vector<128x128xbf16>
    %c0_1 = arith.constant 0 : index
    %c0_2 = arith.constant 0 : index
    %1 = vector.load %arg4[%c0_1, %c0_2] : memref<128x128xbf16, #tpu.memory_space<vmem>>, vector<128x128xbf16>
    %cst = arith.constant dense<0.000000e+00> : vector<128x128xf32>
    %2 = tpu.matmul %0, %1, %cst {dimension_numbers = #tpu.dot_dimension_numbers<[1], [0], [0], [1], [0, 0, 1, 1], [], []>} : vector<128x128xbf16>, vector<128x128xbf16>, vector<128x128xf32> -> vector<128x128xf32>
    %c0_3 = arith.constant 0 : index
    %c0_4 = arith.constant 0 : index
    %3 = vector.load %arg3[%c0_3, %c0_4] : memref<128x128xbf16, #tpu.memory_space<vmem>>, vector<128x128xbf16>
    %c0_5 = arith.constant 0 : index
    %c0_6 = arith.constant 0 : index
    %4 = vector.load %arg5[%c0_5, %c0_6] : memref<128x128xbf16, #tpu.memory_space<vmem>>, vector<128x128xbf16>
    %cst_7 = arith.constant dense<0.000000e+00> : vector<128x128xf32>
    %5 = tpu.matmul %3, %4, %cst_7 {dimension_numbers = #tpu.dot_dimension_numbers<[1], [0], [0], [1], [0, 0, 1, 1], [], []>} : vector<128x128xbf16>, vector<128x128xbf16>, vector<128x128xf32> -> vector<128x128xf32>
    %6 = arith.addf %2, %5 : vector<128x128xf32>
    %c0_8 = arith.constant 0 : index
    %c0_9 = arith.constant 0 : index
    %7 = vector.load %arg6[%c0_8, %c0_9] : memref<1x128xf32, #tpu.memory_space<vmem>>, vector<1x128xf32>
    %8 = vector.broadcast %7 : vector<1x128xf32> to vector<128x128xf32>
    %9 = arith.addf %6, %8 : vector<128x128xf32>
    %cst_10 = arith.constant 0.000000e+00 : f32
    %10 = vector.broadcast %cst_10 : f32 to vector<128x128xf32>
    %11 = arith.subf %10, %9 : vector<128x128xf32>
    %12 = math.exp %11 : vector<128x128xf32>
    %cst_11 = arith.constant 1.000000e+00 : f32
    %13 = vector.broadcast %cst_11 : f32 to vector<128x128xf32>
    %14 = arith.addf %13, %12 : vector<128x128xf32>
    %15 = tpu.reciprocal %14 {approx = true} : vector<128x128xf32> -> vector<128x128xf32>
    %16 = arith.mulf %9, %15 : vector<128x128xf32>
    %c0_12 = arith.constant 0 : index
    %c0_13 = arith.constant 0 : index
    %17 = vector.load %arg7[%c0_12, %c0_13] : memref<128x128xf32, #tpu.memory_space<vmem>>, vector<128x128xf32>
    tpu.vector_store %arg7[%c0_12, %c0_13], %16 {strides = array<i32>} : memref<128x128xf32, #tpu.memory_space<vmem>>, vector<128x128xf32>,
    return
  }
  func.func @transform_0(%arg0: i32, %arg1: i32) -> (i32, i32) {
    %c0_i32 = arith.constant 0 : i32
    %c0_i32_0 = arith.constant 0 : i32
    return %arg0, %c0_i32 : i32, i32
  }
  func.func @transform_1(%arg0: i32, %arg1: i32) -> (i32, i32) {
    %c0_i32 = arith.constant 0 : i32
    %c0_i32_0 = arith.constant 0 : i32
    return %arg0, %c0_i32 : i32, i32
  }
  func.func @transform_2(%arg0: i32, %arg1: i32) -> (i32, i32) {
    %c0_i32 = arith.constant 0 : i32
    %c0_i32_0 = arith.constant 0 : i32
    return %c0_i32, %arg1 : i32, i32
  }
  func.func @transform_3(%arg0: i32, %arg1: i32) -> (i32, i32) {
    %c0_i32 = arith.constant 0 : i32
    %c0_i32_0 = arith.constant 0 : i32
    return %c0_i32, %arg1 : i32, i32
  }
  func.func @transform_4(%arg0: i32, %arg1: i32) -> (i32, i32) {
    %c0_i32 = arith.constant 0 : i32
    %c0_i32_0 = arith.constant 0 : i32
    return %c0_i32, %arg1 : i32, i32
  }
  func.func @transform_5(%arg0: i32, %arg1: i32) -> (i32, i32) {
    %c0_i32 = arith.constant 0 : i32
    return %arg0, %arg1 : i32, i32
  }
}

</mosaic_0001>

<bundles_post_ra>
// kernel: psa_forward.8
= control target key start
LH: loop header
LB: loop body
LE: loop exit
PB: predicated region body
PF: predicated region fallthrough
CT: control target
= control target key end

     0   :  { %8 = vsyncpa [#allocation3], 0  ;;  %s1157_s0 = inlined_call_operand.hbm [shape: f32[128,128], index: 0, kind: input, shape index: {}]   ;;  %s1158_s1 = inlined_call_operand.hbm [shape: bf16[128,256], index: 1, kind: input, shape index: {}]   ;;  %s1159_s2 = inlined_call_operand.vmem [shape: f32[1,256], index: 2, kind: input, shape index: {}]   ;;  %s1160_s3 = inlined_call_operand.vmem [shape: bf16[128,256], index: 3, kind: output, shape index: {}]  }
   0x1   :  { %9 = vsyncpa [#allocation5], 0  ;;  %s867_s12 = smov [#allocation2]   ;;  %s819_s16 = scalar_lea.hbm %s1157_s0, 2048 }
   0x2   :  { %s15_s13 = sshll.u32 %s867_s12, 4  ;;  %p820_p0 = scmp.ne.s32.totalorder %s1157_s0, %s819_s16  ;;  %s16_s13 = int_to_ptr.vmem [resolvable:$true] %s15_s13 }
   0x3   :  { %p823_p1 = scmp.lt.u32.totalorder %s819_s16, %s1157_s0 }
   0x5   :  { %p825_p2 = pnand %p823_p1, %p820_p0 }
   0x7   :  { %828 = shalt.err (!%p825_p2)
}
   0x8   :  { %s829_s21 = scalar_lea.vmem %s16_s13, 2048  ;;  %p834_p4 = scmp.lt.s32.totalorder %s16_s13, %s16_s13 }
   0x9   :  { %p830_p3 = scmp.ne.s32.totalorder %s16_s13, %s829_s21  ;;  %p835_p5 = scmp.lt.s32.totalorder %s829_s21, %s829_s21 }
   0xb   :  { %p836_p6 = por %p835_p5, %p834_p4 }
   0xd   :  { %p837_p7 = pnand %p836_p6, %p830_p3 }
   0xf   :  { %840 = shalt.err (!%p837_p7)
}
  0x10   :  { %s868_s22 = smov 128   ;;  %s869_s23 = smov 8  }
  0x11   :  { %21 = dma.hbm_to_vmem [thread:$0]  %s1157_s0, 2048, %s16_s13, [#allocation3], %s868_s22, %s868_s22, %s869_s23  }
  0x12   :  { %s870_s26 = smov [#allocation4]   ;;  %s841_s30 = scalar_lea.hbm %s1158_s1, 2048 }
  0x13   :  { %s27_s27 = sshll.u32 %s870_s26, 4  ;;  %p842_p8 = scmp.ne.s32.totalorder %s1158_s1, %s841_s30  ;;  %s28_s27 = int_to_ptr.vmem [resolvable:$true] %s27_s27 }
  0x14   :  { %p845_p9 = scmp.lt.u32.totalorder %s841_s30, %s1158_s1 }
  0x16   :  { %p847_p10 = pnand %p845_p9, %p842_p8 }
  0x18   :  { %850 = shalt.err (!%p847_p10)
}
  0x19   :  { %s851_s8 = scalar_lea.vmem %s28_s27, 2048  ;;  %p856_p12 = scmp.lt.s32.totalorder %s28_s27, %s28_s27 }
  0x1a   :  { %p852_p11 = scmp.ne.s32.totalorder %s28_s27, %s851_s8  ;;  %p857_p13 = scmp.lt.s32.totalorder %s851_s8, %s851_s8 }
  0x1c   :  { %p858_p0 = por %p857_p13, %p856_p12 }
  0x1e   :  { %p859_p1 = pnand %p858_p0, %p852_p11 }
  0x20   :  { %862 = shalt.err (!%p859_p1)
}
  0x21   :  { %33 = dma.hbm_to_vmem [thread:$0]  %s1158_s1, 2048, %s28_s27, [#allocation5], %s868_s22, %s868_s22, %s869_s23  }
  0x22   :  { %863 = dma.done.wait [#allocation3], 2048  }
  0x23   :  { %864 = vsyncadd [#allocation3], 4294965248 }
  0x24   :  { %865 = dma.done.wait [#allocation5], 2048  }
  0x25   :  { %866 = vsyncadd [#allocation5], 4294965248  ;;  %v871_v0 = vmov 0   ;;  %v667_v1 = vld [vmem:[#allocation4 + $0x4] ss:$8 sps:$4 sm:$0xff]   ;;  %v45_v23 = vld [vmem:[#allocation2 + $0x10] sm:$0xff]  ;;  %v85_v41 = vlaneseq }
  0x26   :  { %207 = vmatprep.mubr.bf16.mxu0 %v871_v0  ;;  %247 = vmatprep.mubr.bf16.mxu1 %v871_v0  ;;  %v669_v2 = vld [vmem:[#allocation4] ss:$8 sps:$4 sm:$0xff]   ;;  %v670_v3 = vld [vmem:[#allocation4 + $0x14] ss:$8 sps:$4 sm:$0xff]   ;;  %v672_v4 = vld [vmem:[#allocation4 + $0x10] ss:$8 sps:$4 sm:$0xff]  }
  0x27   :  { %175 = vmatprep.subr.bf16.mxu0 %v667_v1  ;;  %646 = vmatprep.subr.bf16.mxu1 %v667_v1  ;;  %v673_v5 = vld [vmem:[#allocation4 + $0x24] ss:$8 sps:$4 sm:$0xff]   ;;  %v675_v6 = vld [vmem:[#allocation4 + $0x20] ss:$8 sps:$4 sm:$0xff]   ;;  %v676_v7 = vld [vmem:[#allocation4 + $0x34] ss:$8 sps:$4 sm:$0xff]  }
  0x28   :  { %176 = vmatpush1.bf16.msra.mxu0 %v669_v2  ;;  %654 = vmatpush1.bf16.msra.mxu1 %v669_v2  ;;  %v678_v8 = vld [vmem:[#allocation4 + $0x30] ss:$8 sps:$4 sm:$0xff]   ;;  %v679_v9 = vld [vmem:[#allocation4 + $0x44] ss:$8 sps:$4 sm:$0xff]   ;;  %v681_v10 = vld [vmem:[#allocation4 + $0x40] ss:$8 sps:$4 sm:$0xff]  }
  0x29   :  { %177 = vmatprep.subr.bf16.mxu0 %v670_v3  ;;  %647 = vmatprep.subr.bf16.mxu1 %v670_v3  ;;  %v682_v11 = vld [vmem:[#allocation4 + $0x54] ss:$8 sps:$4 sm:$0xff]   ;;  %v684_v12 = vld [vmem:[#allocation4 + $0x50] ss:$8 sps:$4 sm:$0xff]   ;;  %v685_v13 = vld [vmem:[#allocation4 + $0x64] ss:$8 sps:$4 sm:$0xff]  }
  0x2a   :  { %v687_v14 = vld [vmem:[#allocation4 + $0x60] ss:$8 sps:$4 sm:$0xff]   ;;  %v688_v15 = vld [vmem:[#allocation4 + $0x74] ss:$8 sps:$4 sm:$0xff]   ;;  %v690_v16 = vld [vmem:[#allocation4 + $0x70] ss:$8 sps:$4 sm:$0xff]  }
  0x2b   :  { %v43_v17 = vld [vmem:[#allocation2] sm:$0xff]  ;;  %v44_v18 = vld [vmem:[#allocation2 + $0x8] sm:$0xff]  ;;  %v46_v24 = vld [vmem:[#allocation2 + $0x18] sm:$0xff]  ;;  %v86_v42 = vshrl.u32 %v85_v41, 7 }
  0x2c   :  { %178 = vmatpush1.bf16.msra.mxu0 %v672_v4  ;;  %655 = vmatpush1.bf16.msra.mxu1 %v672_v4  ;;  %v51_v19 = vld [vmem:[#allocation2 + $0x40] sm:$0xff]  ;;  %v52_v20 = vld [vmem:[#allocation2 + $0x48] sm:$0xff]  ;;  %v59_v21 = vpack.c.bf16 %v44_v18, %v43_v17  ;;  %v53_v25 = vld [vmem:[#allocation2 + $0x50] sm:$0xff]  ;;  %v60_v27 = vpack.c.bf16 %v46_v24, %v45_v23 }
  0x2d   :  { %179 = vmatprep.subr.bf16.mxu0 %v673_v5  ;;  %648 = vmatprep.subr.bf16.mxu1 %v673_v5  ;;  %v63_v22 = vpack.c.bf16 %v52_v20, %v51_v19  ;;  %v54_v26 = vld [vmem:[#allocation2 + $0x58] sm:$0xff]  ;;  %v47_v29 = vld [vmem:[#allocation2 + $0x20] sm:$0xff]  ;;  %v48_v30 = vld [vmem:[#allocation2 + $0x28] sm:$0xff]  ;;  %v87_v43 = vsub.s32 0, %v86_v42  ;;  %v91_v45 = vsub.s32 1, %v86_v42 }
  0x2e   :  { %v64_v28 = vpack.c.bf16 %v54_v26, %v53_v25  ;;  %v55_v31 = vld [vmem:[#allocation2 + $0x60] sm:$0xff]  ;;  %v56_v32 = vld [vmem:[#allocation2 + $0x68] sm:$0xff]  ;;  %v61_v33 = vpack.c.bf16 %v48_v30, %v47_v29  ;;  %v49_v35 = vld [vmem:[#allocation2 + $0x30] sm:$0xff] }
  0x2f   :  { %v65_v34 = vpack.c.bf16 %v56_v32, %v55_v31  ;;  %v50_v36 = vld [vmem:[#allocation2 + $0x38] sm:$0xff]  ;;  %v57_v37 = vld [vmem:[#allocation2 + $0x70] sm:$0xff]  ;;  %v83_v44 = vld [vmem:[%s1159_s2] sm:$0x3] }
  0x30   :  { %180 = vmatpush1.bf16.msra.mxu0 %v675_v6  ;;  %656 = vmatpush1.bf16.msra.mxu1 %v675_v6  ;;  %v58_v38 = vld [vmem:[#allocation2 + $0x78] sm:$0xff]  ;;  %v62_v39 = vpack.c.bf16 %v50_v36, %v49_v35  ;;  %v927_v46 = vrot.slane %v83_v44, %v87_v43  ;;  %v929_v47 = vrot.slane %v83_v44, %v91_v45 }
  0x31   :  { %181 = vmatprep.subr.bf16.mxu0 %v676_v7  ;;  %649 = vmatprep.subr.bf16.mxu1 %v676_v7  ;;  %v66_v40 = vpack.c.bf16 %v58_v38, %v57_v37 }
  0x34   :  { %182 = vmatpush1.bf16.msra.mxu0 %v678_v8  ;;  %657 = vmatpush1.bf16.msra.mxu1 %v678_v8 }
  0x35   :  { %183 = vmatprep.subr.bf16.mxu0 %v679_v9  ;;  %650 = vmatprep.subr.bf16.mxu1 %v679_v9 }
  0x38   :  { %184 = vmatpush1.bf16.msra.mxu0 %v681_v10  ;;  %658 = vmatpush1.bf16.msra.mxu1 %v681_v10 }
  0x39   :  { %185 = vmatprep.subr.bf16.mxu0 %v682_v11  ;;  %651 = vmatprep.subr.bf16.mxu1 %v682_v11 }
  0x3c   :  { %186 = vmatpush1.bf16.msra.mxu0 %v684_v12  ;;  %659 = vmatpush1.bf16.msra.mxu1 %v684_v12 }
  0x3d   :  { %187 = vmatprep.subr.bf16.mxu0 %v685_v13  ;;  %652 = vmatprep.subr.bf16.mxu1 %v685_v13 }
  0x40   :  { %188 = vmatpush1.bf16.msra.mxu0 %v687_v14  ;;  %660 = vmatpush1.bf16.msra.mxu1 %v687_v14 }
  0x41   :  { %189 = vmatprep.subr.bf16.mxu0 %v688_v15  ;;  %653 = vmatprep.subr.bf16.mxu1 %v688_v15 }
  0x44   :  { %190 = vmatpush1.bf16.msra.mxu0 %v690_v16  ;;  %661 = vmatpush1.bf16.msra.mxu1 %v690_v16 }
  0x47   :  { %208 = vmatmul.mubr.bf16.vlgmr.msra.gmra.mrb[0].mxu0 %v59_v21  ;;  %248 = vmatmul.mubr.bf16.vlgmr.msra.gmra.mrb[0].mxu1 %v63_v22 }
  0x48   :  { %217 = vmatprep.mubr.bf16.mxu0 %v871_v0  ;;  %257 = vmatprep.mubr.bf16.mxu1 %v871_v0 }
  0x4f   :  { %218 = vmatmul.mubr.bf16.gmra.mrb[4].mxu0 %v60_v27  ;;  %258 = vmatmul.mubr.bf16.gmra.mrb[4].mxu1 %v64_v28 }
  0x50   :  { %227 = vmatprep.mubr.bf16.mxu0 %v871_v0  ;;  %267 = vmatprep.mubr.bf16.mxu1 %v871_v0 }
  0x57   :  { %228 = vmatmul.mubr.bf16.gmra.mrb[8].mxu0 %v61_v33  ;;  %268 = vmatmul.mubr.bf16.gmra.mrb[8].mxu1 %v65_v34 }
  0x58   :  { %237 = vmatprep.mubr.bf16.mxu0 %v871_v0  ;;  %277 = vmatprep.mubr.bf16.mxu1 %v871_v0 }
  0x5f   :  { %238 = vmatmul.mubr.bf16.gmra.mrb[12].mxu0 %v62_v39  ;;  %278 = vmatmul.mubr.bf16.gmra.mrb[12].mxu1 %v66_v40 }
 0x11a   :  { %v209_v48 = vpop.f32.mrb[0].mxu0  ;;  %v249_v49 = vpop.f32.mrb[0].mxu1 }
 0x11b   :  { %v932_v50 = vadd.f32 %v209_v48, %v927_v46  ;;  %v935_v51 = vadd.f32 %v249_v49, %v927_v46  ;;  %v211_v52 = vpop.f32.mrb[1].mxu0  ;;  %v251_v53 = vpop.f32.mrb[1].mxu1 }
 0x11c   :  { %v938_v54 = vadd.f32 %v211_v52, %v929_v47  ;;  %v941_v55 = vadd.f32 %v251_v53, %v929_v47  ;;  %v213_v56 = vpop.f32.mrb[2].mxu0  ;;  %v253_v57 = vpop.f32.mrb[2].mxu1 }
 0x11d   :  { %v288_v58 = vsub.f32 0.0, %v932_v50  ;;  %v304_v59 = vsub.f32 0.0, %v935_v51  ;;  %v946_v60 = vadd.f32 %v213_v56, %v927_v46  ;;  %v949_v61 = vadd.f32 %v253_v57, %v927_v46  ;;  %v215_v62 = vpop.f32.mrb[3].mxu0  ;;  %v255_v63 = vpop.f32.mrb[3].mxu1 }
 0x11e   :  { %v289_v0 = vsub.f32 0.0, %v938_v54  ;;  %v305_v1 = vsub.f32 0.0, %v941_v55  ;;  %v954_v2 = vadd.f32 %v215_v62, %v929_v47  ;;  %v957_v3 = vadd.f32 %v255_v63, %v929_v47 }
 0x11f   :  { %v320_v4 = vmul.f32 1.442695, %v288_v58  ;;  %v352_v5 = vmul.f32 1.442695, %v304_v59  ;;  %v290_v6 = vsub.f32 0.0, %v946_v60  ;;  %v306_v7 = vsub.f32 0.0, %v949_v61 }
 0x120   :  { %v322_v8 = vmul.f32 1.442695, %v289_v0  ;;  %v354_v9 = vmul.f32 1.442695, %v305_v1  ;;  %v291_v10 = vsub.f32 0.0, %v954_v2  ;;  %v307_v11 = vsub.f32 0.0, %v957_v3 }
 0x121   :  { %691 = vpow2.f32 %v320_v4  ;;  %v324_v12 = vmul.f32 1.442695, %v290_v6  ;;  %v356_v13 = vmul.f32 1.442695, %v306_v7 }
 0x122   :  { %693 = vpow2.f32 %v352_v5  ;;  %v219_v14 = vpop.f32.mrb[4].mxu0  ;;  %v259_v15 = vpop.f32.mrb[4].mxu1  ;;  %v326_v16 = vmul.f32 1.442695, %v291_v10  ;;  %v358_v21 = vmul.f32 1.442695, %v307_v11 }
 0x123   :  { %695 = vpow2.f32 %v322_v8  ;;  %v964_v17 = vadd.f32 %v219_v14, %v927_v46  ;;  %v967_v18 = vadd.f32 %v259_v15, %v927_v46  ;;  %v221_v19 = vpop.f32.mrb[5].mxu0  ;;  %v261_v20 = vpop.f32.mrb[5].mxu1 }
 0x124   :  { %697 = vpow2.f32 %v354_v9  ;;  %v970_v22 = vadd.f32 %v221_v19, %v929_v47  ;;  %v973_v23 = vadd.f32 %v261_v20, %v929_v47  ;;  %v223_v24 = vpop.f32.mrb[6].mxu0  ;;  %v263_v25 = vpop.f32.mrb[6].mxu1 }
 0x125   :  { %699 = vpow2.f32 %v324_v12  ;;  %v292_v26 = vsub.f32 0.0, %v964_v17  ;;  %v308_v27 = vsub.f32 0.0, %v967_v18  ;;  %v978_v28 = vadd.f32 %v223_v24, %v927_v46  ;;  %v225_v29 = vpop.f32.mrb[7].mxu0  ;;  %v265_v30 = vpop.f32.mrb[7].mxu1 }
 0x126   :  { %701 = vpow2.f32 %v356_v13  ;;  %v293_v31 = vsub.f32 0.0, %v970_v22  ;;  %v309_v32 = vsub.f32 0.0, %v973_v23  ;;  %v984_v42 = vadd.f32 %v263_v25, %v927_v46 }
 0x127   :  { %703 = vpow2.f32 %v326_v16  ;;  %v328_v33 = vmul.f32 1.442695, %v292_v26  ;;  %v360_v34 = vmul.f32 1.442695, %v308_v27  ;;  %v294_v35 = vsub.f32 0.0, %v978_v28 }
 0x128   :  { %705 = vpow2.f32 %v358_v21  ;;  %v330_v36 = vmul.f32 1.442695, %v293_v31  ;;  %v362_v37 = vmul.f32 1.442695, %v309_v32  ;;  %v987_v49 = vadd.f32 %v225_v29, %v929_v47 }
 0x129   :  { %707 = vpow2.f32 %v328_v33  ;;  %v332_v38 = vmul.f32 1.442695, %v294_v35  ;;  %v990_v58 = vadd.f32 %v265_v30, %v929_v47  ;;  %v310_v6 = vsub.f32 0.0, %v984_v42 }
 0x12a   :  { %709 = vpow2.f32 %v360_v34  ;;  %v229_v39 = vpop.f32.mrb[8].mxu0  ;;  %v269_v40 = vpop.f32.mrb[8].mxu1  ;;  %v295_v10 = vsub.f32 0.0, %v987_v49 }
 0x12b   :  { %v692_v41 = vpop.eup %691  ;;  %711 = vpow2.f32 %v330_v36  ;;  %v231_v43 = vpop.f32.mrb[9].mxu0  ;;  %v993_v0 = vadd.f32 %v229_v39, %v927_v46  ;;  %v997_v7 = vadd.f32 %v269_v40, %v927_v46  ;;  %v311_v13 = vsub.f32 0.0, %v990_v58 }
 0x12c   :  { %v271_v44 = vpop.f32.mrb[9].mxu1  ;;  %v694_v45 = vpop.eup %693  ;;  %v384_v48 = vadd.f32 1.0, %v692_v41  ;;  %713 = vpow2.f32 %v362_v37  ;;  %v1002_v14 = vadd.f32 %v231_v43, %v929_v47  ;;  %v364_v27 = vmul.f32 1.442695, %v310_v6 }
 0x12d   :  { %v233_v52 = vpop.f32.mrb[10].mxu0  ;;  %v273_v53 = vpop.f32.mrb[10].mxu1  ;;  %v400_v57 = vadd.f32 1.0, %v694_v45  ;;  %715 = vpow2.f32 %v332_v38  ;;  %v296_v19 = vsub.f32 0.0, %v993_v0  ;;  %v1006_v20 = vadd.f32 %v271_v44, %v929_v47 }
 0x12e   :  { %v696_v56 = vpop.eup %695  ;;  %v235_v59 = vpop.f32.mrb[11].mxu0  ;;  %717 = vrcp.f32 %v384_v48  ;;  %v312_v29 = vsub.f32 0.0, %v997_v7  ;;  %v334_v34 = vmul.f32 1.442695, %v295_v10  ;;  %v1014_v35 = vadd.f32 %v233_v52, %v927_v46 }
 0x12f   :  { %v698_v62 = vpop.eup %697  ;;  %v385_v63 = vadd.f32 1.0, %v696_v56  ;;  %v275_v1 = vpop.f32.mrb[11].mxu1  ;;  %719 = vrcp.f32 %v400_v57  ;;  %v366_v40 = vmul.f32 1.442695, %v311_v13  ;;  %v297_v41 = vsub.f32 0.0, %v1002_v14 }
 0x130   :  { %v700_v4 = vpop.eup %699  ;;  %v401_v5 = vadd.f32 1.0, %v698_v62  ;;  %v336_v56 = vmul.f32 1.442695, %v296_v19  ;;  %v313_v52 = vsub.f32 0.0, %v1006_v20  ;;  %v1035_v13 = vadd.f32 %v275_v1, %v929_v47 }
 0x131   :  { %v702_v8 = vpop.eup %701  ;;  %721 = vrcp.f32 %v385_v63  ;;  %v386_v9 = vadd.f32 1.0, %v700_v4  ;;  %v368_v63 = vmul.f32 1.442695, %v312_v29  ;;  %v1027_v4 = vadd.f32 %v273_v53, %v927_v46 }
 0x132   :  { %v704_v11 = vpop.eup %703  ;;  %723 = vrcp.f32 %v401_v5  ;;  %v402_v12 = vadd.f32 1.0, %v702_v8  ;;  %v239_v21 = vpop.f32.mrb[12].mxu0  ;;  %v298_v8 = vsub.f32 0.0, %v1014_v35 }
 0x133   :  { %v706_v15 = vpop.eup %705  ;;  %725 = vrcp.f32 %v386_v9  ;;  %v387_v16 = vadd.f32 1.0, %v704_v11  ;;  %v279_v24 = vpop.f32.mrb[12].mxu1  ;;  %v1031_v9 = vadd.f32 %v235_v59, %v929_v47  ;;  %v1039_v19 = vadd.f32 %v239_v21, %v927_v46 }
 0x134   :  { %v708_v25 = vpop.eup %707  ;;  %727 = vrcp.f32 %v402_v12  ;;  %v403_v26 = vadd.f32 1.0, %v706_v15  ;;  %v1009_v30 = vpop.f32.mrb[13].mxu0  ;;  %v338_v12 = vmul.f32 1.442695, %v297_v41 }
 0x135   :  { %v1011_v31 = vpop.f32.mrb[13].mxu1  ;;  %v710_v32 = vpop.eup %709  ;;  %729 = vrcp.f32 %v387_v16  ;;  %v388_v33 = vadd.f32 1.0, %v708_v25  ;;  %v370_v16 = vmul.f32 1.442695, %v313_v52 }
 0x136   :  { %v1016_v36 = vpop.f32.mrb[14].mxu0  ;;  %v1018_v37 = vpop.f32.mrb[14].mxu1  ;;  %731 = vrcp.f32 %v403_v26  ;;  %v404_v39 = vadd.f32 1.0, %v710_v32  ;;  %v314_v26 = vsub.f32 0.0, %v1027_v4  ;;  %v340_v32 = vmul.f32 1.442695, %v298_v8 }
 0x137   :  { %v712_v38 = vpop.eup %711  ;;  %v1021_v43 = vpop.f32.mrb[15].mxu0  ;;  %733 = vrcp.f32 %v388_v33 }
 0x138   :  { %v1023_v44 = vpop.f32.mrb[15].mxu1  ;;  %v714_v45 = vpop.eup %713  ;;  %v389_v48 = vadd.f32 1.0, %v712_v38  ;;  %735 = vrcp.f32 %v404_v39 }
 0x139   :  { %v716_v57 = vpop.eup %715  ;;  %v405_v62 = vadd.f32 1.0, %v714_v45 }
 0x13a   :  { %v718_v5 = vpop.eup %717  ;;  %737 = vrcp.f32 %v389_v48  ;;  %v390_v6 = vadd.f32 1.0, %v716_v57 }
 0x13b   :  { %v720_v10 = vpop.eup %719  ;;  %v448_v11 = vmul.f32 %v718_v5, %v932_v50  ;;  %739 = vrcp.f32 %v405_v62  ;;  %v1044_v50 = vadd.f32 %v279_v24, %v927_v46  ;;  %v300_v24 = vsub.f32 0.0, %v1039_v19 }
 0x13c   :  { %v722_v15 = vpop.eup %721  ;;  %v464_v53 = vmul.f32 %v720_v10, %v935_v51  ;;  %741 = vrcp.f32 %v390_v6  ;;  %v299_v51 = vsub.f32 0.0, %v1031_v9 }
 0x13d   :  { %v724_v25 = vpop.eup %723  ;;  %v449_v59 = vmul.f32 %v722_v15, %v938_v54  ;;  %743 = vpow2.f32 %v364_v27  ;;  %v315_v54 = vsub.f32 0.0, %v1035_v13  ;;  %v344_v6 = vmul.f32 1.442695, %v300_v24 }
 0x13e   :  { %v726_v29 = vpop.eup %725  ;;  %v465_v1 = vmul.f32 %v724_v25, %v941_v55  ;;  %745 = vpow2.f32 %v334_v34  ;;  %v372_v34 = vmul.f32 1.442695, %v314_v26  ;;  %v342_v48 = vmul.f32 1.442695, %v299_v51 }
 0x13f   :  { %v728_v33 = vpop.eup %727  ;;  %v630_v38 = vpack.c.bf16 %v449_v59, %v448_v11  ;;  %v450_v21 = vmul.f32 %v726_v29, %v946_v60  ;;  %747 = vpow2.f32 %v366_v40  ;;  %v316_v60 = vsub.f32 0.0, %v1044_v50 }
 0x140   :  { %v730_v27 = vpop.eup %729  ;;  %v638_v39 = vpack.c.bf16 %v465_v1, %v464_v53  ;;  %v466_v41 = vmul.f32 %v728_v33, %v949_v61  ;;  %749 = vpow2.f32 %v336_v56  ;;  %v374_v62 = vmul.f32 1.442695, %v315_v54 }
 0x141   :  { %v732_v45 = vpop.eup %731  ;;  %576 = vst [vmem:[%s1160_s3] sm:$0xff] %v630_v38  ;;  %v451_v55 = vmul.f32 %v730_v27, %v954_v2  ;;  %751 = vpow2.f32 %v368_v63  ;;  %v376_v10 = vmul.f32 1.442695, %v316_v60  ;;  %v1079_v1 = vadd.f32 %v1009_v30, %v929_v47 }
 0x142   :  { %v734_v40 = vpop.eup %733  ;;  %584 = vst [vmem:[%s1160_s3 + $0x40] sm:$0xff] %v638_v39  ;;  %v467_v61 = vmul.f32 %v732_v45, %v957_v3  ;;  %753 = vpow2.f32 %v338_v12  ;;  %v1083_v33 = vadd.f32 %v1011_v31, %v929_v47  ;;  %v1087_v54 = vadd.f32 %v1016_v36, %v927_v46 }
 0x143   :  { %v736_v56 = vpop.eup %735  ;;  %v631_v52 = vpack.c.bf16 %v451_v55, %v450_v21  ;;  %v452_v57 = vmul.f32 %v734_v40, %v964_v17  ;;  %755 = vpow2.f32 %v370_v16  ;;  %v1091_v30 = vadd.f32 %v1018_v37, %v927_v46 }
 0x144   :  { %v738_v2 = vpop.eup %737  ;;  %v639_v63 = vpack.c.bf16 %v467_v61, %v466_v41  ;;  %v468_v5 = vmul.f32 %v736_v56, %v967_v18  ;;  %757 = vpow2.f32 %v340_v32  ;;  %v301_v31 = vsub.f32 0.0, %v1079_v1 }
 0x145   :  { %v740_v8 = vpop.eup %739  ;;  %577 = vst [vmem:[%s1160_s3 + $0x8] sm:$0xff] %v631_v52  ;;  %v453_v3 = vmul.f32 %v738_v2, %v970_v22  ;;  %759 = vpow2.f32 %v372_v34  ;;  %v1096_v45 = vadd.f32 %v1021_v43, %v929_v47  ;;  %v317_v34 = vsub.f32 0.0, %v1083_v33 }
 0x146   :  { %v742_v11 = vpop.eup %741  ;;  %585 = vst [vmem:[%s1160_s3 + $0x48] sm:$0xff] %v639_v63  ;;  %v469_v17 = vmul.f32 %v740_v8, %v973_v23  ;;  %761 = vpow2.f32 %v342_v48  ;;  %v1101_v60 = vadd.f32 %v1023_v44, %v929_v47  ;;  %v302_v40 = vsub.f32 0.0, %v1087_v54 }
 0x147   :  { %v744_v18 = vpop.eup %743  ;;  %v632_v12 = vpack.c.bf16 %v453_v3, %v452_v57  ;;  %763 = vpow2.f32 %v374_v62  ;;  %v318_v43 = vsub.f32 0.0, %v1091_v30  ;;  %v346_v52 = vmul.f32 1.442695, %v301_v31 }
 0x148   :  { %v746_v15 = vpop.eup %745  ;;  %v640_v53 = vpack.c.bf16 %v469_v17, %v468_v5  ;;  %v406_v16 = vadd.f32 1.0, %v744_v18  ;;  %765 = vpow2.f32 %v344_v6  ;;  %v303_v57 = vsub.f32 0.0, %v1096_v45 }
 0x149   :  { %v748_v25 = vpop.eup %747  ;;  %578 = vst [vmem:[%s1160_s3 + $0x10] sm:$0xff] %v632_v12  ;;  %v391_v22 = vadd.f32 1.0, %v746_v15  ;;  %767 = vpow2.f32 %v376_v10  ;;  %v454_v2 = vmul.f32 %v742_v11, %v978_v28  ;;  %v378_v47 = vmul.f32 1.442695, %v317_v34 }
 0x14a   :  { %v750_v59 = vpop.eup %749  ;;  %586 = vst [vmem:[%s1160_s3 + $0x50] sm:$0xff] %v640_v53  ;;  %769 = vrcp.f32 %v406_v16  ;;  %v407_v23 = vadd.f32 1.0, %v748_v25  ;;  %v319_v44 = vsub.f32 0.0, %v1101_v60  ;;  %v348_v6 = vmul.f32 1.442695, %v302_v40 }
 0x14b   :  { %v752_v26 = vpop.eup %751  ;;  %771 = vrcp.f32 %v391_v22  ;;  %v392_v29 = vadd.f32 1.0, %v750_v59  ;;  %v380_v10 = vmul.f32 1.442695, %v318_v43  ;;  %v350_v12 = vmul.f32 1.442695, %v303_v57 }
 0x14c   :  { %v754_v32 = vpop.eup %753  ;;  %773 = vrcp.f32 %v407_v23  ;;  %v408_v51 = vadd.f32 1.0, %v752_v26  ;;  %v382_v11 = vmul.f32 1.442695, %v319_v44 }
 0x14d   :  { %v756_v38 = vpop.eup %755  ;;  %775 = vrcp.f32 %v392_v29  ;;  %v393_v21 = vadd.f32 1.0, %v754_v32 }
 0x14e   :  { %v758_v27 = vpop.eup %757  ;;  %777 = vrcp.f32 %v408_v51  ;;  %v409_v39 = vadd.f32 1.0, %v756_v38 }
 0x14f   :  { %v760_v41 = vpop.eup %759  ;;  %779 = vrcp.f32 %v393_v21  ;;  %v394_v24 = vadd.f32 1.0, %v758_v27 }
 0x150   :  { %v762_v55 = vpop.eup %761  ;;  %781 = vrcp.f32 %v409_v39  ;;  %v410_v36 = vadd.f32 1.0, %v760_v41 }
 0x151   :  { %v764_v46 = vpop.eup %763  ;;  %783 = vrcp.f32 %v394_v24  ;;  %v395_v37 = vadd.f32 1.0, %v762_v55 }
 0x152   :  { %v766_v61 = vpop.eup %765  ;;  %785 = vrcp.f32 %v410_v36  ;;  %v411_v48 = vadd.f32 1.0, %v764_v46 }
 0x153   :  { %v768_v56 = vpop.eup %767  ;;  %787 = vrcp.f32 %v395_v37  ;;  %v396_v26 = vadd.f32 1.0, %v766_v61 }
 0x154   :  { %v770_v62 = vpop.eup %769  ;;  %789 = vrcp.f32 %v411_v48 }
 0x155   :  { %v772_v63 = vpop.eup %771  ;;  %v470_v5 = vmul.f32 %v770_v62, %v984_v42  ;;  %791 = vpow2.f32 %v346_v52 }
 0x156   :  { %v774_v8 = vpop.eup %773  ;;  %v455_v3 = vmul.f32 %v772_v63, %v987_v49  ;;  %793 = vpow2.f32 %v378_v47 }
 0x157   :  { %v776_v17 = vpop.eup %775  ;;  %v471_v18 = vmul.f32 %v774_v8, %v990_v58  ;;  %795 = vpow2.f32 %v348_v6 }
 0x158   :  { %v778_v15 = vpop.eup %777  ;;  %v633_v53 = vpack.c.bf16 %v455_v3, %v454_v2  ;;  %v456_v28 = vmul.f32 %v776_v17, %v993_v0  ;;  %797 = vpow2.f32 %v380_v10 }
 0x159   :  { %v780_v16 = vpop.eup %779  ;;  %v641_v25 = vpack.c.bf16 %v471_v18, %v470_v5  ;;  %v472_v42 = vmul.f32 %v778_v15, %v997_v7  ;;  %799 = vpow2.f32 %v350_v12 }
 0x15a   :  { %v782_v22 = vpop.eup %781  ;;  %579 = vst [vmem:[%s1160_s3 + $0x18] sm:$0xff] %v633_v53  ;;  %v457_v49 = vmul.f32 %v780_v16, %v1002_v14  ;;  %801 = vpow2.f32 %v382_v11  ;;  %v412_v14 = vadd.f32 1.0, %v768_v56 }
 0x15b   :  { %v784_v58 = vpop.eup %783  ;;  %587 = vst [vmem:[%s1160_s3 + $0x58] sm:$0xff] %v641_v25  ;;  %v473_v0 = vmul.f32 %v782_v22, %v1006_v20  ;;  %803 = vrcp.f32 %v396_v26 }
 0x15c   :  { %v786_v59 = vpop.eup %785  ;;  %v634_v23 = vpack.c.bf16 %v457_v49, %v456_v28  ;;  %v458_v7 = vmul.f32 %v784_v58, %v1014_v35  ;;  %805 = vrcp.f32 %v412_v14 }
 0x15d   :  { %v788_v29 = vpop.eup %787  ;;  %v642_v32 = vpack.c.bf16 %v473_v0, %v472_v42  ;;  %v474_v51 = vmul.f32 %v786_v59, %v1027_v4 }
 0x15e   :  { %v790_v38 = vpop.eup %789  ;;  %580 = vst [vmem:[%s1160_s3 + $0x20] sm:$0xff] %v634_v23  ;;  %v459_v21 = vmul.f32 %v788_v29, %v1031_v9 }
 0x15f   :  { %588 = vst [vmem:[%s1160_s3 + $0x60] sm:$0xff] %v642_v32  ;;  %v475_v20 = vmul.f32 %v790_v38, %v1035_v13  ;;  %v792_v27 = vpop.eup %791 }
 0x160   :  { %v635_v35 = vpack.c.bf16 %v459_v21, %v458_v7  ;;  %v794_v4 = vpop.eup %793  ;;  %v397_v41 = vadd.f32 1.0, %v792_v27 }
 0x161   :  { %v643_v39 = vpack.c.bf16 %v475_v20, %v474_v51  ;;  %v796_v24 = vpop.eup %795  ;;  %v413_v9 = vadd.f32 1.0, %v794_v4 }
 0x162   :  { %581 = vst [vmem:[%s1160_s3 + $0x28] sm:$0xff] %v635_v35  ;;  %v798_v31 = vpop.eup %797  ;;  %807 = vrcp.f32 %v397_v41  ;;  %v398_v13 = vadd.f32 1.0, %v796_v24 }
 0x163   :  { %589 = vst [vmem:[%s1160_s3 + $0x68] sm:$0xff] %v643_v39  ;;  %v800_v55 = vpop.eup %799  ;;  %809 = vrcp.f32 %v413_v9  ;;  %v414_v36 = vadd.f32 1.0, %v798_v31 }
 0x164   :  { %v802_v34 = vpop.eup %801  ;;  %811 = vrcp.f32 %v398_v13  ;;  %v399_v46 = vadd.f32 1.0, %v800_v55 }
 0x165   :  { %813 = vrcp.f32 %v414_v36  ;;  %v415_v37 = vadd.f32 1.0, %v802_v34  ;;  %v804_v40 = vpop.eup %803 }
 0x166   :  { %815 = vrcp.f32 %v399_v46  ;;  %v806_v61 = vpop.eup %805  ;;  %v460_v48 = vmul.f32 %v804_v40, %v1039_v19 }
 0x167   :  { %817 = vrcp.f32 %v415_v37  ;;  %v476_v56 = vmul.f32 %v806_v61, %v1044_v50 }
 0x16c   :  { %v808_v43 = vpop.eup %807 }
 0x16d   :  { %v810_v52 = vpop.eup %809  ;;  %v461_v57 = vmul.f32 %v808_v43, %v1079_v1 }
 0x16e   :  { %v812_v62 = vpop.eup %811  ;;  %v477_v2 = vmul.f32 %v810_v52, %v1083_v33 }
 0x16f   :  { %v814_v47 = vpop.eup %813  ;;  %v636_v44 = vpack.c.bf16 %v461_v57, %v460_v48  ;;  %v462_v63 = vmul.f32 %v812_v62, %v1087_v54 }
 0x170   :  { %v816_v5 = vpop.eup %815  ;;  %v644_v6 = vpack.c.bf16 %v477_v2, %v476_v56  ;;  %v478_v8 = vmul.f32 %v814_v47, %v1091_v30 }
 0x171   :  { %v818_v3 = vpop.eup %817  ;;  %582 = vst [vmem:[%s1160_s3 + $0x30] sm:$0xff] %v636_v44  ;;  %v463_v19 = vmul.f32 %v816_v5, %v1096_v45 }
 0x172   :  { %590 = vst [vmem:[%s1160_s3 + $0x70] sm:$0xff] %v644_v6  ;;  %v479_v50 = vmul.f32 %v818_v3, %v1101_v60 }
 0x173   :  { %v637_v1 = vpack.c.bf16 %v463_v19, %v462_v63 }
 0x174   :  { %v645_v33 = vpack.c.bf16 %v479_v50, %v478_v8 }
 0x175   :  { %583 = vst [vmem:[%s1160_s3 + $0x38] sm:$0xff] %v637_v1 }
 0x176   :  { %591 = vst [vmem:[%s1160_s3 + $0x78] sm:$0xff] %v645_v33 }
 0x177   :  { %596 = vsyncpa [#allocation3], 1 }
 0x178   :  { %597 = vsyncpa [#allocation5], 1 }

// kernel: psa_forward.9
= control target key start
LH: loop header
LB: loop body
LE: loop exit
PB: predicated region body
PF: predicated region fallthrough
CT: control target
= control target key end

     0   :  { %s602_s1 = inlined_call_operand.vmem [shape: bf16[128,128], index: 1, kind: input, shape index: {}]   ;;  %s603_s0 = inlined_call_operand.vmem [shape: bf16[128,128], index: 0, kind: input, shape index: {}]   ;;  %s604_s2 = inlined_call_operand.vmem [shape: f32[1,128], index: 2, kind: input, shape index: {}]   ;;  %s605_s3 = inlined_call_operand.vmem [shape: bf16[128,128], index: 3, kind: output, shape index: {}]  }
   0x1   :  { %v491_v0 = vld [vmem:[%s602_s1] sm:$0xff]   ;;  %v492_v1 = vld [vmem:[%s602_s1 + $0x8] sm:$0xff]   ;;  %v493_v2 = vld [vmem:[%s602_s1 + $0x10] sm:$0xff]  }
   0x2   :  { %443 = vmatprep.subr.bf16.mxu0 %v491_v0  ;;  %475 = vmatprep.subr.bf16.mxu1 %v491_v0  ;;  %v494_v3 = vld [vmem:[%s602_s1 + $0x18] sm:$0xff]   ;;  %v499_v4 = vld [vmem:[%s603_s0] sm:$0xff]   ;;  %v496_v7 = vld [vmem:[%s602_s1 + $0x28] sm:$0xff]  }
   0x3   :  { %444 = vmatpush3.bf16.msra.mxu0 %v491_v0  ;;  %483 = vmatpush3.bf16.msra.mxu1 %v491_v0  ;;  %v500_v5 = vld [vmem:[%s603_s0 + $0x20] sm:$0xff]   ;;  %v497_v8 = vld [vmem:[%s602_s1 + $0x30] sm:$0xff]   ;;  %v498_v9 = vld [vmem:[%s602_s1 + $0x38] sm:$0xff]  }
   0x4   :  { %445 = vmatprep.subr.bf16.mxu0 %v492_v1  ;;  %476 = vmatprep.subr.bf16.mxu1 %v492_v1  ;;  %v495_v6 = vld [vmem:[%s602_s1 + $0x20] sm:$0xff]   ;;  %v501_v10 = vld [vmem:[%s603_s0 + $0x8] sm:$0xff]   ;;  %v503_v12 = vld [vmem:[%s603_s0 + $0x10] sm:$0xff]  }
   0x5   :  { %459 = vmatprep.mubr.bf16.mxu0 %v499_v4  ;;  %467 = vmatprep.mubr.bf16.mxu1 %v500_v5  ;;  %v502_v11 = vld [vmem:[%s603_s0 + $0x28] sm:$0xff]   ;;  %v504_v13 = vld [vmem:[%s603_s0 + $0x30] sm:$0xff]   ;;  %v505_v14 = vld [vmem:[%s603_s0 + $0x18] sm:$0xff]  }
   0x6   :  { %v506_v15 = vld [vmem:[%s603_s0 + $0x38] sm:$0xff]   ;;  %v331_v17 = vld [vmem:[%s604_s2] ss:$0 sm:$0xff] }
   0x7   :  { %446 = vmatpush3.bf16.msra.mxu0 %v492_v1  ;;  %484 = vmatpush3.bf16.msra.mxu1 %v492_v1 }
   0x8   :  { %447 = vmatprep.subr.bf16.mxu0 %v493_v2  ;;  %477 = vmatprep.subr.bf16.mxu1 %v493_v2 }
   0xb   :  { %448 = vmatpush3.bf16.msra.mxu0 %v493_v2  ;;  %485 = vmatpush3.bf16.msra.mxu1 %v493_v2 }
   0xc   :  { %449 = vmatprep.subr.bf16.mxu0 %v494_v3  ;;  %478 = vmatprep.subr.bf16.mxu1 %v494_v3 }
   0xf   :  { %450 = vmatpush3.bf16.msra.mxu0 %v494_v3  ;;  %486 = vmatpush3.bf16.msra.mxu1 %v494_v3 }
  0x10   :  { %451 = vmatprep.subr.bf16.mxu0 %v495_v6  ;;  %479 = vmatprep.subr.bf16.mxu1 %v495_v6 }
  0x13   :  { %452 = vmatpush3.bf16.msra.mxu0 %v495_v6  ;;  %487 = vmatpush3.bf16.msra.mxu1 %v495_v6 }
  0x14   :  { %453 = vmatprep.subr.bf16.mxu0 %v496_v7  ;;  %480 = vmatprep.subr.bf16.mxu1 %v496_v7 }
  0x17   :  { %454 = vmatpush3.bf16.msra.mxu0 %v496_v7  ;;  %488 = vmatpush3.bf16.msra.mxu1 %v496_v7 }
  0x18   :  { %455 = vmatprep.subr.bf16.mxu0 %v497_v8  ;;  %481 = vmatprep.subr.bf16.mxu1 %v497_v8 }
  0x1b   :  { %456 = vmatpush3.bf16.msra.mxu0 %v497_v8  ;;  %489 = vmatpush3.bf16.msra.mxu1 %v497_v8 }
  0x1c   :  { %457 = vmatprep.subr.bf16.mxu0 %v498_v9  ;;  %482 = vmatprep.subr.bf16.mxu1 %v498_v9 }
  0x1f   :  { %458 = vmatpush3.bf16.msra.mxu0 %v498_v9  ;;  %490 = vmatpush3.bf16.msra.mxu1 %v498_v9 }
  0x22   :  { %460 = vmatmul.mubr.bf16.vlgmr.msra.gmra.mrb[0].mxu0 %v501_v10  ;;  %468 = vmatmul.mubr.bf16.vlgmr.msra.gmra.mrb[0].mxu1 %v502_v11 }
  0x23   :  { %463 = vmatprep.mubr.bf16.mxu0 %v503_v12  ;;  %471 = vmatprep.mubr.bf16.mxu1 %v504_v13 }
  0x2a   :  { %464 = vmatmul.mubr.bf16.gmra.mrb[4].mxu0 %v505_v14  ;;  %472 = vmatmul.mubr.bf16.gmra.mrb[4].mxu1 %v506_v15 }
  0xf5   :  { %v461_v16 = vpop.f32.mrb[0].mxu0  ;;  %v469_v18 = vpop.f32.mrb[0].mxu1 }
  0xf6   :  { %v184_v19 = vpop.f32.mrb[1].mxu0  ;;  %v216_v20 = vpop.f32.mrb[1].mxu1  ;;  %v193_v23 = vadd.f32 %v461_v16, %v331_v17  ;;  %v225_v24 = vadd.f32 %v469_v18, %v331_v17 }
  0xf7   :  { %v462_v21 = vpop.f32.mrb[2].mxu0  ;;  %v470_v22 = vpop.f32.mrb[2].mxu1  ;;  %v185_v29 = vadd.f32 %v331_v17, %v184_v19  ;;  %v217_v30 = vadd.f32 %v331_v17, %v216_v20 }
  0xf8   :  { %v196_v25 = vadd.f32 %v462_v21, %v331_v17  ;;  %v228_v26 = vadd.f32 %v470_v22, %v331_v17  ;;  %v187_v27 = vpop.f32.mrb[3].mxu0  ;;  %v219_v28 = vpop.f32.mrb[3].mxu1 }
  0xf9   :  { %v188_v31 = vadd.f32 %v331_v17, %v187_v27  ;;  %v220_v32 = vadd.f32 %v331_v17, %v219_v28 }
  0xfa   :  { %v388_v33 = vpack.c.bf16 %v196_v25, %v193_v23  ;;  %v408_v34 = vpack.c.bf16 %v228_v26, %v225_v24 }
  0xfb   :  { %v383_v35 = vpack.c.bf16 %v188_v31, %v185_v29  ;;  %v403_v36 = vpack.c.bf16 %v220_v32, %v217_v30 }
  0xfc   :  { %420 = vst [vmem:[%s605_s3 + $0x8] sm:$0xff] %v388_v33   ;;  %424 = vst [vmem:[%s605_s3 + $0x28] sm:$0xff] %v408_v34  }
  0xfd   :  { %384 = vst [vmem:[%s605_s3] sm:$0xff] %v383_v35   ;;  %423 = vst [vmem:[%s605_s3 + $0x20] sm:$0xff] %v403_v36   ;;  %v465_v37 = vpop.f32.mrb[4].mxu0  ;;  %v473_v38 = vpop.f32.mrb[4].mxu1 }
  0xfe   :  { %v200_v39 = vpop.f32.mrb[5].mxu0  ;;  %v232_v40 = vpop.f32.mrb[5].mxu1  ;;  %v209_v43 = vadd.f32 %v465_v37, %v331_v17  ;;  %v241_v44 = vadd.f32 %v473_v38, %v331_v17 }
  0xff   :  { %v466_v41 = vpop.f32.mrb[6].mxu0  ;;  %v474_v42 = vpop.f32.mrb[6].mxu1  ;;  %v201_v49 = vadd.f32 %v331_v17, %v200_v39  ;;  %v233_v50 = vadd.f32 %v331_v17, %v232_v40 }
 0x100   :  { %v212_v45 = vadd.f32 %v466_v41, %v331_v17  ;;  %v244_v46 = vadd.f32 %v474_v42, %v331_v17  ;;  %v203_v47 = vpop.f32.mrb[7].mxu0  ;;  %v235_v48 = vpop.f32.mrb[7].mxu1 }
 0x101   :  { %v204_v51 = vadd.f32 %v331_v17, %v203_v47  ;;  %v236_v52 = vadd.f32 %v331_v17, %v235_v48 }
 0x102   :  { %v398_v53 = vpack.c.bf16 %v212_v45, %v209_v43  ;;  %v418_v54 = vpack.c.bf16 %v244_v46, %v241_v44 }
 0x103   :  { %v393_v55 = vpack.c.bf16 %v204_v51, %v201_v49  ;;  %v413_v56 = vpack.c.bf16 %v236_v52, %v233_v50 }
 0x104   :  { %422 = vst [vmem:[%s605_s3 + $0x18] sm:$0xff] %v398_v53   ;;  %426 = vst [vmem:[%s605_s3 + $0x38] sm:$0xff] %v418_v54  }
 0x105   :  { %421 = vst [vmem:[%s605_s3 + $0x10] sm:$0xff] %v393_v55   ;;  %425 = vst [vmem:[%s605_s3 + $0x30] sm:$0xff] %v413_v56  }

// kernel: psa_forward.10
= control target key start
LH: loop header
LB: loop body
LE: loop exit
PB: predicated region body
PF: predicated region fallthrough
CT: control target
= control target key end

     0   :  { %s887_s9 = smov 0   ;;  %s889_s10 = smov 0   ;;  %s992_s0 = inlined_call_operand.vmem [shape: bf16[2,64,128], index: 0, kind: input, shape index: {}, may-alias: {0,1}]   ;;  %s993_s1 = inlined_call_operand.vmem [shape: bf16[2,64,128], index: 1, kind: input, shape index: {}, may-alias: {0,1}]   ;;  %s994_s2 = inlined_call_operand.vmem [shape: bf16[2,64,64], index: 2, kind: output, shape index: {}]  }
   0x1   :  { %s891_s11 = smov 0  }
   0x2 LB: > { %s24_s12 = sadd.s32 1, %s864_s10  ;;  %p684_p0 = scmp.ge.s32.totalorder %s868_s11, 1  ;;  %s868_s11 = sphi %s891_s11, %s12_s11   ;;  %s864_s10 = sphi %s889_s10, %s996_s10   ;;  %s860_s9 = sphi %s887_s9, %s995_s9  }
   0x3   : > { %p26_p1 = scmp.ge.s32.totalorder %s24_s12, 2  ;;  %p143_p2 = scmp.lt.s32.totalorder %s868_s11, 3 }
   0x5   : > { %s998_s12 = smov (%p26_p1, %s24_s12), 0  ;;  %p144_p3 = pnand %p684_p0, %p143_p2 }
   0x6   : > { %p179_p4 = scmp.lt.s32.totalorder (!%p144_p3), %s860_s9, 1  ;;  %s870_s17 = smov (!%p144_p3), 96   ;;  %vm268_vm0 = vcmask (!%p144_p3), 261120   ;;  %vm358_vm1 = vcmask (!%p144_p3), 523264   ;;  %vm572_vm2 = vcmask (!%p144_p3), 519168  }
   0x7   : > { %147 = sbr.rel (%p144_p3) target bundleno = 941 (0x3ad), region = 28  ;;  %s871_s21 = smov (!%p144_p3), 64  }
   0xe   : > { %s1000_s9 = smov (!%p179_p4, %s860_s9), 1 }
   0xf   : > { %s905_s13 = sshll.u32 %s1000_s9, 5 }
  0x10   : > { %s192_s16 = scalar_lea.vmem %s993_s1, %s905_s13  ;;  %s186_s20 = scalar_lea.vmem %s992_s0, %s905_s13 }
  0x11   : > { %v806_v0 = vld [vmem:[%s192_s16] sm:$0xff]   ;;  %v911_v1 = vld [vmem:[%s192_s16 + $0x8] sm:$0xff]   ;;  %v913_v2 = vld [vmem:[%s192_s16 + $0x10] sm:$0xff]   ;;  %s201_s24 = scalar_lea.vmem %s994_s2, %s905_s13 }
  0x12   : > { %260 = vrot.lane.b32.xlu0 %v806_v0, %s870_s17  ;;  %264 = vrot.lane.b32.xlu1 %v913_v2, %s870_s17  ;;  %v916_v3 = vld [vmem:[%s192_s16 + $0x18] sm:$0xff]   ;;  %v810_v4 = vld [vmem:[%s186_s20] sm:$0xff]  }
  0x13   : > { %752 = vmatprep.mubr.msk.bf16.mxu0 %vm268_vm0, %v810_v4  ;;  %v811_v13 = vld [vmem:[%s186_s20 + $0x8] sm:$0xff]   ;;  %v812_v14 = vld [vmem:[%s186_s20 + $0x10] sm:$0xff]   ;;  %v813_v15 = vld [vmem:[%s186_s20 + $0x18] sm:$0xff]  }
  0x16   : > { %262 = vrot.lane.b32.xlu0 %v911_v1, %s870_s17  ;;  %266 = vrot.lane.b32.xlu1 %v916_v3, %s870_s17 }
  0x84   : > { %v261_v5 = vpop.permute.xlu0 %260  ;;  %v265_v9 = vpop.permute.xlu1 %264 }
  0x85   : > { %776 = vmatprep.subr.msk.bf16.mxu0 %vm268_vm0, %v261_v5  ;;  %v282_v6 = vsel %vm268_vm0, %v261_v5, 0  ;;  %v288_v10 = vsel %vm268_vm0, %v265_v9, 0 }
  0x86   : > { %745 = vmatpush3.bf16.xpose.msra.mxu0 %v282_v6 }
  0x88   : > { %v263_v7 = vpop.permute.xlu0 %262  ;;  %v267_v11 = vpop.permute.xlu1 %266 }
  0x89   : > { %777 = vmatprep.subr.msk.bf16.mxu0 %vm268_vm0, %v263_v7  ;;  %v285_v8 = vsel %vm268_vm0, %v263_v7, 0  ;;  %v291_v12 = vsel %vm268_vm0, %v267_v11, 0 }
  0x8e   : > { %747 = vmatpush3.bf16.xpose.msra.mxu0 %v285_v8 }
  0x8f   : > { %778 = vmatprep.subr.msk.bf16.mxu0 %vm268_vm0, %v265_v9 }
  0x96   : > { %749 = vmatpush3.bf16.xpose.msra.mxu0 %v288_v10 }
  0x97   : > { %779 = vmatprep.subr.msk.bf16.mxu0 %vm268_vm0, %v267_v11 }
  0x9e   : > { %751 = vmatpush3.bf16.xpose.msra.mxu0 %v291_v12 }
  0xa5   : > { %753 = vmatmul.mubr.msk.bf16.vlgmr.msra.gmra.mrb[0].mxu0 %vm268_vm0, %v811_v13 }
  0xa6   : > { %756 = vmatprep.mubr.msk.bf16.mxu0 %vm268_vm0, %v812_v14 }
  0xad   : > { %757 = vmatmul.mubr.msk.bf16.gmra.mrb[4].mxu0 %vm268_vm0, %v813_v15 }
 0x178   : > { %v754_v16 = vpop.f32.mrb[0].mxu0 }
 0x179   : > { %v327_v17 = vpop.f32.mrb[1].mxu0  ;;  %v365_v22 = vsel %vm358_vm1, %v754_v16, -inf }
 0x17a   : > { %v755_v18 = vpop.f32.mrb[2].mxu0  ;;  %v359_v19 = vsel %vm358_vm1, %v327_v17, -inf }
 0x17b   : > { %360 = vmax.xlane.f32.xlu0 %v359_v19  ;;  %v330_v20 = vpop.f32.mrb[3].mxu0  ;;  %v368_v26 = vsel %vm358_vm1, %v755_v18, -inf }
 0x17c   : > { %v362_v21 = vsel %vm358_vm1, %v330_v20, -inf }
 0x17d   : > { %363 = vmax.xlane.f32.xlu1 %v362_v21 }
 0x17f   : > { %366 = vmax.xlane.f32.xlu0 %v365_v22 }
 0x180   : > { %v758_v23 = vpop.f32.mrb[4].mxu0 }
 0x181   : > { %v343_v24 = vpop.f32.mrb[5].mxu0  ;;  %v377_v29 = vsel %vm358_vm1, %v758_v23, -inf }
 0x182   : > { %v759_v25 = vpop.f32.mrb[6].mxu0  ;;  %v371_v27 = vsel %vm358_vm1, %v343_v24, -inf }
 0x183   : > { %369 = vmax.xlane.f32.xlu0 %v368_v26  ;;  %372 = vmax.xlane.f32.xlu1 %v371_v27  ;;  %v346_v28 = vpop.f32.mrb[7].mxu0  ;;  %v380_v31 = vsel %vm358_vm1, %v759_v25, -inf }
 0x184   : > { %v374_v30 = vsel %vm358_vm1, %v346_v28, -inf }
 0x187   : > { %378 = vmax.xlane.f32.xlu1 %v377_v29  ;;  %375 = vmax.xlane.f32.xlu0 %v374_v30 }
 0x18b   : > { %381 = vmax.xlane.f32.xlu0 %v380_v31 }
 0x198   : > { %451 = vrot.lane.b32.xlu1 %v806_v0, %s871_s21 }
 0x208   : > { %v361_v32 = vpop.xlane.xlu0 %360 }
 0x209   : > { %v383_v33 = vsub.f32 %v327_v17, %v361_v32 }
 0x20a   : > { %v364_v34 = vpop.xlane.xlu1 %363 }
 0x20b   : > { %v391_v37 = vmul.f32 1.442695, %v383_v33  ;;  %v384_v38 = vsub.f32 %v330_v20, %v364_v34 }
 0x20c   : > { %v367_v35 = vpop.xlane.xlu0 %366 }
 0x20d   : > { %v385_v36 = vsub.f32 %v754_v16, %v367_v35  ;;  %v393_v43 = vmul.f32 1.442695, %v384_v38 }
 0x20f   : > { %v395_v39 = vmul.f32 1.442695, %v385_v36 }
 0x210   : > { %v370_v40 = vpop.xlane.xlu0 %369  ;;  %v373_v41 = vpop.xlane.xlu1 %372 }
 0x211   : > { %814 = vpow2.f32 %v395_v39  ;;  %v386_v42 = vsub.f32 %v755_v18, %v370_v40  ;;  %v387_v45 = vsub.f32 %v343_v24, %v373_v41 }
 0x212   : > { %816 = vpow2.f32 %v391_v37 }
 0x213   : > { %v397_v44 = vmul.f32 1.442695, %v386_v42  ;;  %v399_v49 = vmul.f32 1.442695, %v387_v45 }
 0x214   : > { %v379_v46 = vpop.xlane.xlu1 %378  ;;  %v376_v47 = vpop.xlane.xlu0 %375 }
 0x215   : > { %818 = vpow2.f32 %v397_v44  ;;  %v389_v48 = vsub.f32 %v758_v23, %v379_v46  ;;  %v388_v51 = vsub.f32 %v346_v28, %v376_v47 }
 0x216   : > { %820 = vpow2.f32 %v393_v43 }
 0x217   : > { %v403_v50 = vmul.f32 1.442695, %v389_v48  ;;  %v401_v56 = vmul.f32 1.442695, %v388_v51 }
 0x218   : > { %v382_v52 = vpop.xlane.xlu0 %381  ;;  %v452_v53 = vpop.permute.xlu1 %451 }
 0x219   : > { %822 = vpow2.f32 %v403_v50  ;;  %v390_v54 = vsub.f32 %v759_v25, %v382_v52  ;;  %760 = vmatprep.subr.bf16.mxu1 %v452_v53 }
 0x21a   : > { %761 = vmatpush3.bf16.msra.mxu1 %v452_v53  ;;  %824 = vpow2.f32 %v399_v49 }
 0x21b   : > { %v945_v55 = vpop.eup %814  ;;  %v405_v57 = vmul.f32 1.442695, %v390_v54 }
 0x21c   : > { %v413_v58 = vsel %vm358_vm1, %v945_v55, 0.0  ;;  %v817_v59 = vpop.eup %816 }
 0x21d   : > { %826 = vpow2.f32 %v405_v57  ;;  %414 = vadd.xlane.f32.xlu1 %v413_v58  ;;  %v407_v61 = vsel %vm358_vm1, %v817_v59, 0.0 }
 0x21e   : > { %828 = vpow2.f32 %v401_v56 }
 0x21f   : > { %v819_v60 = vpop.eup %818 }
 0x220   : > { %v416_v62 = vsel %vm358_vm1, %v819_v60, 0.0  ;;  %v821_v63 = vpop.eup %820 }
 0x221   : > { %408 = vadd.xlane.f32.xlu1 %v407_v61  ;;  %417 = vadd.xlane.f32.xlu0 %v416_v62  ;;  %v410_v5 = vsel %vm358_vm1, %v821_v63, 0.0 }
 0x223   : > { %v951_v0 = vpop.eup %822 }
 0x224   : > { %v425_v4 = vsel %vm358_vm1, %v951_v0, 0.0  ;;  %v825_v6 = vpop.eup %824 }
 0x225   : > { %426 = vadd.xlane.f32.xlu1 %v425_v4  ;;  %411 = vadd.xlane.f32.xlu0 %v410_v5  ;;  %v419_v8 = vsel %vm358_vm1, %v825_v6, 0.0 }
 0x227   : > { %v827_v7 = vpop.eup %826 }
 0x228   : > { %v428_v9 = vsel %vm358_vm1, %v827_v7, 0.0  ;;  %v829_v10 = vpop.eup %828 }
 0x229   : > { %420 = vadd.xlane.f32.xlu1 %v419_v8  ;;  %429 = vadd.xlane.f32.xlu0 %v428_v9  ;;  %v422_v11 = vsel %vm358_vm1, %v829_v10, 0.0 }
 0x22d   : > { %423 = vadd.xlane.f32.xlu0 %v422_v11 }
 0x23a   : > { %455 = vrot.lane.b32.xlu1 %v913_v2, %s871_s21 }
 0x23e   : > { %457 = vrot.lane.b32.xlu1 %v916_v3, %s871_s21 }
 0x243   : > { %453 = vrot.lane.b32.xlu0 %v911_v1, %s871_s21 }
 0x2aa   : > { %v415_v12 = vpop.xlane.xlu1 %414 }
 0x2ae   : > { %v409_v13 = vpop.xlane.xlu1 %408  ;;  %v418_v14 = vpop.xlane.xlu0 %417 }
 0x2af   : > { %830 = vrcp.f32 %v409_v13 }
 0x2b2   : > { %v427_v15 = vpop.xlane.xlu1 %426  ;;  %v412_v16 = vpop.xlane.xlu0 %411 }
 0x2b3   : > { %832 = vrcp.f32 %v412_v16 }
 0x2b4   : > { %834 = vrcp.f32 %v418_v14 }
 0x2b5   : > { %836 = vrcp.f32 %v415_v12 }
 0x2b6   : > { %v430_v17 = vpop.xlane.xlu0 %429  ;;  %v421_v18 = vpop.xlane.xlu1 %420 }
 0x2b7   : > { %838 = vrcp.f32 %v421_v18 }
 0x2b9   : > { %v831_v2 = vpop.eup %830 }
 0x2ba   : > { %v424_v19 = vpop.xlane.xlu0 %423  ;;  %v456_v20 = vpop.permute.xlu1 %455  ;;  %v439_v1 = vmul.f32 %v831_v2, %v817_v59 }
 0x2bb   : > { %840 = vrcp.f32 %v424_v19 }
 0x2bc   : > { %842 = vrcp.f32 %v430_v17 }
 0x2bd   : > { %v833_v3 = vpop.eup %832  ;;  %844 = vrcp.f32 %v427_v15 }
 0x2be   : > { %v454_v21 = vpop.permute.xlu0 %453  ;;  %v440_v22 = vmul.f32 %v833_v3, %v821_v63  ;;  %v835_v24 = vpop.eup %834 }
 0x2bf   : > { %762 = vmatprep.subr.bf16.mxu1 %v454_v21  ;;  %v458_v25 = vpop.permute.xlu1 %457  ;;  %v837_v26 = vpop.eup %836  ;;  %v442_v29 = vmul.f32 %v835_v24, %v819_v60 }
 0x2c0   : > { %763 = vmatpush3.bf16.msra.mxu1 %v454_v21  ;;  %v447_v23 = vpack.c.bf16 %v440_v22, %v439_v1  ;;  %v441_v31 = vmul.f32 %v837_v26, %v945_v55 }
 0x2c1   : > { %764 = vmatprep.subr.bf16.mxu1 %v456_v20  ;;  %v839_v27 = vpop.eup %838 }
 0x2c2   : > { %768 = vmatprep.mubr.msk.bf16.mxu1 %vm358_vm1, %v447_v23  ;;  %v443_v32 = vmul.f32 %v839_v27, %v825_v6  ;;  %v448_v33 = vpack.c.bf16 %v442_v29, %v441_v31 }
 0x2c4   : > { %765 = vmatpush3.bf16.msra.mxu1 %v456_v20 }
 0x2c5   : > { %v841_v28 = vpop.eup %840  ;;  %766 = vmatprep.subr.bf16.mxu1 %v458_v25 }
 0x2c6   : > { %v444_v30 = vmul.f32 %v841_v28, %v829_v10  ;;  %v843_v34 = vpop.eup %842 }
 0x2c7   : > { %v845_v36 = vpop.eup %844  ;;  %v446_v37 = vmul.f32 %v843_v34, %v827_v7 }
 0x2c8   : > { %767 = vmatpush3.bf16.msra.mxu1 %v458_v25  ;;  %v449_v35 = vpack.c.bf16 %v444_v30, %v443_v32  ;;  %v445_v38 = vmul.f32 %v845_v36, %v951_v0 }
 0x2ca   : > { %v450_v39 = vpack.c.bf16 %v446_v37, %v445_v38 }
 0x2cb   : > { %769 = vmatmul.mubr.msk.bf16.vlgmr.msra.gmra.mrb[0].mxu1 %vm358_vm1, %v448_v33 }
 0x2cc   : > { %772 = vmatprep.mubr.msk.bf16.mxu1 %vm358_vm1, %v449_v35 }
 0x2d3   : > { %773 = vmatmul.mubr.msk.bf16.gmra.mrb[4].mxu1 %vm358_vm1, %v450_v39 }
 0x39e   : > { %v770_v40 = vpop.f32.mrb[0].mxu1 }
 0x39f   : > { %v722_v41 = vpack.c.bf16 %v770_v40, %v770_v40  ;;  %v509_v42 = vpop.f32.mrb[1].mxu1 }
 0x3a0   : > { %v720_v43 = vpack.c.bf16 %v509_v42, %v509_v42  ;;  %v771_v44 = vpop.f32.mrb[2].mxu1 }
 0x3a1   : > { %575 = vst.msk [vmem:[%s201_s24 + $0x8] sm:$0xf] %vm572_vm2, %v722_v41  ;;  %v723_v45 = vpack.c.bf16 %v771_v44, %v771_v44  ;;  %v512_v46 = vpop.f32.mrb[3].mxu1 }
 0x3a2   : > { %573 = vst.msk [vmem:[%s201_s24] sm:$0xf] %vm572_vm2, %v720_v43  ;;  %v721_v47 = vpack.c.bf16 %v512_v46, %v512_v46 }
 0x3a3   : > { %576 = vst.msk [vmem:[%s201_s24 + $0xc] sm:$0xf] %vm572_vm2, %v723_v45 }
 0x3a4   : > { %574 = vst.msk [vmem:[%s201_s24 + $0x4] sm:$0xf] %vm572_vm2, %v721_v47 }
 0x3a6   : > { %v774_v48 = vpop.f32.mrb[4].mxu1 }
 0x3a7   : > { %v726_v49 = vpack.c.bf16 %v774_v48, %v774_v48  ;;  %v525_v50 = vpop.f32.mrb[5].mxu1 }
 0x3a8   : > { %v724_v51 = vpack.c.bf16 %v525_v50, %v525_v50  ;;  %v775_v52 = vpop.f32.mrb[6].mxu1 }
 0x3a9   : > { %579 = vst.msk [vmem:[%s201_s24 + $0x18] sm:$0xf] %vm572_vm2, %v726_v49  ;;  %v727_v53 = vpack.c.bf16 %v775_v52, %v775_v52  ;;  %v528_v54 = vpop.f32.mrb[7].mxu1 }
 0x3aa   : > { %577 = vst.msk [vmem:[%s201_s24 + $0x10] sm:$0xf] %vm572_vm2, %v724_v51  ;;  %v725_v55 = vpack.c.bf16 %v528_v54, %v528_v54 }
 0x3ab   : > { %580 = vst.msk [vmem:[%s201_s24 + $0x1c] sm:$0xf] %vm572_vm2, %v727_v53 }
 0x3ac   : > { %578 = vst.msk [vmem:[%s201_s24 + $0x14] sm:$0xf] %vm572_vm2, %v725_v55 }
 0x3ad PF: > { %s12_s11 = sadd.s32 1, %s868_s11   ;;  %s995_s9 = smov %s864_s10 }
 0x3ae   : > { %p9_p5 = scmp.ge.s32.totalorder %s12_s11, 4   ;;  %s996_s10 = smov %s998_s12 }
 0x3b0   :  { %11 = sbr.rel (!%p9_p5) target bundleno = 2 (0x2), region = 61 }

// kernel: psa_forward.12
= control target key start
LH: loop header
LB: loop body
LE: loop exit
PB: predicated region body
PF: predicated region fallthrough
CT: control target
= control target key end

     0   :  { %vm132_vm0 = vcmask 523264   ;;  %s795_s2 = inlined_call_operand.vmem [shape: bf16[64,128], index: 2, kind: input, shape index: {}]   ;;  %s796_s0 = inlined_call_operand.vmem [shape: bf16[128,64], index: 0, kind: input, shape index: {}]   ;;  %s797_s1 = inlined_call_operand.vmem [shape: f32[128,64], index: 1, kind: input, shape index: {}]   ;;  %s798_s4 = inlined_call_operand.vmem [shape: bf16[128,128], index: 4, kind: input, shape index: {}]   ;;  %s799_s3 = inlined_call_operand.vmem [shape: f32[1,128], index: 3, kind: input, shape index: {}]   ;;  %s800_s5 = inlined_call_operand.vmem [shape: bf16[128,128], index: 5, kind: output, shape index: {}]  }
   0x1   :  { %v600_v0 = vld [vmem:[%s795_s2] sm:$0xff]   ;;  %v601_v1 = vld [vmem:[%s795_s2 + $0x8] sm:$0xff]   ;;  %v602_v2 = vld [vmem:[%s795_s2 + $0x10] sm:$0xff]  }
   0x2   :  { %568 = vmatprep.subr.bf16.mxu0 %v600_v0  ;;  %592 = vmatprep.subr.bf16.mxu1 %v600_v0  ;;  %v432_v3 = vld [vmem:[%s796_s0] sm:$0xff]   ;;  %v54_v5 = vld [vmem:[%s797_s1 + $0x8] sm:$0xff]  ;;  %v55_v14 = vld [vmem:[%s797_s1 + $0x10] sm:$0xff] }
   0x3   :  { %569 = vmatpush3.bf16.msra.mxu0 %v600_v0  ;;  %596 = vmatpush3.bf16.msra.mxu1 %v600_v0  ;;  %v53_v4 = vld [vmem:[%s797_s1] sm:$0xff]  ;;  %v433_v6 = vunpack.c.l.bf16 %v432_v3  ;;  %v434_v7 = vunpack.c.h.bf16 %v432_v3  ;;  %v62_v10 = vld [vmem:[%s797_s1 + $0x48] sm:$0xff]  ;;  %v56_v15 = vld [vmem:[%s797_s1 + $0x18] sm:$0xff] }
   0x4   :  { %570 = vmatprep.subr.bf16.mxu0 %v601_v1  ;;  %593 = vmatprep.subr.bf16.mxu1 %v601_v1  ;;  %v538_v8 = vld [vmem:[%s796_s0 + $0x20] sm:$0xff]   ;;  %v535_v13 = vld [vmem:[%s796_s0 + $0x8] sm:$0xff]   ;;  %v63_v21 = vld [vmem:[%s797_s1 + $0x50] sm:$0xff] }
   0x5   :  { %v61_v9 = vld [vmem:[%s797_s1 + $0x40] sm:$0xff]  ;;  %v449_v11 = vunpack.c.l.bf16 %v538_v8  ;;  %v450_v12 = vunpack.c.h.bf16 %v538_v8  ;;  %v69_v16 = vadd.f32 %v433_v6, %v53_v4  ;;  %v70_v17 = vadd.f32 %v434_v7, %v54_v5  ;;  %v539_v20 = vld [vmem:[%s796_s0 + $0x28] sm:$0xff]   ;;  %v64_v22 = vld [vmem:[%s797_s1 + $0x58] sm:$0xff] }
   0x6   :  { %v437_v18 = vunpack.c.l.bf16 %v535_v13  ;;  %v438_v19 = vunpack.c.h.bf16 %v535_v13  ;;  %v603_v23 = vld [vmem:[%s795_s2 + $0x18] sm:$0xff]   ;;  %v453_v26 = vunpack.c.l.bf16 %v539_v20  ;;  %v454_v27 = vunpack.c.h.bf16 %v539_v20  ;;  %v536_v28 = vld [vmem:[%s796_s0 + $0x10] sm:$0xff]   ;;  %v57_v29 = vld [vmem:[%s797_s1 + $0x20] sm:$0xff] }
   0x7   :  { %571 = vmatpush3.bf16.msra.mxu0 %v601_v1  ;;  %597 = vmatpush3.bf16.msra.mxu1 %v601_v1  ;;  %v77_v24 = vadd.f32 %v449_v11, %v61_v9  ;;  %v78_v25 = vadd.f32 %v450_v12, %v62_v10  ;;  %v85_v30 = vpack.c.bf16 %v70_v17, %v69_v16  ;;  %v441_v33 = vunpack.c.l.bf16 %v536_v28  ;;  %v58_v34 = vld [vmem:[%s797_s1 + $0x28] sm:$0xff]  ;;  %v540_v35 = vld [vmem:[%s796_s0 + $0x30] sm:$0xff]   ;;  %v65_v40 = vld [vmem:[%s797_s1 + $0x60] sm:$0xff] }
   0x8   :  { %572 = vmatprep.subr.bf16.mxu0 %v602_v2  ;;  %594 = vmatprep.subr.bf16.mxu1 %v602_v2  ;;  %v71_v31 = vadd.f32 %v437_v18, %v55_v14  ;;  %v72_v32 = vadd.f32 %v438_v19, %v56_v15  ;;  %v79_v37 = vadd.f32 %v453_v26, %v63_v21  ;;  %v442_v39 = vunpack.c.h.bf16 %v536_v28  ;;  %v66_v41 = vld [vmem:[%s797_s1 + $0x68] sm:$0xff]  ;;  %v537_v42 = vld [vmem:[%s796_s0 + $0x18] sm:$0xff]   ;;  %v59_v54 = vld [vmem:[%s797_s1 + $0x30] sm:$0xff] }
   0x9   :  { %v89_v36 = vpack.c.bf16 %v78_v25, %v77_v24  ;;  %v80_v38 = vadd.f32 %v454_v27, %v64_v22  ;;  %v73_v43 = vadd.f32 %v441_v33, %v57_v29  ;;  %v457_v44 = vunpack.c.l.bf16 %v540_v35  ;;  %v541_v46 = vld [vmem:[%s796_s0 + $0x38] sm:$0xff]   ;;  %576 = vmatprep.mubr.msk.bf16.mxu0 %vm132_vm0, %v85_v30  ;;  %v67_v60 = vld [vmem:[%s797_s1 + $0x70] sm:$0xff]  ;;  %v542_v4 = vld [vmem:[%s798_s4 + $0x8] sm:$0xff]  }
   0xa   :  { %v458_v45 = vunpack.c.h.bf16 %v540_v35  ;;  %v74_v47 = vadd.f32 %v442_v39, %v58_v34  ;;  %v86_v48 = vpack.c.bf16 %v72_v32, %v71_v31  ;;  %v445_v51 = vunpack.c.l.bf16 %v537_v42  ;;  %v60_v59 = vld [vmem:[%s797_s1 + $0x38] sm:$0xff]  ;;  %v546_v5 = vld [vmem:[%s798_s4 + $0x28] sm:$0xff]   ;;  %v464_v6 = vld [vmem:[%s798_s4] sm:$0xff]  }
   0xb   :  { %573 = vmatpush3.bf16.msra.mxu0 %v602_v2  ;;  %598 = vmatpush3.bf16.msra.mxu1 %v602_v2  ;;  %v81_v49 = vadd.f32 %v457_v44, %v65_v40  ;;  %v90_v52 = vpack.c.bf16 %v80_v38, %v79_v37  ;;  %v446_v53 = vunpack.c.h.bf16 %v537_v42  ;;  %v461_v55 = vunpack.c.l.bf16 %v541_v46  ;;  %v68_v61 = vld [vmem:[%s797_s1 + $0x78] sm:$0xff]  ;;  %v545_v7 = vld [vmem:[%s798_s4 + $0x20] sm:$0xff]   ;;  %v543_v39 = vld [vmem:[%s798_s4 + $0x10] sm:$0xff]  }
   0xc   :  { %574 = vmatprep.subr.bf16.mxu0 %v603_v23  ;;  %595 = vmatprep.subr.bf16.mxu1 %v603_v23  ;;  %v82_v50 = vadd.f32 %v458_v45, %v66_v41  ;;  %v462_v56 = vunpack.c.h.bf16 %v541_v46  ;;  %v87_v57 = vpack.c.bf16 %v74_v47, %v73_v43  ;;  %v75_v62 = vadd.f32 %v445_v51, %v59_v54  ;;  %v741_v8 = vld [vmem:[%s799_s3] ss:$0 sm:$0xff]  ;;  %v544_v33 = vld [vmem:[%s798_s4 + $0x18] sm:$0xff]   ;;  %v547_v40 = vld [vmem:[%s798_s4 + $0x30] sm:$0xff]  }
   0xd   :  { %584 = vmatprep.mubr.msk.bf16.mxu1 %vm132_vm0, %v89_v36  ;;  %v76_v63 = vadd.f32 %v446_v53, %v60_v59  ;;  %v83_v0 = vadd.f32 %v461_v55, %v67_v60  ;;  %v469_v10 = vunpack.c.l.bf16 %v542_v4  ;;  %v485_v12 = vunpack.c.l.bf16 %v546_v5  ;;  %v548_v34 = vld [vmem:[%s798_s4 + $0x38] sm:$0xff]  }
   0xe   :  { %v91_v58 = vpack.c.bf16 %v82_v50, %v81_v49  ;;  %v84_v1 = vadd.f32 %v462_v56, %v68_v61  ;;  %v465_v13 = vunpack.c.l.bf16 %v464_v6  ;;  %v481_v14 = vunpack.c.l.bf16 %v545_v7 }
   0xf   :  { %575 = vmatpush3.bf16.msra.mxu0 %v603_v23  ;;  %599 = vmatpush3.bf16.msra.mxu1 %v603_v23  ;;  %v88_v2 = vpack.c.bf16 %v76_v63, %v75_v62  ;;  %v470_v19 = vunpack.c.h.bf16 %v542_v4  ;;  %v486_v20 = vunpack.c.h.bf16 %v546_v5  ;;  %v466_v25 = vunpack.c.h.bf16 %v464_v6 }
  0x10   :  { %v92_v3 = vpack.c.bf16 %v84_v1, %v83_v0  ;;  %v482_v26 = vunpack.c.h.bf16 %v545_v7  ;;  %v477_v47 = vunpack.c.l.bf16 %v544_v33  ;;  %v473_v53 = vunpack.c.l.bf16 %v543_v39 }
  0x11   :  { %v489_v54 = vunpack.c.l.bf16 %v547_v40  ;;  %v478_v59 = vunpack.c.h.bf16 %v544_v33  ;;  %v494_v60 = vunpack.c.h.bf16 %v548_v34  ;;  %v474_v1 = vunpack.c.h.bf16 %v543_v39 }
  0x12   :  { %577 = vmatmul.mubr.msk.bf16.vlgmr.msra.gmra.mrb[0].mxu0 %vm132_vm0, %v86_v48  ;;  %585 = vmatmul.mubr.msk.bf16.vlgmr.msra.gmra.mrb[0].mxu1 %vm132_vm0, %v90_v52  ;;  %v493_v48 = vunpack.c.l.bf16 %v548_v34 }
  0x13   :  { %580 = vmatprep.mubr.msk.bf16.mxu0 %vm132_vm0, %v87_v57  ;;  %588 = vmatprep.mubr.msk.bf16.mxu1 %vm132_vm0, %v91_v58 }
  0x1a   :  { %581 = vmatmul.mubr.msk.bf16.gmra.mrb[4].mxu0 %vm132_vm0, %v88_v2  ;;  %589 = vmatmul.mubr.msk.bf16.gmra.mrb[4].mxu1 %vm132_vm0, %v92_v3  ;;  %v490_v2 = vunpack.c.h.bf16 %v547_v40 }
  0xe5   :  { %v578_v9 = vpop.f32.mrb[0].mxu0  ;;  %v586_v11 = vpop.f32.mrb[0].mxu1 }
  0xe6   :  { %v200_v15 = vadd.f32 %v578_v9, %v741_v8  ;;  %v232_v16 = vadd.f32 %v586_v11, %v741_v8  ;;  %v191_v17 = vpop.f32.mrb[1].mxu0  ;;  %v223_v18 = vpop.f32.mrb[1].mxu1 }
  0xe7   :  { %v192_v21 = vadd.f32 %v741_v8, %v191_v17  ;;  %v224_v22 = vadd.f32 %v741_v8, %v223_v18  ;;  %v579_v23 = vpop.f32.mrb[2].mxu0  ;;  %v587_v24 = vpop.f32.mrb[2].mxu1 }
  0xe8   :  { %v203_v27 = vadd.f32 %v579_v23, %v741_v8  ;;  %v235_v28 = vadd.f32 %v587_v24, %v741_v8  ;;  %v194_v29 = vpop.f32.mrb[3].mxu0  ;;  %v226_v30 = vpop.f32.mrb[3].mxu1  ;;  %v288_v35 = vadd.f32 %v469_v10, %v200_v15  ;;  %v296_v36 = vadd.f32 %v485_v12, %v232_v16 }
  0xe9   :  { %v195_v31 = vadd.f32 %v741_v8, %v194_v29  ;;  %v227_v32 = vadd.f32 %v741_v8, %v226_v30  ;;  %v286_v41 = vadd.f32 %v465_v13, %v192_v21  ;;  %v294_v42 = vadd.f32 %v481_v14, %v224_v22 }
  0xea   :  { %v289_v37 = vadd.f32 %v470_v19, %v203_v27  ;;  %v297_v38 = vadd.f32 %v486_v20, %v235_v28 }
  0xeb   :  { %v287_v43 = vadd.f32 %v466_v25, %v195_v31  ;;  %v295_v44 = vadd.f32 %v482_v26, %v227_v32 }
  0xec   :  { %v503_v45 = vpack.c.bf16 %v289_v37, %v288_v35  ;;  %v523_v46 = vpack.c.bf16 %v297_v38, %v296_v36 }
  0xed   :  { %v498_v49 = vpack.c.bf16 %v287_v43, %v286_v41  ;;  %v518_v50 = vpack.c.bf16 %v295_v44, %v294_v42  ;;  %v582_v51 = vpop.f32.mrb[4].mxu0  ;;  %v590_v52 = vpop.f32.mrb[4].mxu1 }
  0xee   :  { %549 = vst [vmem:[%s800_s5 + $0x8] sm:$0xff] %v503_v45   ;;  %553 = vst [vmem:[%s800_s5 + $0x28] sm:$0xff] %v523_v46   ;;  %v216_v55 = vadd.f32 %v582_v51, %v741_v8  ;;  %v248_v56 = vadd.f32 %v590_v52, %v741_v8  ;;  %v207_v57 = vpop.f32.mrb[5].mxu0  ;;  %v239_v58 = vpop.f32.mrb[5].mxu1 }
  0xef   :  { %499 = vst [vmem:[%s800_s5] sm:$0xff] %v498_v49   ;;  %552 = vst [vmem:[%s800_s5 + $0x20] sm:$0xff] %v518_v50   ;;  %v208_v61 = vadd.f32 %v741_v8, %v207_v57  ;;  %v240_v62 = vadd.f32 %v741_v8, %v239_v58  ;;  %v583_v63 = vpop.f32.mrb[6].mxu0  ;;  %v591_v0 = vpop.f32.mrb[6].mxu1 }
  0xf0   :  { %v219_v3 = vadd.f32 %v583_v63, %v741_v8  ;;  %v251_v4 = vadd.f32 %v591_v0, %v741_v8  ;;  %v210_v5 = vpop.f32.mrb[7].mxu0  ;;  %v242_v6 = vpop.f32.mrb[7].mxu1  ;;  %v292_v10 = vadd.f32 %v477_v47, %v216_v55  ;;  %v300_v11 = vadd.f32 %v493_v48, %v248_v56 }
  0xf1   :  { %v211_v7 = vadd.f32 %v741_v8, %v210_v5  ;;  %v243_v9 = vadd.f32 %v741_v8, %v242_v6  ;;  %v290_v14 = vadd.f32 %v473_v53, %v208_v61  ;;  %v298_v15 = vadd.f32 %v489_v54, %v240_v62 }
  0xf2   :  { %v293_v12 = vadd.f32 %v478_v59, %v219_v3  ;;  %v301_v13 = vadd.f32 %v494_v60, %v251_v4 }
  0xf3   :  { %v291_v16 = vadd.f32 %v474_v1, %v211_v7  ;;  %v299_v17 = vadd.f32 %v490_v2, %v243_v9 }
  0xf4   :  { %v513_v18 = vpack.c.bf16 %v293_v12, %v292_v10  ;;  %v533_v19 = vpack.c.bf16 %v301_v13, %v300_v11 }
  0xf5   :  { %v508_v20 = vpack.c.bf16 %v291_v16, %v290_v14  ;;  %v528_v21 = vpack.c.bf16 %v299_v17, %v298_v15 }
  0xf6   :  { %551 = vst [vmem:[%s800_s5 + $0x18] sm:$0xff] %v513_v18   ;;  %555 = vst [vmem:[%s800_s5 + $0x38] sm:$0xff] %v533_v19  }
  0xf7   :  { %550 = vst [vmem:[%s800_s5 + $0x10] sm:$0xff] %v508_v20   ;;  %554 = vst [vmem:[%s800_s5 + $0x30] sm:$0xff] %v528_v21  }

// kernel: psa_forward.13
= control target key start
LH: loop header
LB: loop body
LE: loop exit
PB: predicated region body
PF: predicated region fallthrough
CT: control target
= control target key end

     0   :  { %s844_s1 = inlined_call_operand.vmem [shape: bf16[128,128], index: 1, kind: input, shape index: {}]   ;;  %s845_s0 = inlined_call_operand.vmem [shape: bf16[128,128], index: 0, kind: input, shape index: {}]   ;;  %s846_s2 = inlined_call_operand.vmem [shape: f32[1,128], index: 2, kind: input, shape index: {}]   ;;  %s847_s3 = inlined_call_operand.vmem [shape: bf16[128,128], index: 3, kind: output, shape index: {}]  }
   0x1   :  { %v587_v0 = vld [vmem:[%s844_s1] sm:$0xff]   ;;  %v588_v1 = vld [vmem:[%s844_s1 + $0x8] sm:$0xff]   ;;  %v589_v2 = vld [vmem:[%s844_s1 + $0x10] sm:$0xff]  }
   0x2   :  { %539 = vmatprep.subr.bf16.mxu0 %v587_v0  ;;  %571 = vmatprep.subr.bf16.mxu1 %v587_v0  ;;  %v590_v3 = vld [vmem:[%s844_s1 + $0x18] sm:$0xff]   ;;  %v595_v4 = vld [vmem:[%s845_s0] sm:$0xff]   ;;  %v592_v7 = vld [vmem:[%s844_s1 + $0x28] sm:$0xff]  }
   0x3   :  { %540 = vmatpush3.bf16.msra.mxu0 %v587_v0  ;;  %579 = vmatpush3.bf16.msra.mxu1 %v587_v0  ;;  %v596_v5 = vld [vmem:[%s845_s0 + $0x20] sm:$0xff]   ;;  %v593_v8 = vld [vmem:[%s844_s1 + $0x30] sm:$0xff]   ;;  %v594_v9 = vld [vmem:[%s844_s1 + $0x38] sm:$0xff]  }
   0x4   :  { %541 = vmatprep.subr.bf16.mxu0 %v588_v1  ;;  %572 = vmatprep.subr.bf16.mxu1 %v588_v1  ;;  %v591_v6 = vld [vmem:[%s844_s1 + $0x20] sm:$0xff]   ;;  %v597_v10 = vld [vmem:[%s845_s0 + $0x8] sm:$0xff]   ;;  %v599_v12 = vld [vmem:[%s845_s0 + $0x10] sm:$0xff]  }
   0x5   :  { %555 = vmatprep.mubr.bf16.mxu0 %v595_v4  ;;  %563 = vmatprep.mubr.bf16.mxu1 %v596_v5  ;;  %v598_v11 = vld [vmem:[%s845_s0 + $0x28] sm:$0xff]   ;;  %v600_v13 = vld [vmem:[%s845_s0 + $0x30] sm:$0xff]   ;;  %v601_v14 = vld [vmem:[%s845_s0 + $0x18] sm:$0xff]  }
   0x6   :  { %v602_v15 = vld [vmem:[%s845_s0 + $0x38] sm:$0xff]   ;;  %v738_v16 = vld [vmem:[%s846_s2] ss:$0 sm:$0xff] }
   0x7   :  { %542 = vmatpush3.bf16.msra.mxu0 %v588_v1  ;;  %580 = vmatpush3.bf16.msra.mxu1 %v588_v1 }
   0x8   :  { %543 = vmatprep.subr.bf16.mxu0 %v589_v2  ;;  %573 = vmatprep.subr.bf16.mxu1 %v589_v2 }
   0xb   :  { %544 = vmatpush3.bf16.msra.mxu0 %v589_v2  ;;  %581 = vmatpush3.bf16.msra.mxu1 %v589_v2 }
   0xc   :  { %545 = vmatprep.subr.bf16.mxu0 %v590_v3  ;;  %574 = vmatprep.subr.bf16.mxu1 %v590_v3 }
   0xf   :  { %546 = vmatpush3.bf16.msra.mxu0 %v590_v3  ;;  %582 = vmatpush3.bf16.msra.mxu1 %v590_v3 }
  0x10   :  { %547 = vmatprep.subr.bf16.mxu0 %v591_v6  ;;  %575 = vmatprep.subr.bf16.mxu1 %v591_v6 }
  0x13   :  { %548 = vmatpush3.bf16.msra.mxu0 %v591_v6  ;;  %583 = vmatpush3.bf16.msra.mxu1 %v591_v6 }
  0x14   :  { %549 = vmatprep.subr.bf16.mxu0 %v592_v7  ;;  %576 = vmatprep.subr.bf16.mxu1 %v592_v7 }
  0x17   :  { %550 = vmatpush3.bf16.msra.mxu0 %v592_v7  ;;  %584 = vmatpush3.bf16.msra.mxu1 %v592_v7 }
  0x18   :  { %551 = vmatprep.subr.bf16.mxu0 %v593_v8  ;;  %577 = vmatprep.subr.bf16.mxu1 %v593_v8 }
  0x1b   :  { %552 = vmatpush3.bf16.msra.mxu0 %v593_v8  ;;  %585 = vmatpush3.bf16.msra.mxu1 %v593_v8 }
  0x1c   :  { %553 = vmatprep.subr.bf16.mxu0 %v594_v9  ;;  %578 = vmatprep.subr.bf16.mxu1 %v594_v9 }
  0x1f   :  { %554 = vmatpush3.bf16.msra.mxu0 %v594_v9  ;;  %586 = vmatpush3.bf16.msra.mxu1 %v594_v9 }
  0x22   :  { %556 = vmatmul.mubr.bf16.vlgmr.msra.gmra.mrb[0].mxu0 %v597_v10  ;;  %564 = vmatmul.mubr.bf16.vlgmr.msra.gmra.mrb[0].mxu1 %v598_v11 }
  0x23   :  { %559 = vmatprep.mubr.bf16.mxu0 %v599_v12  ;;  %567 = vmatprep.mubr.bf16.mxu1 %v600_v13 }
  0x2a   :  { %560 = vmatmul.mubr.bf16.gmra.mrb[4].mxu0 %v601_v14  ;;  %568 = vmatmul.mubr.bf16.gmra.mrb[4].mxu1 %v602_v15 }
  0xf5   :  { %v557_v17 = vpop.f32.mrb[0].mxu0  ;;  %v565_v18 = vpop.f32.mrb[0].mxu1 }
  0xf6   :  { %v741_v19 = vadd.f32 %v557_v17, %v738_v16  ;;  %v744_v20 = vadd.f32 %v565_v18, %v738_v16  ;;  %v184_v21 = vpop.f32.mrb[1].mxu0  ;;  %v216_v22 = vpop.f32.mrb[1].mxu1 }
  0xf7   :  { %v747_v23 = vadd.f32 %v738_v16, %v184_v21  ;;  %v750_v24 = vadd.f32 %v738_v16, %v216_v22  ;;  %v558_v25 = vpop.f32.mrb[2].mxu0  ;;  %v566_v26 = vpop.f32.mrb[2].mxu1 }
  0xf8   :  { %v249_v27 = vsub.f32 0.0, %v741_v19  ;;  %v257_v28 = vsub.f32 0.0, %v744_v20  ;;  %v755_v29 = vadd.f32 %v558_v25, %v738_v16  ;;  %v758_v30 = vadd.f32 %v566_v26, %v738_v16  ;;  %v187_v31 = vpop.f32.mrb[3].mxu0  ;;  %v219_v32 = vpop.f32.mrb[3].mxu1 }
  0xf9   :  { %v247_v33 = vsub.f32 0.0, %v747_v23  ;;  %v255_v34 = vsub.f32 0.0, %v750_v24  ;;  %v763_v35 = vadd.f32 %v738_v16, %v187_v31  ;;  %v766_v36 = vadd.f32 %v738_v16, %v219_v32 }
  0xfa   :  { %v267_v37 = vmul.f32 1.442695, %v249_v27  ;;  %v283_v38 = vmul.f32 1.442695, %v257_v28  ;;  %v250_v39 = vsub.f32 0.0, %v755_v29  ;;  %v258_v40 = vsub.f32 0.0, %v758_v30 }
  0xfb   :  { %v263_v41 = vmul.f32 1.442695, %v247_v33  ;;  %v279_v42 = vmul.f32 1.442695, %v255_v34  ;;  %v248_v43 = vsub.f32 0.0, %v763_v35  ;;  %v256_v44 = vsub.f32 0.0, %v766_v36 }
  0xfc   :  { %603 = vpow2.f32 %v267_v37  ;;  %v269_v45 = vmul.f32 1.442695, %v250_v39  ;;  %v285_v46 = vmul.f32 1.442695, %v258_v40 }
  0xfd   :  { %605 = vpow2.f32 %v283_v38  ;;  %v561_v47 = vpop.f32.mrb[4].mxu0  ;;  %v569_v48 = vpop.f32.mrb[4].mxu1  ;;  %v265_v49 = vmul.f32 1.442695, %v248_v43  ;;  %v281_v54 = vmul.f32 1.442695, %v256_v44 }
  0xfe   :  { %607 = vpow2.f32 %v263_v41  ;;  %v773_v50 = vadd.f32 %v561_v47, %v738_v16  ;;  %v776_v51 = vadd.f32 %v569_v48, %v738_v16  ;;  %v200_v52 = vpop.f32.mrb[5].mxu0  ;;  %v232_v53 = vpop.f32.mrb[5].mxu1 }
  0xff   :  { %609 = vpow2.f32 %v279_v42  ;;  %v779_v55 = vadd.f32 %v738_v16, %v200_v52  ;;  %v562_v56 = vpop.f32.mrb[6].mxu0  ;;  %v570_v57 = vpop.f32.mrb[6].mxu1  ;;  %v789_v5 = vadd.f32 %v738_v16, %v232_v53 }
 0x100   :  { %611 = vpow2.f32 %v269_v45  ;;  %v253_v58 = vsub.f32 0.0, %v773_v50  ;;  %v261_v59 = vsub.f32 0.0, %v776_v51  ;;  %v784_v60 = vadd.f32 %v562_v56, %v738_v16  ;;  %v203_v61 = vpop.f32.mrb[7].mxu0  ;;  %v235_v62 = vpop.f32.mrb[7].mxu1 }
 0x101   :  { %613 = vpow2.f32 %v285_v46  ;;  %v251_v63 = vsub.f32 0.0, %v779_v55  ;;  %v259_v13 = vsub.f32 0.0, %v789_v5  ;;  %v793_v17 = vadd.f32 %v570_v57, %v738_v16 }
 0x102   :  { %615 = vpow2.f32 %v265_v49  ;;  %v275_v0 = vmul.f32 1.442695, %v253_v58  ;;  %v291_v1 = vmul.f32 1.442695, %v261_v59  ;;  %v254_v2 = vsub.f32 0.0, %v784_v60 }
 0x103   :  { %617 = vpow2.f32 %v281_v54  ;;  %v271_v3 = vmul.f32 1.442695, %v251_v63  ;;  %v796_v22 = vadd.f32 %v738_v16, %v203_v61  ;;  %v799_v27 = vadd.f32 %v738_v16, %v235_v62 }
 0x104   :  { %619 = vpow2.f32 %v275_v0  ;;  %v277_v4 = vmul.f32 1.442695, %v254_v2  ;;  %v287_v32 = vmul.f32 1.442695, %v259_v13  ;;  %v262_v37 = vsub.f32 0.0, %v793_v17 }
 0x105   :  { %621 = vpow2.f32 %v291_v1  ;;  %v252_v39 = vsub.f32 0.0, %v796_v22  ;;  %v260_v41 = vsub.f32 0.0, %v799_v27 }
 0x106   :  { %v604_v6 = vpop.eup %603  ;;  %623 = vpow2.f32 %v271_v3  ;;  %v293_v43 = vmul.f32 1.442695, %v262_v37 }
 0x107   :  { %v606_v7 = vpop.eup %605  ;;  %v297_v8 = vadd.f32 1.0, %v604_v6  ;;  %625 = vpow2.f32 %v277_v4  ;;  %v273_v46 = vmul.f32 1.442695, %v252_v39  ;;  %v289_v48 = vmul.f32 1.442695, %v260_v41 }
 0x108   :  { %v608_v9 = vpop.eup %607  ;;  %v305_v10 = vadd.f32 1.0, %v606_v7 }
 0x109   :  { %v610_v11 = vpop.eup %609  ;;  %627 = vrcp.f32 %v297_v8  ;;  %v295_v12 = vadd.f32 1.0, %v608_v9 }
 0x10a   :  { %v612_v14 = vpop.eup %611  ;;  %629 = vrcp.f32 %v305_v10  ;;  %v303_v15 = vadd.f32 1.0, %v610_v11 }
 0x10b   :  { %v614_v18 = vpop.eup %613  ;;  %631 = vrcp.f32 %v295_v12  ;;  %v298_v21 = vadd.f32 1.0, %v612_v14 }
 0x10c   :  { %v616_v25 = vpop.eup %615  ;;  %633 = vrcp.f32 %v303_v15  ;;  %v306_v26 = vadd.f32 1.0, %v614_v18 }
 0x10d   :  { %v618_v28 = vpop.eup %617  ;;  %635 = vrcp.f32 %v298_v21  ;;  %v296_v31 = vadd.f32 1.0, %v616_v25 }
 0x10e   :  { %v620_v33 = vpop.eup %619  ;;  %637 = vrcp.f32 %v306_v26  ;;  %v304_v34 = vadd.f32 1.0, %v618_v28 }
 0x10f   :  { %639 = vrcp.f32 %v296_v31  ;;  %v301_v38 = vadd.f32 1.0, %v620_v33  ;;  %v622_v40 = vpop.eup %621 }
 0x110   :  { %641 = vrcp.f32 %v304_v34  ;;  %v624_v42 = vpop.eup %623 }
 0x111   :  { %643 = vpow2.f32 %v287_v32  ;;  %v626_v16 = vpop.eup %625 }
 0x112   :  { %645 = vrcp.f32 %v301_v38  ;;  %v302_v45 = vadd.f32 1.0, %v626_v16 }
 0x113   :  { %v628_v44 = vpop.eup %627 }
 0x114   :  { %v630_v47 = vpop.eup %629  ;;  %647 = vrcp.f32 %v302_v45  ;;  %v329_v56 = vmul.f32 %v628_v44, %v741_v19 }
 0x115   :  { %v632_v49 = vpop.eup %631  ;;  %649 = vpow2.f32 %v293_v43  ;;  %v337_v59 = vmul.f32 %v630_v47, %v744_v20  ;;  %v309_v20 = vadd.f32 1.0, %v622_v40 }
 0x116   :  { %v634_v52 = vpop.eup %633  ;;  %651 = vpow2.f32 %v273_v46  ;;  %v327_v63 = vmul.f32 %v632_v49, %v747_v23 }
 0x117   :  { %v636_v53 = vpop.eup %635  ;;  %653 = vpow2.f32 %v289_v48  ;;  %v335_v3 = vmul.f32 %v634_v52, %v750_v24 }
 0x118   :  { %v638_v54 = vpop.eup %637  ;;  %v330_v57 = vmul.f32 %v636_v53, %v755_v29  ;;  %655 = vrcp.f32 %v309_v20 }
 0x119   :  { %v640_v58 = vpop.eup %639  ;;  %v338_v61 = vmul.f32 %v638_v54, %v758_v30  ;;  %v299_v30 = vadd.f32 1.0, %v624_v42 }
 0x11a   :  { %v642_v62 = vpop.eup %641  ;;  %v484_v0 = vpack.c.bf16 %v330_v57, %v329_v56  ;;  %v328_v1 = vmul.f32 %v640_v58, %v763_v35 }
 0x11b   :  { %v644_v2 = vpop.eup %643  ;;  %v504_v4 = vpack.c.bf16 %v338_v61, %v337_v59  ;;  %v336_v19 = vmul.f32 %v642_v62, %v766_v36  ;;  %657 = vrcp.f32 %v299_v30 }
 0x11c   :  { %516 = vst [vmem:[%s847_s3 + $0x8] sm:$0xff] %v484_v0   ;;  %v479_v29 = vpack.c.bf16 %v328_v1, %v327_v63  ;;  %v646_v6 = vpop.eup %645  ;;  %v307_v24 = vadd.f32 1.0, %v644_v2 }
 0x11d   :  { %520 = vst [vmem:[%s847_s3 + $0x28] sm:$0xff] %v504_v4   ;;  %v499_v23 = vpack.c.bf16 %v336_v19, %v335_v3  ;;  %v333_v7 = vmul.f32 %v646_v6, %v773_v50 }
 0x11e   :  { %480 = vst [vmem:[%s847_s3] sm:$0xff] %v479_v29   ;;  %v648_v35 = vpop.eup %647  ;;  %659 = vrcp.f32 %v307_v24 }
 0x11f   :  { %519 = vst [vmem:[%s847_s3 + $0x20] sm:$0xff] %v499_v23   ;;  %v650_v36 = vpop.eup %649  ;;  %v334_v8 = vmul.f32 %v648_v35, %v784_v60 }
 0x120   :  { %v652_v9 = vpop.eup %651  ;;  %v310_v10 = vadd.f32 1.0, %v650_v36 }
 0x121   :  { %v654_v11 = vpop.eup %653  ;;  %v494_v12 = vpack.c.bf16 %v334_v8, %v333_v7  ;;  %v300_v13 = vadd.f32 1.0, %v652_v9 }
 0x122   :  { %661 = vrcp.f32 %v310_v10  ;;  %v308_v14 = vadd.f32 1.0, %v654_v11  ;;  %v656_v15 = vpop.eup %655 }
 0x123   :  { %518 = vst [vmem:[%s847_s3 + $0x18] sm:$0xff] %v494_v12   ;;  %663 = vrcp.f32 %v300_v13  ;;  %v341_v25 = vmul.f32 %v656_v15, %v776_v51 }
 0x124   :  { %665 = vrcp.f32 %v308_v14 }
 0x125   :  { %v658_v50 = vpop.eup %657 }
 0x126   :  { %v331_v31 = vmul.f32 %v658_v50, %v779_v55 }
 0x128   :  { %v660_v18 = vpop.eup %659 }
 0x129   :  { %v339_v33 = vmul.f32 %v660_v18, %v789_v5 }
 0x12c   :  { %v662_v21 = vpop.eup %661 }
 0x12d   :  { %v664_v60 = vpop.eup %663  ;;  %v342_v26 = vmul.f32 %v662_v21, %v793_v17 }
 0x12e   :  { %v666_v28 = vpop.eup %665  ;;  %v332_v32 = vmul.f32 %v664_v60, %v796_v22 }
 0x12f   :  { %v514_v34 = vpack.c.bf16 %v342_v26, %v341_v25  ;;  %v340_v37 = vmul.f32 %v666_v28, %v799_v27 }
 0x130   :  { %v489_v38 = vpack.c.bf16 %v332_v32, %v331_v31 }
 0x131   :  { %522 = vst [vmem:[%s847_s3 + $0x38] sm:$0xff] %v514_v34   ;;  %v509_v39 = vpack.c.bf16 %v340_v37, %v339_v33 }
 0x132   :  { %517 = vst [vmem:[%s847_s3 + $0x10] sm:$0xff] %v489_v38  }
 0x133   :  { %521 = vst [vmem:[%s847_s3 + $0x30] sm:$0xff] %v509_v39  }

// kernel: psa_forward.11
= control target key start
LH: loop header
LB: loop body
LE: loop exit
PB: predicated region body
PF: predicated region fallthrough
CT: control target
= control target key end

     0   :  { %s852_s12 = smov 0   ;;  %s1241_s0 = inlined_call_operand.vmem [shape: bf16[2,10,10,64], index: 0, kind: input, shape index: {}]   ;;  %s1242_s1 = inlined_call_operand.vmem [shape: f32[9,64], index: 1, kind: input, shape index: {}]   ;;  %s1243_s2 = inlined_call_operand.vmem [shape: f32[1,64], index: 2, kind: input, shape index: {}]   ;;  %s1244_s3 = inlined_call_operand.vmem [shape: f32[2,8,8,64], index: 3, kind: output, shape index: {}]  }
   0x1 LB: > { %s802_s13 = sadd.s32 4294967295, %s830_s12   ;;  %p806_p0 = scmp.ge.s32.totalorder %s830_s12, 1  ;;  %s830_s12 = sphi %s852_s12, %s13_s12  }
   0x2   : > { %p137_p1 = scmp.lt.s32.totalorder %s830_s12, 3 }
   0x4   : > { %p138_p2 = pnand %p806_p0, %p137_p1 }
   0x5   : > { %p161_p3 = scmp.lt.s32.totalorder (!%p138_p2), %s802_s13, 1  ;;  %v213_v0 = vlaneseq (!%p138_p2)  ;;  %v211_v2 = vld [vmem:[%s1242_s1] sm:$0xff] (!%p138_p2)  ;;  %vm261_vm0 = vcmask (!%p138_p2), 1046528   ;;  %vm338_vm1 = vcmask (!%p138_p2), 1045504   ;;  %v913_v45 = vld [vmem:[%s1242_s1 + $0x8] ss:$0 sm:$0xff] (!%p138_p2) }
   0x6   : > { %141 = sbr.rel (%p138_p2) target bundleno = 119 (0x77), region = 32  ;;  %vm738_vm2 = vcmask (!%p138_p2), 523264  }
   0x7   : > { %v214_v1 = vshrl.u32 (!%p138_p2), %v213_v0, 7 }
   0x9   : > { %v215_v3 = vsub.s32 (!%p138_p2), 0, %v214_v1  ;;  %v227_v4 = vsub.s32 (!%p138_p2), 1, %v214_v1  ;;  %v304_v5 = vsub.s32 (!%p138_p2), 2, %v214_v1  ;;  %v381_v6 = vsub.s32 (!%p138_p2), 3, %v214_v1 }
   0xa   : > { %v401_v7 = vsub.s32 (!%p138_p2), 4, %v214_v1  ;;  %v477_v8 = vsub.s32 (!%p138_p2), 5, %v214_v1  ;;  %v553_v9 = vsub.s32 (!%p138_p2), 6, %v214_v1  ;;  %v573_v10 = vsub.s32 (!%p138_p2), 7, %v214_v1 }
   0xb   : > { %v871_v11 = vrot.slane (!%p138_p2), %v211_v2, %v215_v3  ;;  %v873_v12 = vrot.slane (!%p138_p2), %v211_v2, %v227_v4  ;;  %v875_v13 = vrot.slane (!%p138_p2), %v211_v2, %v304_v5  ;;  %v877_v14 = vrot.slane (!%p138_p2), %v211_v2, %v381_v6 }
   0xc   : > { %v882_v18 = vrot.slane (!%p138_p2), %v211_v2, %v401_v7  ;;  %v884_v19 = vrot.slane (!%p138_p2), %v211_v2, %v477_v8  ;;  %v886_v20 = vrot.slane (!%p138_p2), %v211_v2, %v553_v9  ;;  %v888_v21 = vrot.slane (!%p138_p2), %v211_v2, %v573_v10 }
   0xd   : > { %s1246_s13 = smov (!%p161_p3, %s802_s13), 1 }
   0xe   : > { %s815_s16 = smul.u32 80, %s1246_s13  ;;  %s814_s22 = sshll.u32 %s1246_s13, 6 }
   0xf   : > { %s979_s27 = scalar_lea.vmem %s1244_s3, %s814_s22 }
  0x10   : > { %s869_s19 = scalar_lea.vmem %s1241_s0, %s815_s16 }
  0x11   : > { %v171_v15 = vld [vmem:[%s869_s19] ss:$8 sps:$4 sm:$0xff]   ;;  %v172_v16 = vld [vmem:[%s869_s19 + $0x4] sm:$0x1]  ;;  %v174_v17 = vld [vmem:[%s869_s19 + $0xc] sm:$0x1] }
  0x12   : > { %v175_v22 = vld [vmem:[%s869_s19 + $0x10] ss:$8 sps:$4 sm:$0xff]   ;;  %v176_v23 = vld [vmem:[%s869_s19 + $0x14] sm:$0x1]  ;;  %v191_v24 = vunpack.c.l.bf16 %v171_v15  ;;  %v192_v25 = vunpack.c.l.bf16 %v172_v16  ;;  %v193_v26 = vunpack.c.h.bf16 %v171_v15  ;;  %v194_v27 = vunpack.c.l.bf16 %v174_v17  ;;  %v178_v28 = vld [vmem:[%s869_s19 + $0x1c] sm:$0x1] }
  0x13   : > { %v893_v29 = vunpack.c.l.bf16 %v175_v22  ;;  %v895_v30 = vunpack.c.l.bf16 %v176_v23  ;;  %v897_v31 = vunpack.c.h.bf16 %v175_v22  ;;  %v899_v32 = vunpack.c.l.bf16 %v178_v28 }
  0x14   : > { %v217_v33 = vmul.f32 %v871_v11, %v191_v24  ;;  %v229_v34 = vmul.f32 %v873_v12, %v191_v24  ;;  %v230_v35 = vmul.f32 %v873_v12, %v192_v25  ;;  %v306_v36 = vmul.f32 %v875_v13, %v191_v24 }
  0x15   : > { %v307_v37 = vmul.f32 %v875_v13, %v192_v25  ;;  %v383_v38 = vmul.f32 %v877_v14, %v193_v26  ;;  %v403_v39 = vmul.f32 %v882_v18, %v193_v26  ;;  %v404_v40 = vmul.f32 %v882_v18, %v194_v27 }
  0x16   : > { %v262_v41 = vrot.slane %v229_v34, 1  ;;  %v263_v42 = vrot.slane %v230_v35, 1  ;;  %v339_v43 = vrot.slane %v306_v36, 2  ;;  %v479_v44 = vmul.f32 %v884_v19, %v193_v26 }
  0x17   : > { %v340_v46 = vrot.slane %v307_v37, 2  ;;  %v435_v47 = vrot.slane %v403_v39, 1  ;;  %v436_v48 = vrot.slane %v404_v40, 1  ;;  %v480_v49 = vmul.f32 %v884_v19, %v194_v27 }
  0x18   : > { %v264_v50 = vsel %vm261_vm0, %v262_v41, %v263_v42  ;;  %v511_v51 = vrot.slane %v479_v44, 2  ;;  %v555_v52 = vmul.f32 %v886_v20, %v893_v29  ;;  %v575_v53 = vmul.f32 %v888_v21, %v893_v29 }
  0x19   : > { %v294_v54 = vadd.f32 %v264_v50, %v217_v33  ;;  %v341_v55 = vsel %vm338_vm1, %v339_v43, %v340_v46  ;;  %v437_v56 = vsel %vm261_vm0, %v435_v47, %v436_v48  ;;  %v512_v57 = vrot.slane %v480_v49, 2  ;;  %v179_v47 = vld [vmem:[%s869_s19 + $0x20] ss:$8 sps:$4 sm:$0xff]   ;;  %v180_v48 = vld [vmem:[%s869_s19 + $0x24] sm:$0x1] }
  0x1a   : > { %v576_v58 = vmul.f32 %v888_v21, %v895_v30  ;;  %v607_v59 = vrot.slane %v575_v53, 1  ;;  %v651_v60 = vmul.f32 %v913_v45, %v893_v29  ;;  %v652_v61 = vmul.f32 %v913_v45, %v895_v30 }
  0x1b   : > { %v371_v62 = vadd.f32 %v341_v55, %v294_v54  ;;  %v513_v63 = vsel %vm338_vm1, %v511_v51, %v512_v57  ;;  %v218_v0 = vmul.f32 %v871_v11, %v193_v26  ;;  %v231_v1 = vmul.f32 %v873_v12, %v193_v26  ;;  %v967_v57 = vld [vmem:[%s1243_s2] ss:$0 sm:$0xff] }
  0x1c   : > { %v608_v2 = vrot.slane %v576_v58, 1  ;;  %v683_v3 = vrot.slane %v651_v60, 2  ;;  %v684_v4 = vrot.slane %v652_v61, 2  ;;  %v232_v5 = vmul.f32 %v873_v12, %v194_v27 }
  0x1d   : > { %v391_v6 = vadd.f32 %v383_v38, %v371_v62  ;;  %v265_v7 = vrot.slane %v231_v1, 1  ;;  %v308_v8 = vmul.f32 %v875_v13, %v193_v26  ;;  %v309_v9 = vmul.f32 %v875_v13, %v194_v27 }
  0x1e   : > { %v609_v10 = vsel %vm261_vm0, %v607_v59, %v608_v2  ;;  %v685_v15 = vsel %vm338_vm1, %v683_v3, %v684_v4  ;;  %v266_v16 = vrot.slane %v232_v5, 1  ;;  %v384_v17 = vmul.f32 %v877_v14, %v893_v29 }
  0x1f   : > { %v467_v22 = vadd.f32 %v437_v56, %v391_v6  ;;  %v342_v23 = vrot.slane %v308_v8, 2  ;;  %v343_v24 = vrot.slane %v309_v9, 2  ;;  %v405_v25 = vmul.f32 %v882_v18, %v893_v29 }
  0x20   : > { %v267_v28 = vsel %vm261_vm0, %v265_v7, %v266_v16  ;;  %v406_v26 = vmul.f32 %v882_v18, %v895_v30  ;;  %v481_v27 = vmul.f32 %v884_v19, %v893_v29  ;;  %v482_v33 = vmul.f32 %v884_v19, %v895_v30 }
  0x21   : > { %v543_v34 = vadd.f32 %v513_v63, %v467_v22  ;;  %v295_v35 = vadd.f32 %v267_v28, %v218_v0  ;;  %v344_v36 = vsel %vm338_vm1, %v342_v23, %v343_v24  ;;  %v438_v37 = vrot.slane %v405_v25, 1 }
  0x22   : > { %v439_v38 = vrot.slane %v406_v26, 1  ;;  %v514_v39 = vrot.slane %v481_v27, 2  ;;  %v515_v40 = vrot.slane %v482_v33, 2  ;;  %v556_v41 = vmul.f32 %v886_v20, %v897_v31 }
  0x23   : > { %v563_v42 = vadd.f32 %v555_v52, %v543_v34  ;;  %v372_v43 = vadd.f32 %v344_v36, %v295_v35  ;;  %v577_v44 = vmul.f32 %v888_v21, %v897_v31  ;;  %v578_v46 = vmul.f32 %v888_v21, %v899_v32 }
  0x24   : > { %v440_v49 = vsel %vm261_vm0, %v438_v37, %v439_v38  ;;  %v516_v50 = vsel %vm338_vm1, %v514_v39, %v515_v40  ;;  %v653_v51 = vmul.f32 %v913_v45, %v897_v31  ;;  %v654_v53 = vmul.f32 %v913_v45, %v899_v32 }
  0x25   : > { %v639_v52 = vadd.f32 %v609_v10, %v563_v42  ;;  %v392_v54 = vadd.f32 %v384_v17, %v372_v43  ;;  %v610_v55 = vrot.slane %v577_v44, 1  ;;  %v611_v56 = vrot.slane %v578_v46, 1  ;;  %v182_v44 = vld [vmem:[%s869_s19 + $0x2c] sm:$0x1] }
  0x26   : > { %v686_v58 = vrot.slane %v653_v51, 2  ;;  %v687_v59 = vrot.slane %v654_v53, 2  ;;  %v969_v60 = vunpack.c.l.bf16 %v179_v47  ;;  %v971_v61 = vunpack.c.l.bf16 %v180_v48 }
  0x27   : > { %v715_v62 = vadd.f32 %v685_v15, %v639_v52  ;;  %v468_v63 = vadd.f32 %v440_v49, %v392_v54  ;;  %v612_v0 = vsel %vm261_vm0, %v610_v55, %v611_v56  ;;  %v219_v1 = vmul.f32 %v871_v11, %v893_v29 }
  0x28   : > { %v688_v2 = vsel %vm338_vm1, %v686_v58, %v687_v59  ;;  %v233_v3 = vmul.f32 %v873_v12, %v893_v29  ;;  %v234_v4 = vmul.f32 %v873_v12, %v895_v30  ;;  %v310_v5 = vmul.f32 %v875_v13, %v893_v29 }
  0x29   : > { %v730_v6 = vadd.f32 %v967_v57, %v715_v62  ;;  %v544_v7 = vadd.f32 %v516_v50, %v468_v63  ;;  %v311_v8 = vmul.f32 %v875_v13, %v895_v30  ;;  %v385_v9 = vmul.f32 %v877_v14, %v897_v31 }
  0x2a   : > { %v268_v10 = vrot.slane %v233_v3, 1  ;;  %v269_v15 = vrot.slane %v234_v4, 1  ;;  %v345_v16 = vrot.slane %v310_v5, 2  ;;  %v407_v17 = vmul.f32 %v882_v18, %v897_v31 }
  0x2b   : > { %739 = vst.msk [vmem:[%s979_s27] sm:$0xff] %vm738_vm2, %v730_v6  ;;  %v564_v22 = vadd.f32 %v556_v41, %v544_v7  ;;  %v346_v23 = vrot.slane %v311_v8, 2  ;;  %v408_v29 = vmul.f32 %v882_v18, %v899_v32  ;;  %v483_v24 = vmul.f32 %v884_v19, %v897_v31 }
  0x2c   : > { %v270_v30 = vsel %vm261_vm0, %v268_v10, %v269_v15  ;;  %v441_v25 = vrot.slane %v407_v17, 1  ;;  %v484_v28 = vmul.f32 %v884_v19, %v899_v32  ;;  %v557_v26 = vmul.f32 %v886_v20, %v969_v60 }
  0x2d   : > { %v640_v27 = vadd.f32 %v612_v0, %v564_v22  ;;  %v296_v33 = vadd.f32 %v270_v30, %v219_v1  ;;  %v347_v34 = vsel %vm338_vm1, %v345_v16, %v346_v23  ;;  %v442_v35 = vrot.slane %v408_v29, 1 }
  0x2e   : > { %v517_v36 = vrot.slane %v483_v24, 2  ;;  %v518_v37 = vrot.slane %v484_v28, 2  ;;  %v579_v38 = vmul.f32 %v888_v21, %v969_v60  ;;  %v580_v39 = vmul.f32 %v888_v21, %v971_v61 }
  0x2f   : > { %v716_v40 = vadd.f32 %v688_v2, %v640_v27  ;;  %v373_v41 = vadd.f32 %v347_v34, %v296_v33  ;;  %v443_v42 = vsel %vm261_vm0, %v441_v25, %v442_v35  ;;  %v655_v43 = vmul.f32 %v913_v45, %v969_v60  ;;  %v183_v33 = vld [vmem:[%s869_s19 + $0x30] ss:$8 sps:$4 sm:$0xff]  }
  0x30   : > { %v519_v46 = vsel %vm338_vm1, %v517_v36, %v518_v37  ;;  %v613_v48 = vrot.slane %v579_v38, 1  ;;  %v614_v49 = vrot.slane %v580_v39, 1  ;;  %v656_v50 = vmul.f32 %v913_v45, %v971_v61  ;;  %v184_v38 = vld [vmem:[%s869_s19 + $0x34] sm:$0x1] }
  0x31   : > { %v731_v51 = vadd.f32 %v967_v57, %v716_v40  ;;  %v393_v53 = vadd.f32 %v385_v9, %v373_v41  ;;  %v689_v52 = vrot.slane %v655_v43, 2  ;;  %v1019_v54 = vunpack.c.h.bf16 %v179_v47 }
  0x32   : > { %v615_v55 = vsel %vm261_vm0, %v613_v48, %v614_v49  ;;  %v690_v56 = vrot.slane %v656_v50, 2  ;;  %v1022_v58 = vunpack.c.l.bf16 %v182_v44  ;;  %v220_v59 = vmul.f32 %v871_v11, %v897_v31 }
  0x33   : > { %740 = vst.msk [vmem:[%s979_s27 + $0x8] sm:$0xff] %vm738_vm2, %v731_v51  ;;  %v469_v62 = vadd.f32 %v443_v42, %v393_v53  ;;  %v235_v63 = vmul.f32 %v873_v12, %v897_v31  ;;  %v236_v0 = vmul.f32 %v873_v12, %v899_v32  ;;  %v312_v47 = vmul.f32 %v875_v13, %v897_v31 }
  0x34   : > { %v691_v1 = vsel %vm338_vm1, %v689_v52, %v690_v56  ;;  %v313_v2 = vmul.f32 %v875_v13, %v899_v32  ;;  %v386_v3 = vmul.f32 %v877_v14, %v969_v60  ;;  %v409_v4 = vmul.f32 %v882_v18, %v969_v60 }
  0x35   : > { %v545_v5 = vadd.f32 %v519_v46, %v469_v62  ;;  %v271_v6 = vrot.slane %v235_v63, 1  ;;  %v272_v7 = vrot.slane %v236_v0, 1  ;;  %v348_v8 = vrot.slane %v312_v47, 2 }
  0x36   : > { %v349_v9 = vrot.slane %v313_v2, 2  ;;  %v410_v31 = vmul.f32 %v882_v18, %v971_v61  ;;  %v444_v10 = vrot.slane %v409_v4, 1  ;;  %v485_v15 = vmul.f32 %v884_v19, %v969_v60 }
  0x37   : > { %v565_v32 = vadd.f32 %v557_v26, %v545_v5  ;;  %v273_v16 = vsel %vm261_vm0, %v271_v6, %v272_v7  ;;  %v486_v17 = vmul.f32 %v884_v19, %v971_v61  ;;  %v558_v22 = vmul.f32 %v886_v20, %v1019_v54 }
  0x38   : > { %v297_v23 = vadd.f32 %v273_v16, %v220_v59  ;;  %v350_v29 = vsel %vm338_vm1, %v348_v8, %v349_v9  ;;  %v445_v24 = vrot.slane %v410_v31, 1  ;;  %v520_v30 = vrot.slane %v485_v15, 2 }
  0x39   : > { %v641_v25 = vadd.f32 %v615_v55, %v565_v32  ;;  %v521_v28 = vrot.slane %v486_v17, 2  ;;  %v581_v27 = vmul.f32 %v888_v21, %v1019_v54  ;;  %v582_v26 = vmul.f32 %v888_v21, %v1022_v58 }
  0x3a   : > { %v374_v34 = vadd.f32 %v350_v29, %v297_v23  ;;  %v446_v35 = vsel %vm261_vm0, %v444_v10, %v445_v24  ;;  %v657_v36 = vmul.f32 %v913_v45, %v1019_v54  ;;  %v658_v37 = vmul.f32 %v913_v45, %v1022_v58 }
  0x3b   : > { %v717_v39 = vadd.f32 %v691_v1, %v641_v25  ;;  %v522_v40 = vsel %vm338_vm1, %v520_v30, %v521_v28  ;;  %v616_v41 = vrot.slane %v581_v27, 1  ;;  %v617_v42 = vrot.slane %v582_v26, 1  ;;  %v186_v27 = vld [vmem:[%s869_s19 + $0x3c] sm:$0x1] }
  0x3c   : > { %v394_v43 = vadd.f32 %v386_v3, %v374_v34  ;;  %v692_v44 = vrot.slane %v657_v36, 2  ;;  %v693_v46 = vrot.slane %v658_v37, 2  ;;  %v1063_v48 = vunpack.c.l.bf16 %v183_v33 }
  0x3d   : > { %v732_v49 = vadd.f32 %v967_v57, %v717_v39  ;;  %v618_v50 = vsel %vm261_vm0, %v616_v41, %v617_v42  ;;  %v1067_v51 = vunpack.c.l.bf16 %v184_v38  ;;  %v221_v53 = vmul.f32 %v871_v11, %v969_v60 }
  0x3e   : > { %v470_v52 = vadd.f32 %v446_v35, %v394_v43  ;;  %v694_v55 = vsel %vm338_vm1, %v692_v44, %v693_v46  ;;  %v237_v56 = vmul.f32 %v873_v12, %v969_v60  ;;  %v238_v59 = vmul.f32 %v873_v12, %v971_v61 }
  0x3f   : > { %741 = vst.msk [vmem:[%s979_s27 + $0x10] sm:$0xff] %vm738_vm2, %v732_v49  ;;  %v314_v62 = vmul.f32 %v875_v13, %v969_v60  ;;  %v315_v63 = vmul.f32 %v875_v13, %v971_v61  ;;  %v387_v0 = vmul.f32 %v877_v14, %v1019_v54  ;;  %v411_v47 = vmul.f32 %v882_v18, %v1019_v54 }
  0x40   : > { %v546_v1 = vadd.f32 %v522_v40, %v470_v52  ;;  %v274_v2 = vrot.slane %v237_v56, 1  ;;  %v275_v3 = vrot.slane %v238_v59, 1  ;;  %v412_v4 = vmul.f32 %v882_v18, %v1022_v58 }
  0x41   : > { %v351_v5 = vrot.slane %v314_v62, 2  ;;  %v352_v6 = vrot.slane %v315_v63, 2  ;;  %v447_v7 = vrot.slane %v411_v47, 1  ;;  %v487_v60 = vmul.f32 %v884_v19, %v1019_v54 }
  0x42   : > { %v566_v8 = vadd.f32 %v558_v22, %v546_v1  ;;  %v276_v61 = vsel %vm261_vm0, %v274_v2, %v275_v3  ;;  %v448_v9 = vrot.slane %v412_v4, 1  ;;  %v488_v31 = vmul.f32 %v884_v19, %v1022_v58 }
  0x43   : > { %v298_v10 = vadd.f32 %v276_v61, %v221_v53  ;;  %v353_v15 = vsel %vm338_vm1, %v351_v5, %v352_v6  ;;  %v523_v32 = vrot.slane %v487_v60, 2  ;;  %v559_v16 = vmul.f32 %v886_v20, %v1063_v48 }
  0x44   : > { %v642_v17 = vadd.f32 %v618_v50, %v566_v8  ;;  %v449_v23 = vsel %vm261_vm0, %v447_v7, %v448_v9  ;;  %v524_v29 = vrot.slane %v488_v31, 2  ;;  %v583_v22 = vmul.f32 %v888_v21, %v1063_v48 }
  0x45   : > { %v375_v24 = vadd.f32 %v353_v15, %v298_v10  ;;  %v584_v30 = vmul.f32 %v888_v21, %v1067_v51  ;;  %v659_v25 = vmul.f32 %v913_v45, %v1063_v48  ;;  %v660_v28 = vmul.f32 %v913_v45, %v1067_v51  ;;  %v187_v10 = vld [vmem:[%s869_s19 + $0x40] ss:$8 sps:$4 sm:$0xff]  }
  0x46   : > { %v718_v26 = vadd.f32 %v694_v55, %v642_v17  ;;  %v525_v34 = vsel %vm338_vm1, %v523_v32, %v524_v29  ;;  %v619_v35 = vrot.slane %v583_v22, 1  ;;  %v1107_v36 = vunpack.c.h.bf16 %v183_v33 }
  0x47   : > { %v395_v37 = vadd.f32 %v387_v0, %v375_v24  ;;  %v620_v38 = vrot.slane %v584_v30, 1  ;;  %v695_v39 = vrot.slane %v659_v25, 2  ;;  %v696_v40 = vrot.slane %v660_v28, 2 }
  0x48   : > { %v733_v41 = vadd.f32 %v967_v57, %v718_v26  ;;  %v1110_v42 = vunpack.c.l.bf16 %v186_v27  ;;  %v222_v43 = vmul.f32 %v871_v11, %v1019_v54  ;;  %v239_v44 = vmul.f32 %v873_v12, %v1019_v54 }
  0x49   : > { %v471_v46 = vadd.f32 %v449_v23, %v395_v37  ;;  %v621_v49 = vsel %vm261_vm0, %v619_v35, %v620_v38  ;;  %v697_v33 = vsel %vm338_vm1, %v695_v39, %v696_v40  ;;  %v240_v50 = vmul.f32 %v873_v12, %v1022_v58  ;;  %v188_v23 = vld [vmem:[%s869_s19 + $0x44] sm:$0x1] }
  0x4a   : > { %742 = vst.msk [vmem:[%s979_s27 + $0x18] sm:$0xff] %vm738_vm2, %v733_v41  ;;  %v277_v53 = vrot.slane %v239_v44, 1  ;;  %v316_v52 = vmul.f32 %v875_v13, %v1019_v54  ;;  %v317_v55 = vmul.f32 %v875_v13, %v1022_v58  ;;  %v388_v56 = vmul.f32 %v877_v14, %v1063_v48 }
  0x4b   : > { %v547_v59 = vadd.f32 %v525_v34, %v471_v46  ;;  %v278_v62 = vrot.slane %v240_v50, 1  ;;  %v413_v63 = vmul.f32 %v882_v18, %v1063_v48  ;;  %v414_v0 = vmul.f32 %v882_v18, %v1067_v51 }
  0x4c   : > { %v354_v47 = vrot.slane %v316_v52, 2  ;;  %v355_v1 = vrot.slane %v317_v55, 2  ;;  %v489_v54 = vmul.f32 %v884_v19, %v1063_v48  ;;  %v490_v58 = vmul.f32 %v884_v19, %v1067_v51 }
  0x4d   : > { %v567_v2 = vadd.f32 %v559_v16, %v547_v59  ;;  %v279_v3 = vsel %vm261_vm0, %v277_v53, %v278_v62  ;;  %v450_v4 = vrot.slane %v413_v63, 1  ;;  %v451_v5 = vrot.slane %v414_v0, 1 }
  0x4e   : > { %v299_v6 = vadd.f32 %v279_v3, %v222_v43  ;;  %v356_v7 = vsel %vm338_vm1, %v354_v47, %v355_v1  ;;  %v526_v60 = vrot.slane %v489_v54, 2  ;;  %v527_v8 = vrot.slane %v490_v58, 2 }
  0x4f   : > { %v643_v61 = vadd.f32 %v621_v49, %v567_v2  ;;  %v452_v9 = vsel %vm261_vm0, %v450_v4, %v451_v5  ;;  %v585_v31 = vmul.f32 %v888_v21, %v1107_v36  ;;  %v560_v32 = vmul.f32 %v886_v20, %v1107_v36 }
  0x50   : > { %v376_v15 = vadd.f32 %v356_v7, %v299_v6  ;;  %v586_v16 = vmul.f32 %v888_v21, %v1110_v42  ;;  %v661_v17 = vmul.f32 %v913_v45, %v1107_v36  ;;  %v528_v22 = vsel %vm338_vm1, %v526_v60, %v527_v8 }
  0x51   : > { %v719_v29 = vadd.f32 %v697_v33, %v643_v61  ;;  %v622_v24 = vrot.slane %v585_v31, 1  ;;  %v662_v30 = vmul.f32 %v913_v45, %v1110_v42  ;;  %v1152_v26 = vunpack.c.l.bf16 %v187_v10 }
  0x52   : > { %v396_v25 = vadd.f32 %v388_v56, %v376_v15  ;;  %v623_v28 = vrot.slane %v586_v16, 1  ;;  %v698_v27 = vrot.slane %v661_v17, 2  ;;  %v1155_v37 = vunpack.c.l.bf16 %v188_v23 }
  0x53   : > { %v734_v34 = vadd.f32 %v967_v57, %v719_v29  ;;  %v699_v35 = vrot.slane %v662_v30, 2  ;;  %v241_v38 = vmul.f32 %v873_v12, %v1063_v48  ;;  %v223_v40 = vmul.f32 %v871_v11, %v1063_v48 }
  0x54   : > { %v472_v39 = vadd.f32 %v452_v9, %v396_v25  ;;  %v242_v41 = vmul.f32 %v873_v12, %v1067_v51  ;;  %v318_v43 = vmul.f32 %v875_v13, %v1063_v48  ;;  %v624_v44 = vsel %vm261_vm0, %v622_v24, %v623_v28 }
  0x55   : > { %743 = vst.msk [vmem:[%s979_s27 + $0x20] sm:$0xff] %vm738_vm2, %v734_v34  ;;  %v700_v46 = vsel %vm338_vm1, %v698_v27, %v699_v35  ;;  %v280_v49 = vrot.slane %v241_v38, 1  ;;  %v319_v33 = vmul.f32 %v875_v13, %v1067_v51  ;;  %v415_v55 = vmul.f32 %v882_v18, %v1107_v36 }
  0x56   : > { %v548_v50 = vadd.f32 %v528_v22, %v472_v39  ;;  %v281_v53 = vrot.slane %v242_v41, 1  ;;  %v357_v52 = vrot.slane %v318_v43, 2  ;;  %v416_v48 = vmul.f32 %v882_v18, %v1110_v42 }
  0x57   : > { %v358_v56 = vrot.slane %v319_v33, 2  ;;  %v491_v59 = vmul.f32 %v884_v19, %v1107_v36  ;;  %v492_v62 = vmul.f32 %v884_v19, %v1110_v42  ;;  %v389_v51 = vmul.f32 %v877_v14, %v1107_v36 }
  0x58   : > { %v568_v63 = vadd.f32 %v560_v32, %v548_v50  ;;  %v282_v0 = vsel %vm261_vm0, %v280_v49, %v281_v53  ;;  %v453_v47 = vrot.slane %v415_v55, 1  ;;  %v454_v58 = vrot.slane %v416_v48, 1  ;;  %v190_v32 = vld [vmem:[%s869_s19 + $0x4c] sm:$0x1] }
  0x59   : > { %v300_v1 = vadd.f32 %v282_v0, %v223_v40  ;;  %v359_v54 = vsel %vm338_vm1, %v357_v52, %v358_v56  ;;  %v529_v2 = vrot.slane %v491_v59, 2  ;;  %v530_v4 = vrot.slane %v492_v62, 2 }
  0x5a   : > { %v644_v3 = vadd.f32 %v624_v44, %v568_v63  ;;  %v587_v5 = vmul.f32 %v888_v21, %v1152_v26  ;;  %v588_v6 = vmul.f32 %v888_v21, %v1155_v37  ;;  %v663_v60 = vmul.f32 %v913_v45, %v1152_v26 }
  0x5b   : > { %v377_v7 = vadd.f32 %v359_v54, %v300_v1  ;;  %v664_v8 = vmul.f32 %v913_v45, %v1155_v37  ;;  %v455_v9 = vsel %vm261_vm0, %v453_v47, %v454_v58  ;;  %v531_v17 = vsel %vm338_vm1, %v529_v2, %v530_v4 }
  0x5c   : > { %v720_v61 = vadd.f32 %v700_v46, %v644_v3  ;;  %v625_v31 = vrot.slane %v587_v5, 1  ;;  %v626_v15 = vrot.slane %v588_v6, 1  ;;  %v561_v23 = vmul.f32 %v886_v20, %v1152_v26 }
  0x5d   : > { %v397_v16 = vadd.f32 %v389_v51, %v377_v7  ;;  %v701_v29 = vrot.slane %v663_v60, 2  ;;  %v702_v30 = vrot.slane %v664_v8, 2  ;;  %v209_v25 = vunpack.c.h.bf16 %v187_v10 }
  0x5e   : > { %v735_v22 = vadd.f32 %v967_v57, %v720_v61  ;;  %v627_v24 = vsel %vm261_vm0, %v625_v31, %v626_v15  ;;  %v210_v27 = vunpack.c.l.bf16 %v190_v32  ;;  %v243_v34 = vmul.f32 %v873_v12, %v1107_v36 }
  0x5f   : > { %v473_v28 = vadd.f32 %v455_v9, %v397_v16  ;;  %v244_v35 = vmul.f32 %v873_v12, %v1110_v42  ;;  %v224_v38 = vmul.f32 %v871_v11, %v1107_v36  ;;  %v320_v39 = vmul.f32 %v875_v13, %v1107_v36 }
  0x60   : > { %744 = vst.msk [vmem:[%s979_s27 + $0x28] sm:$0xff] %vm738_vm2, %v735_v22  ;;  %v321_v40 = vmul.f32 %v875_v13, %v1110_v42  ;;  %v417_v10 = vmul.f32 %v882_v18, %v1152_v26  ;;  %v283_v43 = vrot.slane %v243_v34, 1  ;;  %v418_v12 = vmul.f32 %v882_v18, %v1155_v37 }
  0x61   : > { %v549_v41 = vadd.f32 %v531_v17, %v473_v28  ;;  %v284_v44 = vrot.slane %v244_v35, 1  ;;  %v360_v46 = vrot.slane %v320_v39, 2  ;;  %v493_v11 = vmul.f32 %v884_v19, %v1152_v26 }
  0x62   : > { %v361_v49 = vrot.slane %v321_v40, 2  ;;  %v456_v33 = vrot.slane %v417_v10, 1  ;;  %v457_v53 = vrot.slane %v418_v12, 1  ;;  %v494_v13 = vmul.f32 %v884_v19, %v1155_v37 }
  0x63   : > { %v569_v50 = vadd.f32 %v561_v23, %v549_v41  ;;  %v285_v36 = vsel %vm261_vm0, %v283_v43, %v284_v44  ;;  %v703_v42 = vsel %vm338_vm1, %v701_v29, %v702_v30  ;;  %v390_v18 = vmul.f32 %v877_v14, %v1152_v26 }
  0x64   : > { %v301_v52 = vadd.f32 %v285_v36, %v224_v38  ;;  %v362_v55 = vsel %vm338_vm1, %v360_v46, %v361_v49  ;;  %v532_v48 = vrot.slane %v493_v11, 2  ;;  %v533_v59 = vrot.slane %v494_v13, 2 }
  0x65   : > { %v645_v56 = vadd.f32 %v627_v24, %v569_v50  ;;  %v589_v62 = vmul.f32 %v888_v21, %v209_v25  ;;  %v590_v0 = vmul.f32 %v888_v21, %v210_v27  ;;  %v458_v19 = vsel %vm261_vm0, %v456_v33, %v457_v53 }
  0x66   : > { %v378_v63 = vadd.f32 %v362_v55, %v301_v52  ;;  %v665_v37 = vmul.f32 %v913_v45, %v209_v25  ;;  %v666_v47 = vmul.f32 %v913_v45, %v210_v27  ;;  %v534_v14 = vsel %vm338_vm1, %v532_v48, %v533_v59 }
  0x67   : > { %v721_v51 = vadd.f32 %v703_v42, %v645_v56  ;;  %v628_v26 = vrot.slane %v589_v62, 1  ;;  %v629_v58 = vrot.slane %v590_v0, 1  ;;  %v562_v3 = vmul.f32 %v886_v20, %v209_v25 }
  0x68   : > { %v398_v1 = vadd.f32 %v390_v18, %v378_v63  ;;  %v704_v21 = vrot.slane %v665_v37, 2  ;;  %v705_v4 = vrot.slane %v666_v47, 2 }
  0x69   : > { %v736_v54 = vadd.f32 %v967_v57, %v721_v51  ;;  %v630_v6 = vsel %vm261_vm0, %v628_v26, %v629_v58 }
  0x6a   : > { %v474_v2 = vadd.f32 %v458_v19, %v398_v1  ;;  %v706_v45 = vsel %vm338_vm1, %v704_v21, %v705_v4 }
  0x6b   : > { %745 = vst.msk [vmem:[%s979_s27 + $0x30] sm:$0xff] %vm738_vm2, %v736_v54 }
  0x6c   : > { %v550_v5 = vadd.f32 %v534_v14, %v474_v2 }
  0x6e   : > { %v570_v7 = vadd.f32 %v562_v3, %v550_v5 }
  0x70   : > { %v646_v60 = vadd.f32 %v630_v6, %v570_v7 }
  0x72   : > { %v722_v8 = vadd.f32 %v706_v45, %v646_v60 }
  0x74   : > { %v737_v61 = vadd.f32 %v967_v57, %v722_v8 }
  0x76   : > { %746 = vst.msk [vmem:[%s979_s27 + $0x38] sm:$0xff] %vm738_vm2, %v737_v61 }
  0x77 PF: > { %s13_s12 = sadd.s32 1, %s830_s12  }
  0x78   : > { %p10_p4 = scmp.ge.s32.totalorder %s13_s12, 4  }
  0x7a   :  { %12 = sbr.rel (!%p10_p4) target bundleno = 1 (0x1), region = 62 }

// kernel: psa_forward.14
= control target key start
LH: loop header
LB: loop body
LE: loop exit
PB: predicated region body
PF: predicated region fallthrough
CT: control target
= control target key end

     0   :  { %s739_s1 = inlined_call_operand.vmem [shape: bf16[128,128], index: 1, kind: input, shape index: {}]   ;;  %s740_s0 = inlined_call_operand.vmem [shape: bf16[128,128], index: 0, kind: input, shape index: {}]   ;;  %s741_s3 = inlined_call_operand.vmem [shape: bf16[128,128], index: 3, kind: input, shape index: {}]   ;;  %s742_s2 = inlined_call_operand.vmem [shape: f32[1,128], index: 2, kind: input, shape index: {}]   ;;  %s743_s4 = inlined_call_operand.vmem [shape: bf16[128,128], index: 4, kind: output, shape index: {}]  }
   0x1   :  { %v581_v0 = vld [vmem:[%s739_s1] sm:$0xff]   ;;  %v582_v1 = vld [vmem:[%s739_s1 + $0x8] sm:$0xff]   ;;  %v583_v2 = vld [vmem:[%s739_s1 + $0x10] sm:$0xff]  }
   0x2   :  { %533 = vmatprep.subr.bf16.mxu0 %v581_v0  ;;  %565 = vmatprep.subr.bf16.mxu1 %v581_v0  ;;  %v584_v3 = vld [vmem:[%s739_s1 + $0x18] sm:$0xff]   ;;  %v589_v4 = vld [vmem:[%s740_s0] sm:$0xff]   ;;  %v586_v7 = vld [vmem:[%s739_s1 + $0x28] sm:$0xff]  }
   0x3   :  { %534 = vmatpush3.bf16.msra.mxu0 %v581_v0  ;;  %573 = vmatpush3.bf16.msra.mxu1 %v581_v0  ;;  %v590_v5 = vld [vmem:[%s740_s0 + $0x20] sm:$0xff]   ;;  %v587_v8 = vld [vmem:[%s739_s1 + $0x30] sm:$0xff]   ;;  %v588_v9 = vld [vmem:[%s739_s1 + $0x38] sm:$0xff]  }
   0x4   :  { %535 = vmatprep.subr.bf16.mxu0 %v582_v1  ;;  %566 = vmatprep.subr.bf16.mxu1 %v582_v1  ;;  %v585_v6 = vld [vmem:[%s739_s1 + $0x20] sm:$0xff]   ;;  %v591_v10 = vld [vmem:[%s740_s0 + $0x8] sm:$0xff]   ;;  %v593_v12 = vld [vmem:[%s740_s0 + $0x10] sm:$0xff]  }
   0x5   :  { %549 = vmatprep.mubr.bf16.mxu0 %v589_v4  ;;  %557 = vmatprep.mubr.bf16.mxu1 %v590_v5  ;;  %v592_v11 = vld [vmem:[%s740_s0 + $0x28] sm:$0xff]   ;;  %v594_v13 = vld [vmem:[%s740_s0 + $0x30] sm:$0xff]   ;;  %v595_v14 = vld [vmem:[%s740_s0 + $0x18] sm:$0xff]  }
   0x6   :  { %v596_v15 = vld [vmem:[%s740_s0 + $0x38] sm:$0xff]   ;;  %v503_v16 = vld [vmem:[%s741_s3 + $0x8] sm:$0xff]   ;;  %v432_v18 = vld [vmem:[%s741_s3] sm:$0xff]  }
   0x7   :  { %536 = vmatpush3.bf16.msra.mxu0 %v582_v1  ;;  %574 = vmatpush3.bf16.msra.mxu1 %v582_v1  ;;  %v507_v17 = vld [vmem:[%s741_s3 + $0x28] sm:$0xff]   ;;  %v506_v19 = vld [vmem:[%s741_s3 + $0x20] sm:$0xff]   ;;  %v437_v22 = vunpack.c.l.bf16 %v503_v16  ;;  %v433_v25 = vunpack.c.l.bf16 %v432_v18  ;;  %v438_v31 = vunpack.c.h.bf16 %v503_v16  ;;  %v434_v37 = vunpack.c.h.bf16 %v432_v18  ;;  %v505_v45 = vld [vmem:[%s741_s3 + $0x18] sm:$0xff]  }
   0x8   :  { %537 = vmatprep.subr.bf16.mxu0 %v583_v2  ;;  %567 = vmatprep.subr.bf16.mxu1 %v583_v2  ;;  %v685_v20 = vld [vmem:[%s742_s2] ss:$0 sm:$0xff]  ;;  %v453_v24 = vunpack.c.l.bf16 %v507_v17  ;;  %v449_v26 = vunpack.c.l.bf16 %v506_v19  ;;  %v454_v32 = vunpack.c.h.bf16 %v507_v17  ;;  %v450_v38 = vunpack.c.h.bf16 %v506_v19  ;;  %v509_v46 = vld [vmem:[%s741_s3 + $0x38] sm:$0xff]   ;;  %v504_v51 = vld [vmem:[%s741_s3 + $0x10] sm:$0xff]  }
   0x9   :  { %v508_v52 = vld [vmem:[%s741_s3 + $0x30] sm:$0xff]   ;;  %v445_v59 = vunpack.c.l.bf16 %v505_v45  ;;  %v461_v60 = vunpack.c.l.bf16 %v509_v46  ;;  %v441_v1 = vunpack.c.l.bf16 %v504_v51 }
   0xb   :  { %538 = vmatpush3.bf16.msra.mxu0 %v583_v2  ;;  %575 = vmatpush3.bf16.msra.mxu1 %v583_v2  ;;  %v457_v2 = vunpack.c.l.bf16 %v508_v52 }
   0xc   :  { %539 = vmatprep.subr.bf16.mxu0 %v584_v3  ;;  %568 = vmatprep.subr.bf16.mxu1 %v584_v3 }
   0xf   :  { %540 = vmatpush3.bf16.msra.mxu0 %v584_v3  ;;  %576 = vmatpush3.bf16.msra.mxu1 %v584_v3 }
  0x10   :  { %541 = vmatprep.subr.bf16.mxu0 %v585_v6  ;;  %569 = vmatprep.subr.bf16.mxu1 %v585_v6 }
  0x13   :  { %542 = vmatpush3.bf16.msra.mxu0 %v585_v6  ;;  %577 = vmatpush3.bf16.msra.mxu1 %v585_v6 }
  0x14   :  { %543 = vmatprep.subr.bf16.mxu0 %v586_v7  ;;  %570 = vmatprep.subr.bf16.mxu1 %v586_v7 }
  0x17   :  { %544 = vmatpush3.bf16.msra.mxu0 %v586_v7  ;;  %578 = vmatpush3.bf16.msra.mxu1 %v586_v7  ;;  %v446_v7 = vunpack.c.h.bf16 %v505_v45 }
  0x18   :  { %545 = vmatprep.subr.bf16.mxu0 %v587_v8  ;;  %571 = vmatprep.subr.bf16.mxu1 %v587_v8 }
  0x1b   :  { %546 = vmatpush3.bf16.msra.mxu0 %v587_v8  ;;  %579 = vmatpush3.bf16.msra.mxu1 %v587_v8  ;;  %v462_v8 = vunpack.c.h.bf16 %v509_v46 }
  0x1c   :  { %547 = vmatprep.subr.bf16.mxu0 %v588_v9  ;;  %572 = vmatprep.subr.bf16.mxu1 %v588_v9 }
  0x1f   :  { %548 = vmatpush3.bf16.msra.mxu0 %v588_v9  ;;  %580 = vmatpush3.bf16.msra.mxu1 %v588_v9 }
  0x22   :  { %550 = vmatmul.mubr.bf16.vlgmr.msra.gmra.mrb[0].mxu0 %v591_v10  ;;  %558 = vmatmul.mubr.bf16.vlgmr.msra.gmra.mrb[0].mxu1 %v592_v11 }
  0x23   :  { %553 = vmatprep.mubr.bf16.mxu0 %v593_v12  ;;  %561 = vmatprep.mubr.bf16.mxu1 %v594_v13  ;;  %v442_v13 = vunpack.c.h.bf16 %v504_v51 }
  0x2a   :  { %554 = vmatmul.mubr.bf16.gmra.mrb[4].mxu0 %v595_v14  ;;  %562 = vmatmul.mubr.bf16.gmra.mrb[4].mxu1 %v596_v15  ;;  %v458_v14 = vunpack.c.h.bf16 %v508_v52 }
  0xf5   :  { %v551_v21 = vpop.f32.mrb[0].mxu0  ;;  %v559_v23 = vpop.f32.mrb[0].mxu1 }
  0xf6   :  { %v196_v27 = vadd.f32 %v551_v21, %v685_v20  ;;  %v228_v28 = vadd.f32 %v559_v23, %v685_v20  ;;  %v187_v29 = vpop.f32.mrb[1].mxu0  ;;  %v219_v30 = vpop.f32.mrb[1].mxu1 }
  0xf7   :  { %v188_v33 = vadd.f32 %v685_v20, %v187_v29  ;;  %v220_v34 = vadd.f32 %v685_v20, %v219_v30  ;;  %v552_v35 = vpop.f32.mrb[2].mxu0  ;;  %v560_v36 = vpop.f32.mrb[2].mxu1 }
  0xf8   :  { %v199_v39 = vadd.f32 %v552_v35, %v685_v20  ;;  %v231_v40 = vadd.f32 %v560_v36, %v685_v20  ;;  %v190_v41 = vpop.f32.mrb[3].mxu0  ;;  %v222_v42 = vpop.f32.mrb[3].mxu1  ;;  %v284_v47 = vadd.f32 %v437_v22, %v196_v27  ;;  %v292_v48 = vadd.f32 %v453_v24, %v228_v28 }
  0xf9   :  { %v191_v43 = vadd.f32 %v685_v20, %v190_v41  ;;  %v223_v44 = vadd.f32 %v685_v20, %v222_v42  ;;  %v282_v53 = vadd.f32 %v433_v25, %v188_v33  ;;  %v290_v54 = vadd.f32 %v449_v26, %v220_v34 }
  0xfa   :  { %v285_v49 = vadd.f32 %v438_v31, %v199_v39  ;;  %v293_v50 = vadd.f32 %v454_v32, %v231_v40 }
  0xfb   :  { %v283_v55 = vadd.f32 %v434_v37, %v191_v43  ;;  %v291_v56 = vadd.f32 %v450_v38, %v223_v44 }
  0xfc   :  { %v471_v57 = vpack.c.bf16 %v285_v49, %v284_v47  ;;  %v491_v58 = vpack.c.bf16 %v293_v50, %v292_v48 }
  0xfd   :  { %v466_v61 = vpack.c.bf16 %v283_v55, %v282_v53  ;;  %v486_v62 = vpack.c.bf16 %v291_v56, %v290_v54  ;;  %v555_v63 = vpop.f32.mrb[4].mxu0  ;;  %v563_v0 = vpop.f32.mrb[4].mxu1 }
  0xfe   :  { %510 = vst [vmem:[%s743_s4 + $0x8] sm:$0xff] %v471_v57   ;;  %514 = vst [vmem:[%s743_s4 + $0x28] sm:$0xff] %v491_v58   ;;  %v212_v3 = vadd.f32 %v555_v63, %v685_v20  ;;  %v244_v4 = vadd.f32 %v563_v0, %v685_v20  ;;  %v203_v5 = vpop.f32.mrb[5].mxu0  ;;  %v235_v6 = vpop.f32.mrb[5].mxu1 }
  0xff   :  { %467 = vst [vmem:[%s743_s4] sm:$0xff] %v466_v61   ;;  %513 = vst [vmem:[%s743_s4 + $0x20] sm:$0xff] %v486_v62   ;;  %v204_v9 = vadd.f32 %v685_v20, %v203_v5  ;;  %v236_v10 = vadd.f32 %v685_v20, %v235_v6  ;;  %v556_v11 = vpop.f32.mrb[6].mxu0  ;;  %v564_v12 = vpop.f32.mrb[6].mxu1 }
 0x100   :  { %v215_v15 = vadd.f32 %v556_v11, %v685_v20  ;;  %v247_v16 = vadd.f32 %v564_v12, %v685_v20  ;;  %v206_v17 = vpop.f32.mrb[7].mxu0  ;;  %v238_v18 = vpop.f32.mrb[7].mxu1  ;;  %v288_v22 = vadd.f32 %v445_v59, %v212_v3  ;;  %v296_v23 = vadd.f32 %v461_v60, %v244_v4 }
 0x101   :  { %v207_v19 = vadd.f32 %v685_v20, %v206_v17  ;;  %v239_v21 = vadd.f32 %v685_v20, %v238_v18  ;;  %v286_v26 = vadd.f32 %v441_v1, %v204_v9  ;;  %v294_v27 = vadd.f32 %v457_v2, %v236_v10 }
 0x102   :  { %v289_v24 = vadd.f32 %v446_v7, %v215_v15  ;;  %v297_v25 = vadd.f32 %v462_v8, %v247_v16 }
 0x103   :  { %v287_v28 = vadd.f32 %v442_v13, %v207_v19  ;;  %v295_v29 = vadd.f32 %v458_v14, %v239_v21 }
 0x104   :  { %v481_v30 = vpack.c.bf16 %v289_v24, %v288_v22  ;;  %v501_v31 = vpack.c.bf16 %v297_v25, %v296_v23 }
 0x105   :  { %v476_v32 = vpack.c.bf16 %v287_v28, %v286_v26  ;;  %v496_v33 = vpack.c.bf16 %v295_v29, %v294_v27 }
 0x106   :  { %512 = vst [vmem:[%s743_s4 + $0x18] sm:$0xff] %v481_v30   ;;  %516 = vst [vmem:[%s743_s4 + $0x38] sm:$0xff] %v501_v31  }
 0x107   :  { %511 = vst [vmem:[%s743_s4 + $0x10] sm:$0xff] %v476_v32   ;;  %515 = vst [vmem:[%s743_s4 + $0x30] sm:$0xff] %v496_v33  }

// kernel: psa_forward.15
= control target key start
LH: loop header
LB: loop body
LE: loop exit
PB: predicated region body
PF: predicated region fallthrough
CT: control target
= control target key end

     0   :  { %s1117_s0 = inlined_call_operand.vmem [shape: bf16[128,128], index: 0, kind: input, shape index: {}]   ;;  %s1118_s1 = inlined_call_operand.vmem [shape: bf16[128,128], index: 1, kind: input, shape index: {}]   ;;  %s1119_s2 = inlined_call_operand.vmem [shape: bf16[128,128], index: 2, kind: input, shape index: {}]   ;;  %s1120_s3 = inlined_call_operand.vmem [shape: bf16[128,128], index: 3, kind: input, shape index: {}]   ;;  %s1121_s4 = inlined_call_operand.vmem [shape: f32[1,128], index: 4, kind: input, shape index: {}]   ;;  %s1122_s5 = inlined_call_operand.hbm [shape: f32[128,128], index: 5, kind: output, shape index: {}]  }
   0x1   :  { %v771_v0 = vld [vmem:[%s1120_s3] sm:$0xff]   ;;  %v773_v2 = vld [vmem:[%s1120_s3 + $0x8] sm:$0xff]   ;;  %v775_v4 = vld [vmem:[%s1120_s3 + $0x10] sm:$0xff]  }
   0x2   :  { %v772_v1 = vld [vmem:[%s1119_s2] sm:$0xff]   ;;  %688 = vmatprep.subr.bf16.mxu1 %v771_v0  ;;  %v774_v3 = vld [vmem:[%s1119_s2 + $0x8] sm:$0xff]   ;;  %v776_v5 = vld [vmem:[%s1119_s2 + $0x10] sm:$0xff]  }
   0x3   :  { %720 = vmatprep.subr.bf16.mxu0 %v772_v1  ;;  %689 = vmatpush3.bf16.msra.mxu1 %v771_v0  ;;  %v777_v6 = vld [vmem:[%s1120_s3 + $0x18] sm:$0xff]   ;;  %v779_v8 = vld [vmem:[%s1120_s3 + $0x20] sm:$0xff]   ;;  %v781_v10 = vld [vmem:[%s1120_s3 + $0x28] sm:$0xff]  }
   0x4   :  { %721 = vmatpush3.bf16.msra.mxu0 %v772_v1  ;;  %690 = vmatprep.subr.bf16.mxu1 %v773_v2  ;;  %v778_v7 = vld [vmem:[%s1119_s2 + $0x18] sm:$0xff]   ;;  %v780_v9 = vld [vmem:[%s1119_s2 + $0x20] sm:$0xff]   ;;  %v782_v11 = vld [vmem:[%s1119_s2 + $0x28] sm:$0xff]  }
   0x5   :  { %722 = vmatprep.subr.bf16.mxu0 %v774_v3  ;;  %v787_v12 = vld [vmem:[%s1118_s1] sm:$0xff]   ;;  %v783_v14 = vld [vmem:[%s1120_s3 + $0x30] sm:$0xff]   ;;  %v785_v16 = vld [vmem:[%s1120_s3 + $0x38] sm:$0xff]  }
   0x6   :  { %v788_v13 = vld [vmem:[%s1117_s0] sm:$0xff]   ;;  %704 = vmatprep.mubr.bf16.mxu1 %v787_v12  ;;  %v784_v15 = vld [vmem:[%s1119_s2 + $0x30] sm:$0xff]   ;;  %v786_v17 = vld [vmem:[%s1119_s2 + $0x38] sm:$0xff]  }
   0x7   :  { %691 = vmatpush3.bf16.msra.mxu1 %v773_v2  ;;  %736 = vmatprep.mubr.bf16.mxu0 %v788_v13  ;;  %v789_v18 = vld [vmem:[%s1118_s1 + $0x8] sm:$0xff]   ;;  %v791_v20 = vld [vmem:[%s1118_s1 + $0x10] sm:$0xff]  }
   0x8   :  { %723 = vmatpush3.bf16.msra.mxu0 %v774_v3  ;;  %692 = vmatprep.subr.bf16.mxu1 %v775_v4  ;;  %v790_v19 = vld [vmem:[%s1117_s0 + $0x8] sm:$0xff]   ;;  %v792_v21 = vld [vmem:[%s1117_s0 + $0x10] sm:$0xff]  }
   0x9   :  { %724 = vmatprep.subr.bf16.mxu0 %v776_v5 }
   0xb   :  { %693 = vmatpush3.bf16.msra.mxu1 %v775_v4 }
   0xc   :  { %725 = vmatpush3.bf16.msra.mxu0 %v776_v5  ;;  %694 = vmatprep.subr.bf16.mxu1 %v777_v6 }
   0xd   :  { %726 = vmatprep.subr.bf16.mxu0 %v778_v7 }
   0xf   :  { %695 = vmatpush3.bf16.msra.mxu1 %v777_v6 }
  0x10   :  { %727 = vmatpush3.bf16.msra.mxu0 %v778_v7  ;;  %696 = vmatprep.subr.bf16.mxu1 %v779_v8 }
  0x11   :  { %728 = vmatprep.subr.bf16.mxu0 %v780_v9 }
  0x13   :  { %697 = vmatpush3.bf16.msra.mxu1 %v779_v8 }
  0x14   :  { %729 = vmatpush3.bf16.msra.mxu0 %v780_v9  ;;  %698 = vmatprep.subr.bf16.mxu1 %v781_v10 }
  0x15   :  { %730 = vmatprep.subr.bf16.mxu0 %v782_v11 }
  0x17   :  { %699 = vmatpush3.bf16.msra.mxu1 %v781_v10 }
  0x18   :  { %731 = vmatpush3.bf16.msra.mxu0 %v782_v11  ;;  %700 = vmatprep.subr.bf16.mxu1 %v783_v14 }
  0x19   :  { %732 = vmatprep.subr.bf16.mxu0 %v784_v15 }
  0x1b   :  { %701 = vmatpush3.bf16.msra.mxu1 %v783_v14 }
  0x1c   :  { %733 = vmatpush3.bf16.msra.mxu0 %v784_v15  ;;  %702 = vmatprep.subr.bf16.mxu1 %v785_v16 }
  0x1d   :  { %734 = vmatprep.subr.bf16.mxu0 %v786_v17 }
  0x1f   :  { %703 = vmatpush3.bf16.msra.mxu1 %v785_v16 }
  0x20   :  { %735 = vmatpush3.bf16.msra.mxu0 %v786_v17 }
  0x21   :  { %10 = vsyncpa [#allocation3], 0  ;;  %v793_v22 = vld [vmem:[%s1118_s1 + $0x18] sm:$0xff]   ;;  %v795_v24 = vld [vmem:[%s1118_s1 + $0x20] sm:$0xff]  }
  0x22   :  { %705 = vmatmul.mubr.bf16.vlgmr.msra.gmra.mrb[0].mxu1 %v789_v18  ;;  %v794_v23 = vld [vmem:[%s1117_s0 + $0x18] sm:$0xff]   ;;  %v796_v25 = vld [vmem:[%s1117_s0 + $0x20] sm:$0xff]   ;;  %v797_v26 = vld [vmem:[%s1118_s1 + $0x28] sm:$0xff]  }
  0x23   :  { %737 = vmatmul.mubr.bf16.vlgmr.msra.gmra.mrb[0].mxu0 %v790_v19  ;;  %708 = vmatprep.mubr.bf16.mxu1 %v791_v20  ;;  %v798_v27 = vld [vmem:[%s1117_s0 + $0x28] sm:$0xff]   ;;  %v799_v28 = vld [vmem:[%s1118_s1 + $0x30] sm:$0xff]   ;;  %v801_v30 = vld [vmem:[%s1118_s1 + $0x38] sm:$0xff]  }
  0x24   :  { %740 = vmatprep.mubr.bf16.mxu0 %v792_v21  ;;  %v800_v29 = vld [vmem:[%s1117_s0 + $0x30] sm:$0xff]   ;;  %v802_v31 = vld [vmem:[%s1117_s0 + $0x38] sm:$0xff]   ;;  %v1023_v34 = vld [vmem:[%s1121_s4] ss:$0 sm:$0xff]  ;;  %s891_s0 = smov [#allocation2]  }
  0x25   :  { %s612_s1 = sshll.u32 %s891_s0, 4  ;;  %s613_s1 = int_to_ptr.vmem [resolvable:$true] %s612_s1 }
  0x26   :  { %s867_s4 = scalar_lea.vmem %s613_s1, 2048  ;;  %p872_p1 = scmp.lt.s32.totalorder %s613_s1, %s613_s1 }
  0x27   :  { %p868_p0 = scmp.ne.s32.totalorder %s613_s1, %s867_s4  ;;  %p873_p2 = scmp.lt.s32.totalorder %s867_s4, %s867_s4 }
  0x29   :  { %p874_p3 = por %p873_p2, %p872_p1 }
  0x2a   :  { %709 = vmatmul.mubr.bf16.gmra.mrb[4].mxu1 %v793_v22 }
  0x2b   :  { %741 = vmatmul.mubr.bf16.gmra.mrb[4].mxu0 %v794_v23  ;;  %712 = vmatprep.mubr.bf16.mxu1 %v795_v24  ;;  %p875_p4 = pnand %p874_p3, %p868_p0 }
  0x2c   :  { %744 = vmatprep.mubr.bf16.mxu0 %v796_v25 }
  0x32   :  { %713 = vmatmul.mubr.bf16.gmra.mrb[8].mxu1 %v797_v26 }
  0x33   :  { %745 = vmatmul.mubr.bf16.gmra.mrb[8].mxu0 %v798_v27  ;;  %716 = vmatprep.mubr.bf16.mxu1 %v799_v28 }
  0x34   :  { %748 = vmatprep.mubr.bf16.mxu0 %v800_v29 }
  0x3a   :  { %717 = vmatmul.mubr.bf16.gmra.mrb[12].mxu1 %v801_v30 }
  0x3b   :  { %749 = vmatmul.mubr.bf16.gmra.mrb[12].mxu0 %v802_v31 }
  0xf5   :  { %v706_v32 = vpop.f32.mrb[0].mxu1 }
  0xf6   :  { %v738_v33 = vpop.f32.mrb[0].mxu0  ;;  %v216_v35 = vpop.f32.mrb[1].mxu1 }
  0xf7   :  { %v418_v36 = vadd.f32 %v738_v33, %v706_v32  ;;  %v409_v37 = vpop.f32.mrb[1].mxu0  ;;  %v707_v38 = vpop.f32.mrb[2].mxu1 }
  0xf8   :  { %v410_v39 = vadd.f32 %v409_v37, %v216_v35  ;;  %v739_v40 = vpop.f32.mrb[2].mxu0  ;;  %v219_v41 = vpop.f32.mrb[3].mxu1 }
  0xf9   :  { %v1026_v42 = vadd.f32 %v1023_v34, %v418_v36  ;;  %v421_v43 = vadd.f32 %v739_v40, %v707_v38  ;;  %v412_v44 = vpop.f32.mrb[3].mxu0 }
  0xfa   :  { %v1029_v45 = vadd.f32 %v1023_v34, %v410_v39  ;;  %v413_v46 = vadd.f32 %v412_v44, %v219_v41 }
  0xfb   :  { %v497_v47 = vsub.f32 0.0, %v1026_v42  ;;  %v1033_v48 = vadd.f32 %v1023_v34, %v421_v43 }
  0xfc   :  { %v495_v49 = vsub.f32 0.0, %v1029_v45  ;;  %v1037_v50 = vadd.f32 %v1023_v34, %v413_v46 }
  0xfd   :  { %v515_v51 = vmul.f32 1.442695, %v497_v47  ;;  %v498_v52 = vsub.f32 0.0, %v1033_v48  ;;  %v710_v53 = vpop.f32.mrb[4].mxu1 }
  0xfe   :  { %v511_v54 = vmul.f32 1.442695, %v495_v49  ;;  %v496_v55 = vsub.f32 0.0, %v1037_v50  ;;  %v742_v56 = vpop.f32.mrb[4].mxu0  ;;  %v232_v57 = vpop.f32.mrb[5].mxu1 }
  0xff   :  { %803 = vpow2.f32 %v515_v51  ;;  %v517_v58 = vmul.f32 1.442695, %v498_v52  ;;  %v434_v59 = vadd.f32 %v742_v56, %v710_v53  ;;  %v425_v60 = vpop.f32.mrb[5].mxu0  ;;  %v711_v61 = vpop.f32.mrb[6].mxu1 }
 0x100   :  { %805 = vpow2.f32 %v511_v54  ;;  %v513_v62 = vmul.f32 1.442695, %v496_v55  ;;  %v426_v63 = vadd.f32 %v425_v60, %v232_v57  ;;  %v743_v0 = vpop.f32.mrb[6].mxu0  ;;  %v235_v1 = vpop.f32.mrb[7].mxu1 }
 0x101   :  { %807 = vpow2.f32 %v517_v58  ;;  %v1042_v2 = vadd.f32 %v1023_v34, %v434_v59  ;;  %v437_v3 = vadd.f32 %v743_v0, %v711_v61  ;;  %v428_v4 = vpop.f32.mrb[7].mxu0 }
 0x102   :  { %809 = vpow2.f32 %v513_v62  ;;  %v1045_v5 = vadd.f32 %v1023_v34, %v426_v63  ;;  %v429_v6 = vadd.f32 %v428_v4, %v235_v1 }
 0x103   :  { %v501_v7 = vsub.f32 0.0, %v1042_v2  ;;  %v1049_v8 = vadd.f32 %v1023_v34, %v437_v3 }
 0x104   :  { %v499_v9 = vsub.f32 0.0, %v1045_v5  ;;  %v1053_v10 = vadd.f32 %v1023_v34, %v429_v6 }
 0x105   :  { %v523_v11 = vmul.f32 1.442695, %v501_v7  ;;  %v502_v12 = vsub.f32 0.0, %v1049_v8  ;;  %v714_v13 = vpop.f32.mrb[8].mxu1 }
 0x106   :  { %v519_v14 = vmul.f32 1.442695, %v499_v9  ;;  %v500_v15 = vsub.f32 0.0, %v1053_v10  ;;  %v746_v16 = vpop.f32.mrb[8].mxu0  ;;  %v248_v17 = vpop.f32.mrb[9].mxu1 }
 0x107   :  { %811 = vpow2.f32 %v523_v11  ;;  %v525_v18 = vmul.f32 1.442695, %v502_v12  ;;  %v450_v19 = vadd.f32 %v746_v16, %v714_v13  ;;  %v441_v20 = vpop.f32.mrb[9].mxu0  ;;  %v715_v21 = vpop.f32.mrb[10].mxu1 }
 0x108   :  { %813 = vpow2.f32 %v519_v14  ;;  %v521_v22 = vmul.f32 1.442695, %v500_v15  ;;  %v442_v23 = vadd.f32 %v441_v20, %v248_v17  ;;  %v747_v24 = vpop.f32.mrb[10].mxu0  ;;  %v251_v25 = vpop.f32.mrb[11].mxu1 }
 0x109   :  { %v804_v26 = vpop.eup %803  ;;  %815 = vpow2.f32 %v525_v18  ;;  %v1058_v27 = vadd.f32 %v1023_v34, %v450_v19  ;;  %v453_v28 = vadd.f32 %v747_v24, %v715_v21  ;;  %v444_v29 = vpop.f32.mrb[11].mxu0 }
 0x10a   :  { %v806_v30 = vpop.eup %805  ;;  %v545_v31 = vadd.f32 1.0, %v804_v26  ;;  %817 = vpow2.f32 %v521_v22  ;;  %v1061_v32 = vadd.f32 %v1023_v34, %v442_v23  ;;  %v445_v33 = vadd.f32 %v444_v29, %v251_v25 }
 0x10b   :  { %v808_v35 = vpop.eup %807  ;;  %v543_v36 = vadd.f32 1.0, %v806_v30  ;;  %v505_v37 = vsub.f32 0.0, %v1058_v27  ;;  %v1065_v38 = vadd.f32 %v1023_v34, %v453_v28 }
 0x10c   :  { %v810_v39 = vpop.eup %809  ;;  %819 = vrcp.f32 %v545_v31  ;;  %v546_v40 = vadd.f32 1.0, %v808_v35  ;;  %v503_v41 = vsub.f32 0.0, %v1061_v32  ;;  %v1069_v43 = vadd.f32 %v1023_v34, %v445_v33 }
 0x10d   :  { %821 = vrcp.f32 %v543_v36  ;;  %v544_v44 = vadd.f32 1.0, %v810_v39  ;;  %v531_v46 = vmul.f32 1.442695, %v505_v37  ;;  %v506_v47 = vsub.f32 0.0, %v1065_v38  ;;  %v718_v49 = vpop.f32.mrb[12].mxu1 }
 0x10e   :  { %823 = vrcp.f32 %v546_v40  ;;  %v527_v51 = vmul.f32 1.442695, %v503_v41  ;;  %v504_v52 = vsub.f32 0.0, %v1069_v43  ;;  %v750_v53 = vpop.f32.mrb[12].mxu0  ;;  %v264_v54 = vpop.f32.mrb[13].mxu1 }
 0x10f   :  { %825 = vrcp.f32 %v544_v44  ;;  %v533_v55 = vmul.f32 1.442695, %v506_v47  ;;  %v466_v56 = vadd.f32 %v750_v53, %v718_v49  ;;  %v457_v57 = vpop.f32.mrb[13].mxu0  ;;  %v719_v58 = vpop.f32.mrb[14].mxu1 }
 0x110   :  { %827 = vpow2.f32 %v531_v46  ;;  %v529_v59 = vmul.f32 1.442695, %v504_v52  ;;  %v458_v60 = vadd.f32 %v457_v57, %v264_v54  ;;  %v751_v61 = vpop.f32.mrb[14].mxu0  ;;  %v267_v62 = vpop.f32.mrb[15].mxu1 }
 0x111   :  { %v812_v63 = vpop.eup %811  ;;  %829 = vpow2.f32 %v527_v51  ;;  %v1074_v0 = vadd.f32 %v1023_v34, %v466_v56  ;;  %v469_v1 = vadd.f32 %v751_v61, %v719_v58  ;;  %v460_v3 = vpop.f32.mrb[15].mxu0 }
 0x112   :  { %v814_v4 = vpop.eup %813  ;;  %v549_v6 = vadd.f32 1.0, %v812_v63  ;;  %831 = vpow2.f32 %v533_v55  ;;  %v1077_v7 = vadd.f32 %v1023_v34, %v458_v60  ;;  %v461_v9 = vadd.f32 %v460_v3, %v267_v62 }
 0x113   :  { %v816_v11 = vpop.eup %815  ;;  %v547_v12 = vadd.f32 1.0, %v814_v4  ;;  %833 = vpow2.f32 %v529_v59  ;;  %v509_v13 = vsub.f32 0.0, %v1074_v0  ;;  %v1081_v14 = vadd.f32 %v1023_v34, %v469_v1 }
 0x114   :  { %v818_v15 = vpop.eup %817  ;;  %835 = vrcp.f32 %v549_v6  ;;  %v550_v16 = vadd.f32 1.0, %v816_v11  ;;  %v507_v17 = vsub.f32 0.0, %v1077_v7  ;;  %v1085_v18 = vadd.f32 %v1023_v34, %v461_v9 }
 0x115   :  { %837 = vrcp.f32 %v547_v12  ;;  %v548_v19 = vadd.f32 1.0, %v818_v15  ;;  %v539_v20 = vmul.f32 1.442695, %v509_v13  ;;  %v510_v21 = vsub.f32 0.0, %v1081_v14 }
 0x116   :  { %v820_v22 = vpop.eup %819  ;;  %839 = vrcp.f32 %v550_v16  ;;  %v535_v23 = vmul.f32 1.442695, %v507_v17  ;;  %v508_v24 = vsub.f32 0.0, %v1085_v18 }
 0x117   :  { %v822_v25 = vpop.eup %821  ;;  %v577_v26 = vmul.f32 %v820_v22, %v1026_v42  ;;  %841 = vrcp.f32 %v548_v19  ;;  %v541_v28 = vmul.f32 1.442695, %v510_v21 }
 0x118   :  { %v824_v29 = vpop.eup %823  ;;  %v575_v30 = vmul.f32 %v822_v25, %v1029_v45  ;;  %843 = vpow2.f32 %v539_v20  ;;  %v537_v34 = vmul.f32 1.442695, %v508_v24 }
 0x119   :  { %v826_v31 = vpop.eup %825  ;;  %593 = vst [vmem:[#allocation2 + $0x10] sm:$0xff] %v577_v26  ;;  %v578_v33 = vmul.f32 %v824_v29, %v1033_v48  ;;  %845 = vpow2.f32 %v535_v23 }
 0x11a   :  { %v828_v35 = vpop.eup %827  ;;  %591 = vst [vmem:[#allocation2] sm:$0xff] %v575_v30  ;;  %v576_v36 = vmul.f32 %v826_v31, %v1037_v50  ;;  %847 = vpow2.f32 %v541_v28 }
 0x11b   :  { %v830_v37 = vpop.eup %829  ;;  %594 = vst [vmem:[#allocation2 + $0x18] sm:$0xff] %v578_v33  ;;  %v553_v42 = vadd.f32 1.0, %v828_v35  ;;  %849 = vpow2.f32 %v537_v34 }
 0x11c   :  { %v832_v39 = vpop.eup %831  ;;  %592 = vst [vmem:[#allocation2 + $0x8] sm:$0xff] %v576_v36  ;;  %v551_v40 = vadd.f32 1.0, %v830_v37 }
 0x11d   :  { %v834_v45 = vpop.eup %833  ;;  %851 = vrcp.f32 %v553_v42  ;;  %v554_v41 = vadd.f32 1.0, %v832_v39 }
 0x11e   :  { %v836_v44 = vpop.eup %835  ;;  %853 = vrcp.f32 %v551_v40  ;;  %v552_v46 = vadd.f32 1.0, %v834_v45 }
 0x11f   :  { %v838_v48 = vpop.eup %837  ;;  %v581_v47 = vmul.f32 %v836_v44, %v1042_v2  ;;  %855 = vrcp.f32 %v554_v41 }
 0x120   :  { %v840_v49 = vpop.eup %839  ;;  %v579_v50 = vmul.f32 %v838_v48, %v1045_v5  ;;  %857 = vrcp.f32 %v552_v46 }
 0x121   :  { %v842_v51 = vpop.eup %841  ;;  %597 = vst [vmem:[#allocation2 + $0x30] sm:$0xff] %v581_v47  ;;  %v582_v52 = vmul.f32 %v840_v49, %v1049_v8 }
 0x122   :  { %v844_v53 = vpop.eup %843  ;;  %595 = vst [vmem:[#allocation2 + $0x20] sm:$0xff] %v579_v50  ;;  %v580_v54 = vmul.f32 %v842_v51, %v1053_v10 }
 0x123   :  { %v846_v55 = vpop.eup %845  ;;  %598 = vst [vmem:[#allocation2 + $0x38] sm:$0xff] %v582_v52  ;;  %v557_v56 = vadd.f32 1.0, %v844_v53 }
 0x124   :  { %v848_v57 = vpop.eup %847  ;;  %596 = vst [vmem:[#allocation2 + $0x28] sm:$0xff] %v580_v54  ;;  %v555_v58 = vadd.f32 1.0, %v846_v55 }
 0x125   :  { %v850_v2 = vpop.eup %849  ;;  %859 = vrcp.f32 %v557_v56  ;;  %v558_v59 = vadd.f32 1.0, %v848_v57 }
 0x126   :  { %861 = vrcp.f32 %v555_v58  ;;  %v556_v5 = vadd.f32 1.0, %v850_v2 }
 0x127   :  { %v852_v60 = vpop.eup %851  ;;  %863 = vrcp.f32 %v558_v59 }
 0x128   :  { %v854_v61 = vpop.eup %853  ;;  %v585_v8 = vmul.f32 %v852_v60, %v1058_v27  ;;  %865 = vrcp.f32 %v556_v5 }
 0x129   :  { %v856_v62 = vpop.eup %855  ;;  %v583_v10 = vmul.f32 %v854_v61, %v1061_v32 }
 0x12a   :  { %v858_v63 = vpop.eup %857  ;;  %601 = vst [vmem:[#allocation2 + $0x50] sm:$0xff] %v585_v8  ;;  %v586_v1 = vmul.f32 %v856_v62, %v1065_v38 }
 0x12b   :  { %599 = vst [vmem:[#allocation2 + $0x40] sm:$0xff] %v583_v10  ;;  %v584_v3 = vmul.f32 %v858_v63, %v1069_v43 }
 0x12c   :  { %602 = vst [vmem:[#allocation2 + $0x58] sm:$0xff] %v586_v1 }
 0x12d   :  { %600 = vst [vmem:[#allocation2 + $0x48] sm:$0xff] %v584_v3 }
 0x12f   :  { %v860_v4 = vpop.eup %859 }
 0x130   :  { %v862_v6 = vpop.eup %861  ;;  %v589_v9 = vmul.f32 %v860_v4, %v1074_v0 }
 0x131   :  { %v864_v27 = vpop.eup %863  ;;  %v587_v11 = vmul.f32 %v862_v6, %v1077_v7 }
 0x132   :  { %v866_v12 = vpop.eup %865  ;;  %605 = vst [vmem:[#allocation2 + $0x70] sm:$0xff] %v589_v9  ;;  %v590_v32 = vmul.f32 %v864_v27, %v1081_v14 }
 0x133   :  { %603 = vst [vmem:[#allocation2 + $0x60] sm:$0xff] %v587_v11  ;;  %v588_v38 = vmul.f32 %v866_v12, %v1085_v18 }
 0x134   :  { %606 = vst [vmem:[#allocation2 + $0x78] sm:$0xff] %v590_v32 }
 0x135   :  { %604 = vst [vmem:[#allocation2 + $0x68] sm:$0xff] %v588_v38 }
 0x136   :  { %878 = shalt.err (!%p875_p4)
}
 0x137   :  { %s879_s3 = scalar_lea.hbm %s1122_s5, 2048 }
 0x138   :  { %p880_p5 = scmp.ne.s32.totalorder %s1122_s5, %s879_s3  ;;  %p883_p6 = scmp.lt.u32.totalorder %s879_s3, %s1122_s5 }
 0x13a   :  { %p885_p7 = pnand %p883_p6, %p880_p5 }
 0x13c   :  { %888 = shalt.err (!%p885_p7)
}
 0x13d   :  { %s892_s12 = smov 128   ;;  %s893_s13 = smov 8  }
 0x13e   :  { %618 = dma.vmem_to_hbm [thread:$0]  %s613_s1, 2048, %s1122_s5, [#allocation3], %s892_s12, %s892_s12, %s893_s13  }
 0x13f   :  { %889 = dma.done.wait [#allocation3], 2048  }
 0x140   :  { %890 = vsyncadd [#allocation3], 4294965248 }
 0x141   :  { %622 = vsyncpa [#allocation3], 1 }

</bundles_post_ra>
